<compile_context>
chip_gen: v7x
topology: tpu7x:2x2x1
jax: 0.10.0
libtpu: 0.0.40
codegen_flags: <defaults>
</compile_context>

<pallas_src>
import functools

import jax
import jax.numpy as jnp
from jax import lax
from jax.experimental import pallas as pl
from jax.experimental.pallas import tpu as pltpu

BN_EPS = 1e-5
EXPANSION = 4
LANE = 128             # channel padding target (lane width)
_SUB = 8               # sublane rows used by the per-tile stats outputs
_BLOCK_ROWS = 256      # M-rows per tile; use ~512 on v7x, 1024-2048 on v5e/v6e
_VMEM_LIMIT = 32 * 1024 * 1024


def _cparams():
    return pltpu.CompilerParams(
        dimension_semantics=("parallel",),
        vmem_limit_bytes=_VMEM_LIMIT,
    )


def _round_up(x, m):
    return (x + m - 1) // m * m


def _pad_last(a, target):
    pad = target - a.shape[-1]
    if pad == 0:
        return a
    return jnp.pad(a, [(0, 0)] * (a.ndim - 1) + [(0, pad)])


def _pad_last2(a, t0, t1):
    p0 = t0 - a.shape[-2]
    p1 = t1 - a.shape[-1]
    if p0 == 0 and p1 == 0:
        return a
    return jnp.pad(a, [(0, 0)] * (a.ndim - 2) + [(0, p0), (0, p1)])


def _pick_block_rows(m):
    for bm in (_BLOCK_ROWS, 128, 64, 32, 16, 8):
        if bm <= m and m % bm == 0:
            return bm
    return m  # tiny / ragged M: single block fallback


# ---------------------------------------------------------------------------
# Pallas kernels
# ---------------------------------------------------------------------------
def _gemm_stats_kernel(x_ref, w_ref, y_ref, sum_ref, ssq_ref):
    """y = x @ w (MXU, f32 acc) + per-tile column sum / sum-of-squares of y."""
    x = x_ref[...].astype(w_ref.dtype)
    y = jnp.dot(x, w_ref[...], preferred_element_type=jnp.float32)
    y_ref[...] = y.astype(y_ref.dtype)
    s = jnp.sum(y, axis=0, keepdims=True)
    q = jnp.sum(y * y, axis=0, keepdims=True)
    sum_ref[...] = jnp.broadcast_to(s, sum_ref.shape)
    ssq_ref[...] = jnp.broadcast_to(q, ssq_ref.shape)


def _affine_gemm_stats_kernel(x_ref, w_ref, sc_ref, sh_ref,
                              y_ref, sum_ref, ssq_ref):
    """h = relu(x*scale + shift)  (previous layer's fused BN);  y = h @ w."""
    h = jnp.maximum(x_ref[...].astype(jnp.float32) * sc_ref[...] + sh_ref[...],
                    0.0)
    y = jnp.dot(h.astype(w_ref.dtype), w_ref[...],
                preferred_element_type=jnp.float32)
    y_ref[...] = y.astype(y_ref.dtype)
    s = jnp.sum(y, axis=0, keepdims=True)
    q = jnp.sum(y * y, axis=0, keepdims=True)
    sum_ref[...] = jnp.broadcast_to(s, sum_ref.shape)
    ssq_ref[...] = jnp.broadcast_to(q, ssq_ref.shape)


def _conv3x3_stats_kernel(xp_ref, w_ref, sc_ref, sh_ref,
                          y_ref, sum_ref, ssq_ref):
    """One image per grid step.

    xp_ref : (1, H+2, W+2, C) raw conv1 output, spatially zero-padded in glue.
    Applies bn1-affine + ReLU in-kernel (masking the padded border back to
    zero), then computes the 3x3 conv as 9 shifted GEMMs accumulated in f32 --
    no im2col buffer is ever materialized in HBM.
    """
    hp, wp, c = xp_ref.shape[1], xp_ref.shape[2], xp_ref.shape[3]
    h, w = hp - 2, wp - 2
    cout = w_ref.shape[-1]

    a = xp_ref[0].astype(jnp.float32) * sc_ref[...] + sh_ref[...]
    act = jnp.maximum(a, 0.0)
    # The spatial zero-padding was applied to the *raw* conv1 output, so the
    # border rows/cols must be forced back to zero after the affine + ReLU.
    row = lax.broadcasted_iota(jnp.int32, (hp, wp, c), 0)
    col = lax.broadcasted_iota(jnp.int32, (hp, wp, c), 1)
    interior = (row >= 1) & (row <= h) & (col >= 1) & (col <= w)
    act = jnp.where(interior, act, 0.0).astype(w_ref.dtype)

    acc = jnp.zeros((h * w, cout), jnp.float32)
    for dh in range(3):            # statically unrolled 3x3 taps
        for dw in range(3):
            patch = act[dh:dh + h, dw:dw + w, :].reshape(h * w, c)
            acc = acc + jnp.dot(patch, w_ref[dh, dw],
                                preferred_element_type=jnp.float32)

    y_ref[...] = acc.reshape(1, h, w, cout).astype(y_ref.dtype)
    s = jnp.sum(acc, axis=0, keepdims=True)
    q = jnp.sum(acc * acc, axis=0, keepdims=True)
    sum_ref[...] = jnp.broadcast_to(s, sum_ref.shape)
    ssq_ref[...] = jnp.broadcast_to(q, ssq_ref.shape)


def _affine_residual_kernel(y_ref, res_ref, sc_ref, sh_ref, out_ref):
    """out = relu(bn3(y3) + residual)  (per-channel affine form of bn3)."""
    y = y_ref[...].astype(jnp.float32) * sc_ref[...] + sh_ref[...]
    out_ref[...] = jnp.maximum(y + res_ref[...], 0.0)


# ---------------------------------------------------------------------------
# pallas_call wrappers
# ---------------------------------------------------------------------------
def _conv1x1_bn_stats(x, w, scale=None, shift=None):
    """Tiled (M, Cin) @ (Cin, Cout) with optional fused input affine + ReLU.

    Returns (y_raw, per_tile_sum, per_tile_sumsq)."""
    m, cin = x.shape
    cout = w.shape[1]
    bm = _pick_block_rows(m)
    gm = m // bm

    in_specs = [pl.BlockSpec((bm, cin), lambda i: (i, 0)),
                pl.BlockSpec((cin, cout), lambda i: (0, 0))]
    args = [x, w]
    if scale is not None:
        in_specs += [pl.BlockSpec((1, cin), lambda i: (0, 0)),
                     pl.BlockSpec((1, cin), lambda i: (0, 0))]
        args += [scale, shift]
        kernel = _affine_gemm_stats_kernel
    else:
        kernel = _gemm_stats_kernel

    y, ps, pq = pl.pallas_call(
        kernel,
        grid=(gm,),
        in_specs=in_specs,
        out_specs=(pl.BlockSpec((bm, cout), lambda i: (i, 0)),
                   pl.BlockSpec((_SUB, cout), lambda i: (i, 0)),
                   pl.BlockSpec((_SUB, cout), lambda i: (i, 0))),
        out_shape=(jax.ShapeDtypeStruct((m, cout), w.dtype),
                   jax.ShapeDtypeStruct((gm * _SUB, cout), jnp.float32),
                   jax.ShapeDtypeStruct((gm * _SUB, cout), jnp.float32)),
        compiler_params=_cparams(),
    )(*args)
    return y, ps[::_SUB], pq[::_SUB]


def _conv3x3_bn_stats(y1_flat, scale1, shift1, wts, n, h, w):
    """3x3 conv (stride 1, pad 1) with bn1-affine+ReLU fused on the input."""
    c = y1_flat.shape[-1]
    cout = wts.shape[-1]
    y1_img = y1_flat.reshape(n, h, w, c)
    y1_pad = jnp.pad(y1_img, ((0, 0), (1, 1), (1, 1), (0, 0)))  # cheap glue

    y2, ps, pq = pl.pallas_call(
        _conv3x3_stats_kernel,
        grid=(n,),
        in_specs=[pl.BlockSpec((1, h + 2, w + 2, c), lambda i: (i, 0, 0, 0)),
                  pl.BlockSpec((3, 3, c, cout), lambda i: (0, 0, 0, 0)),
                  pl.BlockSpec((1, c), lambda i: (0, 0)),
                  pl.BlockSpec((1, c), lambda i: (0, 0))],
        out_specs=(pl.BlockSpec((1, h, w, cout), lambda i: (i, 0, 0, 0)),
                   pl.BlockSpec((_SUB, cout), lambda i: (i, 0)),
                   pl.BlockSpec((_SUB, cout), lambda i: (i, 0))),
        out_shape=(jax.ShapeDtypeStruct((n, h, w, cout), wts.dtype),
                   jax.ShapeDtypeStruct((n * _SUB, cout), jnp.float32),
                   jax.ShapeDtypeStruct((n * _SUB, cout), jnp.float32)),
        compiler_params=_cparams(),
    )(y1_pad, wts, scale1, shift1)
    return y2.reshape(n * h * w, cout), ps[::_SUB], pq[::_SUB]


def _bn_residual_relu(y3, residual, scale3, shift3):
    m, c = y3.shape
    bm = _pick_block_rows(m)
    gm = m // bm
    return pl.pallas_call(
        _affine_residual_kernel,
        grid=(gm,),
        in_specs=[pl.BlockSpec((bm, c), lambda i: (i, 0)),
                  pl.BlockSpec((bm, c), lambda i: (i, 0)),
                  pl.BlockSpec((1, c), lambda i: (0, 0)),
                  pl.BlockSpec((1, c), lambda i: (0, 0))],
        out_specs=pl.BlockSpec((bm, c), lambda i: (i, 0)),
        out_shape=jax.ShapeDtypeStruct((m, c), jnp.float32),
        compiler_params=_cparams(),
    )(y3, residual, scale3, shift3)


# ---------------------------------------------------------------------------
# Per-channel glue: partial stats -> fused BN affine (tiny, plain JAX)
# ---------------------------------------------------------------------------
def _bn_affine(part_sum, part_ssq, gamma, beta, count):
    mean = jnp.sum(part_sum, axis=0, keepdims=True) / count
    var = jnp.maximum(jnp.sum(part_ssq, axis=0, keepdims=True) / count
                      - mean * mean, 0.0)
    scale = gamma * lax.rsqrt(var + BN_EPS)
    shift = beta - mean * scale
    return scale, shift


# ---------------------------------------------------------------------------
# Bottleneck forward
# ---------------------------------------------------------------------------
@functools.partial(jax.jit, static_argnames=("compute_dtype",))
def bottleneck_forward(x_nchw, params, compute_dtype=jnp.bfloat16):
    """Pallas implementation of Bottleneck.forward (training-mode BN)."""
    # TODO(synk): stride>1 / downsample branch not implemented (module defaults).
    n, c_in, h, w = x_nchw.shape
    planes = params["w1"].shape[0]
    c_out = planes * EXPANSION
    assert c_in == c_out, "identity residual requires inplanes == planes*expansion"

    cinp = _round_up(c_in, LANE)
    pp = _round_up(planes, LANE)
    coutp = _round_up(c_out, LANE)
    m = n * h * w

    # Layout + lane padding + GEMM-form (bf16) weights -- plain-JAX glue.
    x_flat = _pad_last(jnp.transpose(x_nchw, (0, 2, 3, 1)).reshape(m, c_in), cinp)
    w1 = _pad_last2(params["w1"][:, :, 0, 0].T, cinp, pp).astype(compute_dtype)
    w2 = _pad_last2(jnp.transpose(params["w2"], (2, 3, 1, 0)), pp, pp).astype(compute_dtype)
    w3 = _pad_last2(params["w3"][:, :, 0, 0].T, pp, coutp).astype(compute_dtype)
    g1, b1 = _pad_last(params["g1"], pp), _pad_last(params["b1"], pp)
    g2, b2 = _pad_last(params["g2"], pp), _pad_last(params["b2"], pp)
    g3, b3 = _pad_last(params["g3"], coutp), _pad_last(params["b3"], coutp)

    # conv1 (1x1) + bn1 partial stats
    y1, s1, q1 = _conv1x1_bn_stats(x_flat, w1)
    scale1, shift1 = _bn_affine(s1, q1, g1, b1, m)

    # [bn1+relu fused] conv2 (3x3, in-kernel shifted GEMMs) + bn2 partial stats
    y2, s2, q2 = _conv3x3_bn_stats(y1, scale1, shift1, w2, n, h, w)
    scale2, shift2 = _bn_affine(s2, q2, g2, b2, m)

    # [bn2+relu fused] conv3 (1x1) + bn3 partial stats
    y3, s3, q3 = _conv1x1_bn_stats(y2, w3, scale2, shift2)
    scale3, shift3 = _bn_affine(s3, q3, g3, b3, m)

    # bn3 + residual add + relu
    out = _bn_residual_relu(y3, x_flat, scale3, shift3)

    out = out[:, :c_out].reshape(n, h, w, c_out)
    return jnp.transpose(out, (0, 3, 1, 2))


# ---------------------------------------------------------------------------
# Pure-JAX reference (mirrors PyTorch training-mode forward)
# ---------------------------------------------------------------------------
def reference_forward(x, p):
    def bn(y, g, b):
        mean = y.mean(axis=(0, 2, 3), keepdims=True)
        var = y.var(axis=(0, 2, 3), keepdims=True)  # biased, like PyTorch train
        return ((y - mean) / jnp.sqrt(var + BN_EPS)
                * g.reshape(1, -1, 1, 1) + b.reshape(1, -1, 1, 1))

    def conv(y, w, pad):
        return lax.conv_general_dilated(
            y, w, (1, 1), pad, dimension_numbers=("NCHW", "OIHW", "NCHW"))

    out = jax.nn.relu(bn(conv(x, p["w1"], "VALID"), p["g1"].ravel(), p["b1"].ravel()))
    out = jax.nn.relu(bn(conv(out, p["w2"], ((1, 1), (1, 1))), p["g2"].ravel(), p["b2"].ravel()))
    out = bn(conv(out, p["w3"], "VALID"), p["g3"].ravel(), p["b3"].ravel())
    return jax.nn.relu(out + x)


def make_params(inplanes, planes, key):
    ks = jax.random.split(key, 9)
    c_out = planes * EXPANSION
    return dict(
        w1=0.1 * jax.random.normal(ks[0], (planes, inplanes, 1, 1), jnp.float32),
        w2=0.1 * jax.random.normal(ks[1], (planes, planes, 3, 3), jnp.float32),
        w3=0.1 * jax.random.normal(ks[2], (c_out, planes, 1, 1), jnp.float32),
        g1=1.0 + 0.1 * jax.random.normal(ks[3], (1, planes), jnp.float32),
        b1=0.1 * jax.random.normal(ks[4], (1, planes), jnp.float32),
        g2=1.0 + 0.1 * jax.random.normal(ks[5], (1, planes), jnp.float32),
        b2=0.1 * jax.random.normal(ks[6], (1, planes), jnp.float32),
        g3=1.0 + 0.1 * jax.random.normal(ks[7], (1, c_out), jnp.float32),
        b3=0.1 * jax.random.normal(ks[8], (1, c_out), jnp.float32),
    )


if __name__ == "__main__":
    N, H, W = 2, 16, 16
    planes = 4
    inplanes = planes * EXPANSION      # identity residual (downsample=None)

    key = jax.random.PRNGKey(0)
    k_x, k_p = jax.random.split(key)
    x = jax.random.normal(k_x, (N, inplanes, H, W), jnp.float32)   # NCHW
    params = make_params(inplanes, planes, k_p)

    ref = jax.block_until_ready(reference_forward(x, params))

    # f32 compute path: tight check of the tiled algorithm.
    out_f32 = jax.block_until_ready(
        bottleneck_forward(x, params, compute_dtype=jnp.float32))
    assert out_f32.shape == (N, planes * EXPANSION, H, W)
    assert jnp.allclose(out_f32, ref, atol=1e-3, rtol=1e-3), \
        float(jnp.max(jnp.abs(out_f32 - ref)))

    # bf16 MXU path (default): looser tolerance is the expected bf16 envelope
    # (errors get amplified by the BatchNorm 1/std normalization).
    out_bf16 = jax.block_until_ready(bottleneck_forward(x, params))
    assert out_bf16.shape == (N, planes * EXPANSION, H, W)
    assert jnp.allclose(out_bf16, ref, atol=1.5e-1, rtol=1.5e-1), \
        float(jnp.max(jnp.abs(out_bf16 - ref)))

    print("KERNEL_OK")
</pallas_src>

<mosaic_0001>
module attributes {stable_mosaic.version = 11 : i64} {
  func.func @_gemm_stats_kernel(%arg0: i32, %arg1: memref<256x128xf32, #tpu.memory_space<vmem>>, %arg2: memref<128x128xf32, #tpu.memory_space<vmem>>, %arg3: memref<256x128xf32, #tpu.memory_space<vmem>>, %arg4: memref<8x128xf32, #tpu.memory_space<vmem>>, %arg5: memref<8x128xf32, #tpu.memory_space<vmem>>) attributes {dimension_semantics = [#tpu.dimension_semantics<parallel>], iteration_bounds = array<i64: 2>, scalar_prefetch = 0 : i64, scratch_operands = 0 : i64, tpu.core_type = #tpu.core_type<tc>, window_params = [{transform_indices = @transform_0, window_bounds = array<i64: 256, 128>}, {pipeline_mode = #tpu.pipeline_mode<synchronous>, transform_indices = @transform_1, window_bounds = array<i64: 128, 128>}, {transform_indices = @transform_2, window_bounds = array<i64: 256, 128>}, {transform_indices = @transform_3, window_bounds = array<i64: 8, 128>}, {transform_indices = @transform_4, window_bounds = array<i64: 8, 128>}]} {
    %c0 = arith.constant 0 : index
    %c0_0 = arith.constant 0 : index
    %0 = vector.load %arg1[%c0, %c0_0] : memref<256x128xf32, #tpu.memory_space<vmem>>, vector<256x128xf32>
    %c0_1 = arith.constant 0 : index
    %c0_2 = arith.constant 0 : index
    %1 = vector.load %arg2[%c0_1, %c0_2] : memref<128x128xf32, #tpu.memory_space<vmem>>, vector<128x128xf32>
    %cst = arith.constant dense<0.000000e+00> : vector<256x128xf32>
    %2 = tpu.matmul %0, %1, %cst {dimension_numbers = #tpu.dot_dimension_numbers<[1], [0], [0], [1], [0, 0, 1, 1], [], []>} : vector<256x128xf32>, vector<128x128xf32>, vector<256x128xf32> -> vector<256x128xf32>
    %c0_3 = arith.constant 0 : index
    %c0_4 = arith.constant 0 : index
    %3 = vector.load %arg3[%c0_3, %c0_4] : memref<256x128xf32, #tpu.memory_space<vmem>>, vector<256x128xf32>
    tpu.vector_store %arg3[%c0_3, %c0_4], %2 {strides = array<i32>} : memref<256x128xf32, #tpu.memory_space<vmem>>, vector<256x128xf32>,
    %cst_5 = arith.constant dense<0.000000e+00> : vector<128xf32>
    %4 = vector.multi_reduction <add>, %2, %cst_5 [0] : vector<256x128xf32> to vector<128xf32>
    %5 = vector.shape_cast %4 : vector<128xf32> to vector<1x128xf32>
    %6 = arith.mulf %2, %2 : vector<256x128xf32>
    %cst_6 = arith.constant dense<0.000000e+00> : vector<128xf32>
    %7 = vector.multi_reduction <add>, %6, %cst_6 [0] : vector<256x128xf32> to vector<128xf32>
    %8 = vector.shape_cast %7 : vector<128xf32> to vector<1x128xf32>
    %9 = vector.shape_cast %5 : vector<1x128xf32> to vector<1x128xf32>
    %10 = vector.broadcast %9 : vector<1x128xf32> to vector<8x128xf32>
    %c0_7 = arith.constant 0 : index
    %c0_8 = arith.constant 0 : index
    %11 = vector.load %arg4[%c0_7, %c0_8] : memref<8x128xf32, #tpu.memory_space<vmem>>, vector<8x128xf32>
    tpu.vector_store %arg4[%c0_7, %c0_8], %10 {strides = array<i32>} : memref<8x128xf32, #tpu.memory_space<vmem>>, vector<8x128xf32>,
    %12 = vector.shape_cast %8 : vector<1x128xf32> to vector<1x128xf32>
    %13 = vector.broadcast %12 : vector<1x128xf32> to vector<8x128xf32>
    %c0_9 = arith.constant 0 : index
    %c0_10 = arith.constant 0 : index
    %14 = vector.load %arg5[%c0_9, %c0_10] : memref<8x128xf32, #tpu.memory_space<vmem>>, vector<8x128xf32>
    tpu.vector_store %arg5[%c0_9, %c0_10], %13 {strides = array<i32>} : memref<8x128xf32, #tpu.memory_space<vmem>>, vector<8x128xf32>,
    return
  }
  func.func @transform_0(%arg0: i32) -> (i32, i32) {
    %c0_i32 = arith.constant 0 : i32
    %c0_i32_0 = arith.constant 0 : i32
    return %arg0, %c0_i32 : i32, i32
  }
  func.func @transform_1(%arg0: i32) -> (i32, i32) {
    %c0_i32 = arith.constant 0 : i32
    %c0_i32_0 = arith.constant 0 : i32
    %c0_i32_1 = arith.constant 0 : i32
    return %c0_i32, %c0_i32_0 : i32, i32
  }
  func.func @transform_2(%arg0: i32) -> (i32, i32) {
    %c0_i32 = arith.constant 0 : i32
    %c0_i32_0 = arith.constant 0 : i32
    return %arg0, %c0_i32 : i32, i32
  }
  func.func @transform_3(%arg0: i32) -> (i32, i32) {
    %c0_i32 = arith.constant 0 : i32
    %c0_i32_0 = arith.constant 0 : i32
    return %arg0, %c0_i32 : i32, i32
  }
  func.func @transform_4(%arg0: i32) -> (i32, i32) {
    %c0_i32 = arith.constant 0 : i32
    %c0_i32_0 = arith.constant 0 : i32
    return %arg0, %c0_i32 : i32, i32
  }
}

module attributes {stable_mosaic.version = 11 : i64} {
  func.func @_affine_gemm_stats_kernel(%arg0: i32, %arg1: memref<256x128xf32, #tpu.memory_space<vmem>>, %arg2: memref<128x128xf32, #tpu.memory_space<vmem>>, %arg3: memref<1x128xf32, #tpu.memory_space<vmem>>, %arg4: memref<1x128xf32, #tpu.memory_space<vmem>>, %arg5: memref<256x128xf32, #tpu.memory_space<vmem>>, %arg6: memref<8x128xf32, #tpu.memory_space<vmem>>, %arg7: memref<8x128xf32, #tpu.memory_space<vmem>>) attributes {dimension_semantics = [#tpu.dimension_semantics<parallel>], iteration_bounds = array<i64: 2>, scalar_prefetch = 0 : i64, scratch_operands = 0 : i64, tpu.core_type = #tpu.core_type<tc>, window_params = [{transform_indices = @transform_0, window_bounds = array<i64: 256, 128>}, {pipeline_mode = #tpu.pipeline_mode<synchronous>, transform_indices = @transform_1, window_bounds = array<i64: 128, 128>}, {pipeline_mode = #tpu.pipeline_mode<synchronous>, transform_indices = @transform_2, window_bounds = array<i64: 1, 128>}, {pipeline_mode = #tpu.pipeline_mode<synchronous>, transform_indices = @transform_3, window_bounds = array<i64: 1, 128>}, {transform_indices = @transform_4, window_bounds = array<i64: 256, 128>}, {transform_indices = @transform_5, window_bounds = array<i64: 8, 128>}, {transform_indices = @transform_6, window_bounds = array<i64: 8, 128>}]} {
    %c0 = arith.constant 0 : index
    %c0_0 = arith.constant 0 : index
    %0 = vector.load %arg1[%c0, %c0_0] : memref<256x128xf32, #tpu.memory_space<vmem>>, vector<256x128xf32>
    %c0_1 = arith.constant 0 : index
    %c0_2 = arith.constant 0 : index
    %1 = vector.load %arg3[%c0_1, %c0_2] : memref<1x128xf32, #tpu.memory_space<vmem>>, vector<1x128xf32>
    %2 = vector.broadcast %1 : vector<1x128xf32> to vector<256x128xf32>
    %3 = arith.mulf %0, %2 : vector<256x128xf32>
    %c0_3 = arith.constant 0 : index
    %c0_4 = arith.constant 0 : index
    %4 = vector.load %arg4[%c0_3, %c0_4] : memref<1x128xf32, #tpu.memory_space<vmem>>, vector<1x128xf32>
    %5 = vector.broadcast %4 : vector<1x128xf32> to vector<256x128xf32>
    %6 = arith.addf %3, %5 : vector<256x128xf32>
    %cst = arith.constant 0.000000e+00 : f32
    %7 = vector.broadcast %cst : f32 to vector<256x128xf32>
    %8 = arith.maximumf %6, %7 : vector<256x128xf32>
    %c0_5 = arith.constant 0 : index
    %c0_6 = arith.constant 0 : index
    %9 = vector.load %arg2[%c0_5, %c0_6] : memref<128x128xf32, #tpu.memory_space<vmem>>, vector<128x128xf32>
    %cst_7 = arith.constant dense<0.000000e+00> : vector<256x128xf32>
    %10 = tpu.matmul %8, %9, %cst_7 {dimension_numbers = #tpu.dot_dimension_numbers<[1], [0], [0], [1], [0, 0, 1, 1], [], []>} : vector<256x128xf32>, vector<128x128xf32>, vector<256x128xf32> -> vector<256x128xf32>
    %c0_8 = arith.constant 0 : index
    %c0_9 = arith.constant 0 : index
    %11 = vector.load %arg5[%c0_8, %c0_9] : memref<256x128xf32, #tpu.memory_space<vmem>>, vector<256x128xf32>
    tpu.vector_store %arg5[%c0_8, %c0_9], %10 {strides = array<i32>} : memref<256x128xf32, #tpu.memory_space<vmem>>, vector<256x128xf32>,
    %cst_10 = arith.constant dense<0.000000e+00> : vector<128xf32>
    %12 = vector.multi_reduction <add>, %10, %cst_10 [0] : vector<256x128xf32> to vector<128xf32>
    %13 = vector.shape_cast %12 : vector<128xf32> to vector<1x128xf32>
    %14 = arith.mulf %10, %10 : vector<256x128xf32>
    %cst_11 = arith.constant dense<0.000000e+00> : vector<128xf32>
    %15 = vector.multi_reduction <add>, %14, %cst_11 [0] : vector<256x128xf32> to vector<128xf32>
    %16 = vector.shape_cast %15 : vector<128xf32> to vector<1x128xf32>
    %17 = vector.shape_cast %13 : vector<1x128xf32> to vector<1x128xf32>
    %18 = vector.broadcast %17 : vector<1x128xf32> to vector<8x128xf32>
    %c0_12 = arith.constant 0 : index
    %c0_13 = arith.constant 0 : index
    %19 = vector.load %arg6[%c0_12, %c0_13] : memref<8x128xf32, #tpu.memory_space<vmem>>, vector<8x128xf32>
    tpu.vector_store %arg6[%c0_12, %c0_13], %18 {strides = array<i32>} : memref<8x128xf32, #tpu.memory_space<vmem>>, vector<8x128xf32>,
    %20 = vector.shape_cast %16 : vector<1x128xf32> to vector<1x128xf32>
    %21 = vector.broadcast %20 : vector<1x128xf32> to vector<8x128xf32>
    %c0_14 = arith.constant 0 : index
    %c0_15 = arith.constant 0 : index
    %22 = vector.load %arg7[%c0_14, %c0_15] : memref<8x128xf32, #tpu.memory_space<vmem>>, vector<8x128xf32>
    tpu.vector_store %arg7[%c0_14, %c0_15], %21 {strides = array<i32>} : memref<8x128xf32, #tpu.memory_space<vmem>>, vector<8x128xf32>,
    return
  }
  func.func @transform_0(%arg0: i32) -> (i32, i32) {
    %c0_i32 = arith.constant 0 : i32
    %c0_i32_0 = arith.constant 0 : i32
    return %arg0, %c0_i32 : i32, i32
  }
  func.func @transform_1(%arg0: i32) -> (i32, i32) {
    %c0_i32 = arith.constant 0 : i32
    %c0_i32_0 = arith.constant 0 : i32
    %c0_i32_1 = arith.constant 0 : i32
    return %c0_i32, %c0_i32_0 : i32, i32
  }
  func.func @transform_2(%arg0: i32) -> (i32, i32) {
    %c0_i32 = arith.constant 0 : i32
    %c0_i32_0 = arith.constant 0 : i32
    %c0_i32_1 = arith.constant 0 : i32
    return %c0_i32, %c0_i32_0 : i32, i32
  }
  func.func @transform_3(%arg0: i32) -> (i32, i32) {
    %c0_i32 = arith.constant 0 : i32
    %c0_i32_0 = arith.constant 0 : i32
    %c0_i32_1 = arith.constant 0 : i32
    return %c0_i32, %c0_i32_0 : i32, i32
  }
  func.func @transform_4(%arg0: i32) -> (i32, i32) {
    %c0_i32 = arith.constant 0 : i32
    %c0_i32_0 = arith.constant 0 : i32
    return %arg0, %c0_i32 : i32, i32
  }
  func.func @transform_5(%arg0: i32) -> (i32, i32) {
    %c0_i32 = arith.constant 0 : i32
    %c0_i32_0 = arith.constant 0 : i32
    return %arg0, %c0_i32 : i32, i32
  }
  func.func @transform_6(%arg0: i32) -> (i32, i32) {
    %c0_i32 = arith.constant 0 : i32
    %c0_i32_0 = arith.constant 0 : i32
    return %arg0, %c0_i32 : i32, i32
  }
}

module attributes {stable_mosaic.version = 11 : i64} {
  func.func @_conv3x3_stats_kernel(%arg0: i32, %arg1: memref<1x18x18x128xf32, #tpu.memory_space<vmem>>, %arg2: memref<3x3x128x128xf32, #tpu.memory_space<vmem>>, %arg3: memref<1x128xf32, #tpu.memory_space<vmem>>, %arg4: memref<1x128xf32, #tpu.memory_space<vmem>>, %arg5: memref<1x16x16x128xf32, #tpu.memory_space<vmem>>, %arg6: memref<8x128xf32, #tpu.memory_space<vmem>>, %arg7: memref<8x128xf32, #tpu.memory_space<vmem>>) attributes {dimension_semantics = [#tpu.dimension_semantics<parallel>], iteration_bounds = array<i64: 2>, scalar_prefetch = 0 : i64, scratch_operands = 0 : i64, tpu.core_type = #tpu.core_type<tc>, window_params = [{transform_indices = @transform_0, window_bounds = array<i64: 1, 18, 18, 128>}, {pipeline_mode = #tpu.pipeline_mode<synchronous>, transform_indices = @transform_1, window_bounds = array<i64: 3, 3, 128, 128>}, {pipeline_mode = #tpu.pipeline_mode<synchronous>, transform_indices = @transform_2, window_bounds = array<i64: 1, 128>}, {pipeline_mode = #tpu.pipeline_mode<synchronous>, transform_indices = @transform_3, window_bounds = array<i64: 1, 128>}, {transform_indices = @transform_4, window_bounds = array<i64: 1, 16, 16, 128>}, {transform_indices = @transform_5, window_bounds = array<i64: 8, 128>}, {transform_indices = @transform_6, window_bounds = array<i64: 8, 128>}]} {
    %c0 = arith.constant 0 : index
    %c0_0 = arith.constant 0 : index
    %c0_1 = arith.constant 0 : index
    %c0_2 = arith.constant 0 : index
    %0 = vector.load %arg1[%c0, %c0_0, %c0_1, %c0_2] : memref<1x18x18x128xf32, #tpu.memory_space<vmem>>, vector<1x18x18x128xf32>
    %1 = vector.shape_cast %0 : vector<1x18x18x128xf32> to vector<18x18x128xf32>
    %c0_3 = arith.constant 0 : index
    %c0_4 = arith.constant 0 : index
    %2 = vector.load %arg3[%c0_3, %c0_4] : memref<1x128xf32, #tpu.memory_space<vmem>>, vector<1x128xf32>
    %3 = vector.shape_cast %2 : vector<1x128xf32> to vector<1x1x128xf32>
    %4 = vector.broadcast %3 : vector<1x1x128xf32> to vector<18x18x128xf32>
    %5 = arith.mulf %1, %4 : vector<18x18x128xf32>
    %c0_5 = arith.constant 0 : index
    %c0_6 = arith.constant 0 : index
    %6 = vector.load %arg4[%c0_5, %c0_6] : memref<1x128xf32, #tpu.memory_space<vmem>>, vector<1x128xf32>
    %7 = vector.shape_cast %6 : vector<1x128xf32> to vector<1x1x128xf32>
    %8 = vector.broadcast %7 : vector<1x1x128xf32> to vector<18x18x128xf32>
    %9 = arith.addf %5, %8 : vector<18x18x128xf32>
    %cst = arith.constant 0.000000e+00 : f32
    %10 = vector.broadcast %cst : f32 to vector<18x18x128xf32>
    %11 = arith.maximumf %9, %10 : vector<18x18x128xf32>
    %12 = tpu.iota {dimensions = array<i32: 0>} : vector<18x18x128xi32>
    %13 = tpu.iota {dimensions = array<i32: 1>} : vector<18x18x128xi32>
    %c1_i32 = arith.constant 1 : i32
    %14 = vector.broadcast %c1_i32 : i32 to vector<18x18x128xi32>
    %15 = arith.cmpi sge, %12, %14 : vector<18x18x128xi32>
    %c16_i32 = arith.constant 16 : i32
    %16 = vector.broadcast %c16_i32 : i32 to vector<18x18x128xi32>
    %17 = arith.cmpi sle, %12, %16 : vector<18x18x128xi32>
    %18 = arith.andi %15, %17 : vector<18x18x128xi1>
    %c1_i32_7 = arith.constant 1 : i32
    %19 = vector.broadcast %c1_i32_7 : i32 to vector<18x18x128xi32>
    %20 = arith.cmpi sge, %13, %19 : vector<18x18x128xi32>
    %21 = arith.andi %18, %20 : vector<18x18x128xi1>
    %c16_i32_8 = arith.constant 16 : i32
    %22 = vector.broadcast %c16_i32_8 : i32 to vector<18x18x128xi32>
    %23 = arith.cmpi sle, %13, %22 : vector<18x18x128xi32>
    %24 = arith.andi %21, %23 : vector<18x18x128xi1>
    %cst_9 = arith.constant 0.000000e+00 : f32
    %25 = vector.broadcast %cst_9 : f32 to vector<18x18x128xf32>
    %26 = arith.select %24, %11, %25 : vector<18x18x128xi1>, vector<18x18x128xf32>
    %cst_10 = arith.constant 0.000000e+00 : f32
    %27 = vector.broadcast %cst_10 : f32 to vector<256x128xf32>
    %28 = vector.extract_strided_slice %26 {offsets = [0, 0, 0], sizes = [16, 16, 128], strides = [1, 1, 1]} : vector<18x18x128xf32> to vector<16x16x128xf32>
    %29 = vector.shape_cast %28 : vector<16x16x128xf32> to vector<256x128xf32>
    %c0_11 = arith.constant 0 : index
    %c0_12 = arith.constant 0 : index
    %c0_13 = arith.constant 0 : index
    %c0_14 = arith.constant 0 : index
    %30 = vector.load %arg2[%c0_11, %c0_12, %c0_13, %c0_14] : memref<3x3x128x128xf32, #tpu.memory_space<vmem>>, vector<1x1x128x128xf32>
    %31 = vector.shape_cast %30 : vector<1x1x128x128xf32> to vector<128x128xf32>
    %cst_15 = arith.constant dense<0.000000e+00> : vector<256x128xf32>
    %32 = tpu.matmul %29, %31, %cst_15 {dimension_numbers = #tpu.dot_dimension_numbers<[1], [0], [0], [1], [0, 0, 1, 1], [], []>} : vector<256x128xf32>, vector<128x128xf32>, vector<256x128xf32> -> vector<256x128xf32>
    %33 = arith.addf %27, %32 : vector<256x128xf32>
    %34 = vector.extract_strided_slice %26 {offsets = [0, 1, 0], sizes = [16, 16, 128], strides = [1, 1, 1]} : vector<18x18x128xf32> to vector<16x16x128xf32>
    %35 = vector.shape_cast %34 : vector<16x16x128xf32> to vector<256x128xf32>
    %c0_16 = arith.constant 0 : index
    %c1 = arith.constant 1 : index
    %c0_17 = arith.constant 0 : index
    %c0_18 = arith.constant 0 : index
    %36 = vector.load %arg2[%c0_16, %c1, %c0_17, %c0_18] : memref<3x3x128x128xf32, #tpu.memory_space<vmem>>, vector<1x1x128x128xf32>
    %37 = vector.shape_cast %36 : vector<1x1x128x128xf32> to vector<128x128xf32>
    %cst_19 = arith.constant dense<0.000000e+00> : vector<256x128xf32>
    %38 = tpu.matmul %35, %37, %cst_19 {dimension_numbers = #tpu.dot_dimension_numbers<[1], [0], [0], [1], [0, 0, 1, 1], [], []>} : vector<256x128xf32>, vector<128x128xf32>, vector<256x128xf32> -> vector<256x128xf32>
    %39 = arith.addf %33, %38 : vector<256x128xf32>
    %40 = vector.extract_strided_slice %26 {offsets = [0, 2, 0], sizes = [16, 16, 128], strides = [1, 1, 1]} : vector<18x18x128xf32> to vector<16x16x128xf32>
    %41 = vector.shape_cast %40 : vector<16x16x128xf32> to vector<256x128xf32>
    %c0_20 = arith.constant 0 : index
    %c2 = arith.constant 2 : index
    %c0_21 = arith.constant 0 : index
    %c0_22 = arith.constant 0 : index
    %42 = vector.load %arg2[%c0_20, %c2, %c0_21, %c0_22] : memref<3x3x128x128xf32, #tpu.memory_space<vmem>>, vector<1x1x128x128xf32>
    %43 = vector.shape_cast %42 : vector<1x1x128x128xf32> to vector<128x128xf32>
    %cst_23 = arith.constant dense<0.000000e+00> : vector<256x128xf32>
    %44 = tpu.matmul %41, %43, %cst_23 {dimension_numbers = #tpu.dot_dimension_numbers<[1], [0], [0], [1], [0, 0, 1, 1], [], []>} : vector<256x128xf32>, vector<128x128xf32>, vector<256x128xf32> -> vector<256x128xf32>
    %45 = arith.addf %39, %44 : vector<256x128xf32>
    %46 = vector.extract_strided_slice %26 {offsets = [1, 0, 0], sizes = [16, 16, 128], strides = [1, 1, 1]} : vector<18x18x128xf32> to vector<16x16x128xf32>
    %47 = vector.shape_cast %46 : vector<16x16x128xf32> to vector<256x128xf32>
    %c1_24 = arith.constant 1 : index
    %c0_25 = arith.constant 0 : index
    %c0_26 = arith.constant 0 : index
    %c0_27 = arith.constant 0 : index
    %48 = vector.load %arg2[%c1_24, %c0_25, %c0_26, %c0_27] : memref<3x3x128x128xf32, #tpu.memory_space<vmem>>, vector<1x1x128x128xf32>
    %49 = vector.shape_cast %48 : vector<1x1x128x128xf32> to vector<128x128xf32>
    %cst_28 = arith.constant dense<0.000000e+00> : vector<256x128xf32>
    %50 = tpu.matmul %47, %49, %cst_28 {dimension_numbers = #tpu.dot_dimension_numbers<[1], [0], [0], [1], [0, 0, 1, 1], [], []>} : vector<256x128xf32>, vector<128x128xf32>, vector<256x128xf32> -> vector<256x128xf32>
    %51 = arith.addf %45, %50 : vector<256x128xf32>
    %52 = vector.extract_strided_slice %26 {offsets = [1, 1, 0], sizes = [16, 16, 128], strides = [1, 1, 1]} : vector<18x18x128xf32> to vector<16x16x128xf32>
    %53 = vector.shape_cast %52 : vector<16x16x128xf32> to vector<256x128xf32>
    %c1_29 = arith.constant 1 : index
    %c1_30 = arith.constant 1 : index
    %c0_31 = arith.constant 0 : index
    %c0_32 = arith.constant 0 : index
    %54 = vector.load %arg2[%c1_29, %c1_30, %c0_31, %c0_32] : memref<3x3x128x128xf32, #tpu.memory_space<vmem>>, vector<1x1x128x128xf32>
    %55 = vector.shape_cast %54 : vector<1x1x128x128xf32> to vector<128x128xf32>
    %cst_33 = arith.constant dense<0.000000e+00> : vector<256x128xf32>
    %56 = tpu.matmul %53, %55, %cst_33 {dimension_numbers = #tpu.dot_dimension_numbers<[1], [0], [0], [1], [0, 0, 1, 1], [], []>} : vector<256x128xf32>, vector<128x128xf32>, vector<256x128xf32> -> vector<256x128xf32>
    %57 = arith.addf %51, %56 : vector<256x128xf32>
    %58 = vector.extract_strided_slice %26 {offsets = [1, 2, 0], sizes = [16, 16, 128], strides = [1, 1, 1]} : vector<18x18x128xf32> to vector<16x16x128xf32>
    %59 = vector.shape_cast %58 : vector<16x16x128xf32> to vector<256x128xf32>
    %c1_34 = arith.constant 1 : index
    %c2_35 = arith.constant 2 : index
    %c0_36 = arith.constant 0 : index
    %c0_37 = arith.constant 0 : index
    %60 = vector.load %arg2[%c1_34, %c2_35, %c0_36, %c0_37] : memref<3x3x128x128xf32, #tpu.memory_space<vmem>>, vector<1x1x128x128xf32>
    %61 = vector.shape_cast %60 : vector<1x1x128x128xf32> to vector<128x128xf32>
    %cst_38 = arith.constant dense<0.000000e+00> : vector<256x128xf32>
    %62 = tpu.matmul %59, %61, %cst_38 {dimension_numbers = #tpu.dot_dimension_numbers<[1], [0], [0], [1], [0, 0, 1, 1], [], []>} : vector<256x128xf32>, vector<128x128xf32>, vector<256x128xf32> -> vector<256x128xf32>
    %63 = arith.addf %57, %62 : vector<256x128xf32>
    %64 = vector.extract_strided_slice %26 {offsets = [2, 0, 0], sizes = [16, 16, 128], strides = [1, 1, 1]} : vector<18x18x128xf32> to vector<16x16x128xf32>
    %65 = vector.shape_cast %64 : vector<16x16x128xf32> to vector<256x128xf32>
    %c2_39 = arith.constant 2 : index
    %c0_40 = arith.constant 0 : index
    %c0_41 = arith.constant 0 : index
    %c0_42 = arith.constant 0 : index
    %66 = vector.load %arg2[%c2_39, %c0_40, %c0_41, %c0_42] : memref<3x3x128x128xf32, #tpu.memory_space<vmem>>, vector<1x1x128x128xf32>
    %67 = vector.shape_cast %66 : vector<1x1x128x128xf32> to vector<128x128xf32>
    %cst_43 = arith.constant dense<0.000000e+00> : vector<256x128xf32>
    %68 = tpu.matmul %65, %67, %cst_43 {dimension_numbers = #tpu.dot_dimension_numbers<[1], [0], [0], [1], [0, 0, 1, 1], [], []>} : vector<256x128xf32>, vector<128x128xf32>, vector<256x128xf32> -> vector<256x128xf32>
    %69 = arith.addf %63, %68 : vector<256x128xf32>
    %70 = vector.extract_strided_slice %26 {offsets = [2, 1, 0], sizes = [16, 16, 128], strides = [1, 1, 1]} : vector<18x18x128xf32> to vector<16x16x128xf32>
    %71 = vector.shape_cast %70 : vector<16x16x128xf32> to vector<256x128xf32>
    %c2_44 = arith.constant 2 : index
    %c1_45 = arith.constant 1 : index
    %c0_46 = arith.constant 0 : index
    %c0_47 = arith.constant 0 : index
    %72 = vector.load %arg2[%c2_44, %c1_45, %c0_46, %c0_47] : memref<3x3x128x128xf32, #tpu.memory_space<vmem>>, vector<1x1x128x128xf32>
    %73 = vector.shape_cast %72 : vector<1x1x128x128xf32> to vector<128x128xf32>
    %cst_48 = arith.constant dense<0.000000e+00> : vector<256x128xf32>
    %74 = tpu.matmul %71, %73, %cst_48 {dimension_numbers = #tpu.dot_dimension_numbers<[1], [0], [0], [1], [0, 0, 1, 1], [], []>} : vector<256x128xf32>, vector<128x128xf32>, vector<256x128xf32> -> vector<256x128xf32>
    %75 = arith.addf %69, %74 : vector<256x128xf32>
    %76 = vector.extract_strided_slice %26 {offsets = [2, 2, 0], sizes = [16, 16, 128], strides = [1, 1, 1]} : vector<18x18x128xf32> to vector<16x16x128xf32>
    %77 = vector.shape_cast %76 : vector<16x16x128xf32> to vector<256x128xf32>
    %c2_49 = arith.constant 2 : index
    %c2_50 = arith.constant 2 : index
    %c0_51 = arith.constant 0 : index
    %c0_52 = arith.constant 0 : index
    %78 = vector.load %arg2[%c2_49, %c2_50, %c0_51, %c0_52] : memref<3x3x128x128xf32, #tpu.memory_space<vmem>>, vector<1x1x128x128xf32>
    %79 = vector.shape_cast %78 : vector<1x1x128x128xf32> to vector<128x128xf32>
    %cst_53 = arith.constant dense<0.000000e+00> : vector<256x128xf32>
    %80 = tpu.matmul %77, %79, %cst_53 {dimension_numbers = #tpu.dot_dimension_numbers<[1], [0], [0], [1], [0, 0, 1, 1], [], []>} : vector<256x128xf32>, vector<128x128xf32>, vector<256x128xf32> -> vector<256x128xf32>
    %81 = arith.addf %75, %80 : vector<256x128xf32>
    %82 = vector.shape_cast %81 : vector<256x128xf32> to vector<1x16x16x128xf32>
    %c0_54 = arith.constant 0 : index
    %c0_55 = arith.constant 0 : index
    %c0_56 = arith.constant 0 : index
    %c0_57 = arith.constant 0 : index
    %83 = vector.load %arg5[%c0_54, %c0_55, %c0_56, %c0_57] : memref<1x16x16x128xf32, #tpu.memory_space<vmem>>, vector<1x16x16x128xf32>
    tpu.vector_store %arg5[%c0_54, %c0_55, %c0_56, %c0_57], %82 {strides = array<i32>} : memref<1x16x16x128xf32, #tpu.memory_space<vmem>>, vector<1x16x16x128xf32>,
    %cst_58 = arith.constant dense<0.000000e+00> : vector<128xf32>
    %84 = vector.multi_reduction <add>, %81, %cst_58 [0] : vector<256x128xf32> to vector<128xf32>
    %85 = vector.shape_cast %84 : vector<128xf32> to vector<1x128xf32>
    %86 = arith.mulf %81, %81 : vector<256x128xf32>
    %cst_59 = arith.constant dense<0.000000e+00> : vector<128xf32>
    %87 = vector.multi_reduction <add>, %86, %cst_59 [0] : vector<256x128xf32> to vector<128xf32>
    %88 = vector.shape_cast %87 : vector<128xf32> to vector<1x128xf32>
    %89 = vector.shape_cast %85 : vector<1x128xf32> to vector<1x128xf32>
    %90 = vector.broadcast %89 : vector<1x128xf32> to vector<8x128xf32>
    %c0_60 = arith.constant 0 : index
    %c0_61 = arith.constant 0 : index
    %91 = vector.load %arg6[%c0_60, %c0_61] : memref<8x128xf32, #tpu.memory_space<vmem>>, vector<8x128xf32>
    tpu.vector_store %arg6[%c0_60, %c0_61], %90 {strides = array<i32>} : memref<8x128xf32, #tpu.memory_space<vmem>>, vector<8x128xf32>,
    %92 = vector.shape_cast %88 : vector<1x128xf32> to vector<1x128xf32>
    %93 = vector.broadcast %92 : vector<1x128xf32> to vector<8x128xf32>
    %c0_62 = arith.constant 0 : index
    %c0_63 = arith.constant 0 : index
    %94 = vector.load %arg7[%c0_62, %c0_63] : memref<8x128xf32, #tpu.memory_space<vmem>>, vector<8x128xf32>
    tpu.vector_store %arg7[%c0_62, %c0_63], %93 {strides = array<i32>} : memref<8x128xf32, #tpu.memory_space<vmem>>, vector<8x128xf32>,
    return
  }
  func.func @transform_0(%arg0: i32) -> (i32, i32, i32, i32) {
    %c0_i32 = arith.constant 0 : i32
    %c0_i32_0 = arith.constant 0 : i32
    %c0_i32_1 = arith.constant 0 : i32
    %c0_i32_2 = arith.constant 0 : i32
    return %arg0, %c0_i32, %c0_i32_0, %c0_i32_1 : i32, i32, i32, i32
  }
  func.func @transform_1(%arg0: i32) -> (i32, i32, i32, i32) {
    %c0_i32 = arith.constant 0 : i32
    %c0_i32_0 = arith.constant 0 : i32
    %c0_i32_1 = arith.constant 0 : i32
    %c0_i32_2 = arith.constant 0 : i32
    %c0_i32_3 = arith.constant 0 : i32
    return %c0_i32, %c0_i32_0, %c0_i32_1, %c0_i32_2 : i32, i32, i32, i32
  }
  func.func @transform_2(%arg0: i32) -> (i32, i32) {
    %c0_i32 = arith.constant 0 : i32
    %c0_i32_0 = arith.constant 0 : i32
    %c0_i32_1 = arith.constant 0 : i32
    return %c0_i32, %c0_i32_0 : i32, i32
  }
  func.func @transform_3(%arg0: i32) -> (i32, i32) {
    %c0_i32 = arith.constant 0 : i32
    %c0_i32_0 = arith.constant 0 : i32
    %c0_i32_1 = arith.constant 0 : i32
    return %c0_i32, %c0_i32_0 : i32, i32
  }
  func.func @transform_4(%arg0: i32) -> (i32, i32, i32, i32) {
    %c0_i32 = arith.constant 0 : i32
    %c0_i32_0 = arith.constant 0 : i32
    %c0_i32_1 = arith.constant 0 : i32
    %c0_i32_2 = arith.constant 0 : i32
    return %arg0, %c0_i32, %c0_i32_0, %c0_i32_1 : i32, i32, i32, i32
  }
  func.func @transform_5(%arg0: i32) -> (i32, i32) {
    %c0_i32 = arith.constant 0 : i32
    %c0_i32_0 = arith.constant 0 : i32
    return %arg0, %c0_i32 : i32, i32
  }
  func.func @transform_6(%arg0: i32) -> (i32, i32) {
    %c0_i32 = arith.constant 0 : i32
    %c0_i32_0 = arith.constant 0 : i32
    return %arg0, %c0_i32 : i32, i32
  }
}

module attributes {stable_mosaic.version = 11 : i64} {
  func.func @_affine_residual_kernel(%arg0: i32, %arg1: memref<256x128xf32, #tpu.memory_space<vmem>>, %arg2: memref<256x128xf32, #tpu.memory_space<vmem>>, %arg3: memref<1x128xf32, #tpu.memory_space<vmem>>, %arg4: memref<1x128xf32, #tpu.memory_space<vmem>>, %arg5: memref<256x128xf32, #tpu.memory_space<vmem>>) attributes {dimension_semantics = [#tpu.dimension_semantics<parallel>], iteration_bounds = array<i64: 2>, scalar_prefetch = 0 : i64, scratch_operands = 0 : i64, tpu.core_type = #tpu.core_type<tc>, window_params = [{transform_indices = @transform_0, window_bounds = array<i64: 256, 128>}, {transform_indices = @transform_1, window_bounds = array<i64: 256, 128>}, {pipeline_mode = #tpu.pipeline_mode<synchronous>, transform_indices = @transform_2, window_bounds = array<i64: 1, 128>}, {pipeline_mode = #tpu.pipeline_mode<synchronous>, transform_indices = @transform_3, window_bounds = array<i64: 1, 128>}, {transform_indices = @transform_4, window_bounds = array<i64: 256, 128>}]} {
    %c0 = arith.constant 0 : index
    %c0_0 = arith.constant 0 : index
    %0 = vector.load %arg1[%c0, %c0_0] : memref<256x128xf32, #tpu.memory_space<vmem>>, vector<256x128xf32>
    %c0_1 = arith.constant 0 : index
    %c0_2 = arith.constant 0 : index
    %1 = vector.load %arg3[%c0_1, %c0_2] : memref<1x128xf32, #tpu.memory_space<vmem>>, vector<1x128xf32>
    %2 = vector.broadcast %1 : vector<1x128xf32> to vector<256x128xf32>
    %3 = arith.mulf %0, %2 : vector<256x128xf32>
    %c0_3 = arith.constant 0 : index
    %c0_4 = arith.constant 0 : index
    %4 = vector.load %arg4[%c0_3, %c0_4] : memref<1x128xf32, #tpu.memory_space<vmem>>, vector<1x128xf32>
    %5 = vector.broadcast %4 : vector<1x128xf32> to vector<256x128xf32>
    %6 = arith.addf %3, %5 : vector<256x128xf32>
    %c0_5 = arith.constant 0 : index
    %c0_6 = arith.constant 0 : index
    %7 = vector.load %arg2[%c0_5, %c0_6] : memref<256x128xf32, #tpu.memory_space<vmem>>, vector<256x128xf32>
    %8 = arith.addf %6, %7 : vector<256x128xf32>
    %cst = arith.constant 0.000000e+00 : f32
    %9 = vector.broadcast %cst : f32 to vector<256x128xf32>
    %10 = arith.maximumf %8, %9 : vector<256x128xf32>
    %c0_7 = arith.constant 0 : index
    %c0_8 = arith.constant 0 : index
    %11 = vector.load %arg5[%c0_7, %c0_8] : memref<256x128xf32, #tpu.memory_space<vmem>>, vector<256x128xf32>
    tpu.vector_store %arg5[%c0_7, %c0_8], %10 {strides = array<i32>} : memref<256x128xf32, #tpu.memory_space<vmem>>, vector<256x128xf32>,
    return
  }
  func.func @transform_0(%arg0: i32) -> (i32, i32) {
    %c0_i32 = arith.constant 0 : i32
    %c0_i32_0 = arith.constant 0 : i32
    return %arg0, %c0_i32 : i32, i32
  }
  func.func @transform_1(%arg0: i32) -> (i32, i32) {
    %c0_i32 = arith.constant 0 : i32
    %c0_i32_0 = arith.constant 0 : i32
    return %arg0, %c0_i32 : i32, i32
  }
  func.func @transform_2(%arg0: i32) -> (i32, i32) {
    %c0_i32 = arith.constant 0 : i32
    %c0_i32_0 = arith.constant 0 : i32
    %c0_i32_1 = arith.constant 0 : i32
    return %c0_i32, %c0_i32_0 : i32, i32
  }
  func.func @transform_3(%arg0: i32) -> (i32, i32) {
    %c0_i32 = arith.constant 0 : i32
    %c0_i32_0 = arith.constant 0 : i32
    %c0_i32_1 = arith.constant 0 : i32
    return %c0_i32, %c0_i32_0 : i32, i32
  }
  func.func @transform_4(%arg0: i32) -> (i32, i32) {
    %c0_i32 = arith.constant 0 : i32
    %c0_i32_0 = arith.constant 0 : i32
    return %arg0, %c0_i32 : i32, i32
  }
}

</mosaic_0001>

<bundles_post_ra>
// kernel: bottleneck_forward.4
= control target key start
LH: loop header
LB: loop body
LE: loop exit
PB: predicated region body
PF: predicated region fallthrough
CT: control target
= control target key end

     0   :  { %s983_s15 = smov 0   ;;  %s1212_s0 = inlined_call_operand.vmem [shape: f32[512,128], index: 0, kind: input, shape index: {}]   ;;  %s1213_s1 = inlined_call_operand.vmem [shape: f32[128,128], index: 1, kind: input, shape index: {}]   ;;  %s1214_s2 = inlined_call_operand.vmem [shape: f32[512,128], index: 2, kind: output, shape index: {0}]   ;;  %s1215_s3 = inlined_call_operand.vmem [shape: f32[16,128], index: 3, kind: output, shape index: {1}]   ;;  %s1216_s4 = inlined_call_operand.vmem [shape: f32[16,128], index: 4, kind: output, shape index: {2}]  }
   0x1 LB: > { %s989_s16 = sadd.s32 4294967295, %s956_s15   ;;  %p757_p0 = scmp.ge.s32.totalorder %s956_s15, 1  ;;  %s956_s15 = sphi %s983_s15, %s15_s15  }
   0x2   : > { %p168_p1 = scmp.lt.s32.totalorder %s956_s15, 3 }
   0x4   : > { %p169_p2 = pnand %p757_p0, %p168_p1 }
   0x5   : > { %v254_v0 = vld [vmem:[%s1213_s1] sm:$0xff] (!%p169_p2)  ;;  %v255_v1 = vld [vmem:[%s1213_s1 + $0x8] sm:$0xff] (!%p169_p2)  ;;  %v256_v2 = vld [vmem:[%s1213_s1 + $0x10] sm:$0xff] (!%p169_p2)  ;;  %s758_s23 = sshll.u32 (!%p169_p2), %s989_s16, 5  ;;  %p214_p4 = scmp.lt.s32.totalorder (!%p169_p2), %s989_s16, 1 }
   0x6   : > { %172 = sbr.rel (%p169_p2) target bundleno = 332 (0x14c), region = 28  ;;  %v894_v3 = vpack.c.bf16 (!%p169_p2), %v255_v1, %v254_v0  ;;  %v257_v4 = vld [vmem:[%s1213_s1 + $0x18] sm:$0xff] (!%p169_p2)  ;;  %p203_p3 = scmp.lt.s32.totalorder (!%p169_p2), %s758_s23, 63  ;;  %v258_v6 = vld [vmem:[%s1213_s1 + $0x20] sm:$0xff] (!%p169_p2)  ;;  %v259_v7 = vld [vmem:[%s1213_s1 + $0x28] sm:$0xff] (!%p169_p2) }
   0x7   : > { %v898_v5 = vpack.c.bf16 (!%p169_p2), %v257_v4, %v256_v2  ;;  %v902_v8 = vpack.c.bf16 (!%p169_p2), %v259_v7, %v258_v6  ;;  %v260_v9 = vld [vmem:[%s1213_s1 + $0x30] sm:$0xff] (!%p169_p2)  ;;  %v261_v10 = vld [vmem:[%s1213_s1 + $0x38] sm:$0xff] (!%p169_p2)  ;;  %v262_v13 = vld [vmem:[%s1213_s1 + $0x40] sm:$0xff] (!%p169_p2) }
   0x8   : > { %895 = vmatprep.subr.bf16.mxu0 (!%p169_p2), %v894_v3  ;;  %926 = vmatprep.subr.bf16.mxu1 (!%p169_p2), %v894_v3  ;;  %v906_v12 = vpack.c.bf16 (!%p169_p2), %v261_v10, %v260_v9  ;;  %v263_v14 = vld [vmem:[%s1213_s1 + $0x48] sm:$0xff] (!%p169_p2)  ;;  %v264_v17 = vld [vmem:[%s1213_s1 + $0x50] sm:$0xff] (!%p169_p2)  ;;  %v265_v18 = vld [vmem:[%s1213_s1 + $0x58] sm:$0xff] (!%p169_p2) }
   0x9   : > { %897 = vmatpush3.bf16.msra.mxu0 (!%p169_p2), %v894_v3  ;;  %934 = vmatpush3.bf16.msra.mxu1 (!%p169_p2), %v894_v3  ;;  %v910_v16 = vpack.c.bf16 (!%p169_p2), %v263_v14, %v262_v13  ;;  %v914_v19 = vpack.c.bf16 (!%p169_p2), %v265_v18, %v264_v17  ;;  %v266_v20 = vld [vmem:[%s1213_s1 + $0x60] sm:$0xff] (!%p169_p2)  ;;  %v267_v21 = vld [vmem:[%s1213_s1 + $0x68] sm:$0xff] (!%p169_p2)  ;;  %v268_v23 = vld [vmem:[%s1213_s1 + $0x70] sm:$0xff] (!%p169_p2) }
   0xa   : > { %899 = vmatprep.subr.bf16.mxu0 (!%p169_p2), %v898_v5  ;;  %927 = vmatprep.subr.bf16.mxu1 (!%p169_p2), %v898_v5  ;;  %v918_v22 = vpack.c.bf16 (!%p169_p2), %v267_v21, %v266_v20  ;;  %v269_v24 = vld [vmem:[%s1213_s1 + $0x78] sm:$0xff] (!%p169_p2) }
   0xb   : > { %v922_v25 = vpack.c.bf16 (!%p169_p2), %v269_v24, %v268_v23 }
   0xd   : > { %s1218_s23 = smov (!%p203_p3, %s758_s23), 63  ;;  %901 = vmatpush3.bf16.msra.mxu0 %v898_v5  ;;  %935 = vmatpush3.bf16.msra.mxu1 %v898_v5  ;;  %s1220_s16 = smov (!%p214_p4, %s989_s16), 1 }
   0xe   : > { %s759_s30 = sshll.u32 %s1218_s23, 3  ;;  %903 = vmatprep.subr.bf16.mxu0 %v902_v8  ;;  %928 = vmatprep.subr.bf16.mxu1 %v902_v8  ;;  %s762_s23 = sshll.u32 %s1220_s16, 3 }
   0xf   : > { %s1026_s11 = scalar_lea.vmem %s1212_s0, %s759_s30  ;;  %s1089_s8 = scalar_lea.vmem %s1214_s2, %s759_s30 }
  0x10   : > { %v222_v11 = vld [vmem:[%s1026_s11] sm:$0xff]  ;;  %v223_v26 = vld [vmem:[%s1026_s11 + $0x8] sm:$0xff]  ;;  %v224_v27 = vld [vmem:[%s1026_s11 + $0x10] sm:$0xff]  ;;  %s217_s10 = scalar_lea.vmem %s1215_s3, %s762_s23  ;;  %s221_s13 = scalar_lea.vmem %s1216_s4, %s762_s23 }
  0x11   : > { %846 = vmatprep.mubr.f32.mxu0 %v222_v11  ;;  %905 = vmatpush3.bf16.msra.mxu0 %v902_v8  ;;  %v238_v15 = vld [vmem:[%s1026_s11 + $0x80] sm:$0xff]  ;;  %v239_v28 = vld [vmem:[%s1026_s11 + $0x88] sm:$0xff]  ;;  %v240_v29 = vld [vmem:[%s1026_s11 + $0x90] sm:$0xff] }
  0x12   : > { %907 = vmatprep.subr.bf16.mxu0 %v906_v12  ;;  %936 = vmatpush3.bf16.msra.mxu1 %v902_v8  ;;  %v225_v30 = vld [vmem:[%s1026_s11 + $0x18] sm:$0xff]  ;;  %v226_v31 = vld [vmem:[%s1026_s11 + $0x20] sm:$0xff]  ;;  %v227_v34 = vld [vmem:[%s1026_s11 + $0x28] sm:$0xff] }
  0x13   : > { %929 = vmatprep.subr.bf16.mxu1 %v906_v12  ;;  %870 = vmatprep.mubr.f32.mxu1 %v238_v15  ;;  %v241_v32 = vld [vmem:[%s1026_s11 + $0x98] sm:$0xff]  ;;  %v242_v33 = vld [vmem:[%s1026_s11 + $0xa0] sm:$0xff]  ;;  %v228_v35 = vld [vmem:[%s1026_s11 + $0x30] sm:$0xff] }
  0x14   : > { %v243_v36 = vld [vmem:[%s1026_s11 + $0xa8] sm:$0xff]  ;;  %v244_v37 = vld [vmem:[%s1026_s11 + $0xb0] sm:$0xff]  ;;  %v229_v38 = vld [vmem:[%s1026_s11 + $0x38] sm:$0xff] }
  0x15   : > { %909 = vmatpush3.bf16.msra.mxu0 %v906_v12  ;;  %v230_v39 = vld [vmem:[%s1026_s11 + $0x40] sm:$0xff]  ;;  %v245_v40 = vld [vmem:[%s1026_s11 + $0xb8] sm:$0xff]  ;;  %v231_v42 = vld [vmem:[%s1026_s11 + $0x48] sm:$0xff] }
  0x16   : > { %911 = vmatprep.subr.bf16.mxu0 %v910_v16  ;;  %937 = vmatpush3.bf16.msra.mxu1 %v906_v12  ;;  %v246_v41 = vld [vmem:[%s1026_s11 + $0xc0] sm:$0xff]  ;;  %v232_v43 = vld [vmem:[%s1026_s11 + $0x50] sm:$0xff]  ;;  %v247_v44 = vld [vmem:[%s1026_s11 + $0xc8] sm:$0xff] }
  0x17   : > { %930 = vmatprep.subr.bf16.mxu1 %v910_v16  ;;  %v248_v45 = vld [vmem:[%s1026_s11 + $0xd0] sm:$0xff]  ;;  %v233_v46 = vld [vmem:[%s1026_s11 + $0x58] sm:$0xff]  ;;  %v234_v47 = vld [vmem:[%s1026_s11 + $0x60] sm:$0xff] }
  0x18   : > { %v249_v48 = vld [vmem:[%s1026_s11 + $0xd8] sm:$0xff]  ;;  %v250_v49 = vld [vmem:[%s1026_s11 + $0xe0] sm:$0xff]  ;;  %v235_v50 = vld [vmem:[%s1026_s11 + $0x68] sm:$0xff] }
  0x19   : > { %913 = vmatpush3.bf16.msra.mxu0 %v910_v16  ;;  %v236_v51 = vld [vmem:[%s1026_s11 + $0x70] sm:$0xff]  ;;  %v251_v52 = vld [vmem:[%s1026_s11 + $0xe8] sm:$0xff]  ;;  %v237_v54 = vld [vmem:[%s1026_s11 + $0x78] sm:$0xff] }
  0x1a   : > { %915 = vmatprep.subr.bf16.mxu0 %v914_v19  ;;  %938 = vmatpush3.bf16.msra.mxu1 %v910_v16  ;;  %v252_v53 = vld [vmem:[%s1026_s11 + $0xf0] sm:$0xff]  ;;  %v253_v55 = vld [vmem:[%s1026_s11 + $0xf8] sm:$0xff] }
  0x1b   : > { %931 = vmatprep.subr.bf16.mxu1 %v914_v19 }
  0x1d   : > { %917 = vmatpush3.bf16.msra.mxu0 %v914_v19 }
  0x1e   : > { %919 = vmatprep.subr.bf16.mxu0 %v918_v22  ;;  %939 = vmatpush3.bf16.msra.mxu1 %v914_v19 }
  0x1f   : > { %932 = vmatprep.subr.bf16.mxu1 %v918_v22 }
  0x21   : > { %921 = vmatpush3.bf16.msra.mxu0 %v918_v22 }
  0x22   : > { %923 = vmatprep.subr.bf16.mxu0 %v922_v25  ;;  %940 = vmatpush3.bf16.msra.mxu1 %v918_v22 }
  0x23   : > { %933 = vmatprep.subr.bf16.mxu1 %v922_v25 }
  0x25   : > { %925 = vmatpush3.bf16.msra.mxu0 %v922_v25 }
  0x26   : > { %941 = vmatpush3.bf16.msra.mxu1 %v922_v25 }
  0x28   : > { %847 = vmatmul.mubr.f32.vlgmr.msra.gmra.mrb[0].mxu0 %v223_v26 }
  0x29   : > { %849 = vmatprep.mubr.f32.mxu0 %v224_v27  ;;  %871 = vmatmul.mubr.f32.vlgmr.msra.gmra.mrb[0].mxu1 %v239_v28 }
  0x2a   : > { %873 = vmatprep.mubr.f32.mxu1 %v240_v29 }
  0x2c   : > { %850 = vmatmul.mubr.f32.gmra.mrb[2].mxu0 %v225_v30 }
  0x2d   : > { %852 = vmatprep.mubr.f32.mxu0 %v226_v31  ;;  %874 = vmatmul.mubr.f32.gmra.mrb[2].mxu1 %v241_v32 }
  0x2e   : > { %876 = vmatprep.mubr.f32.mxu1 %v242_v33 }
  0x30   : > { %853 = vmatmul.mubr.f32.gmra.mrb[4].mxu0 %v227_v34 }
  0x31   : > { %855 = vmatprep.mubr.f32.mxu0 %v228_v35  ;;  %877 = vmatmul.mubr.f32.gmra.mrb[4].mxu1 %v243_v36 }
  0x32   : > { %879 = vmatprep.mubr.f32.mxu1 %v244_v37 }
  0x34   : > { %856 = vmatmul.mubr.f32.gmra.mrb[6].mxu0 %v229_v38 }
  0x35   : > { %858 = vmatprep.mubr.f32.mxu0 %v230_v39  ;;  %880 = vmatmul.mubr.f32.gmra.mrb[6].mxu1 %v245_v40 }
  0x36   : > { %882 = vmatprep.mubr.f32.mxu1 %v246_v41 }
  0x38   : > { %859 = vmatmul.mubr.f32.gmra.mrb[8].mxu0 %v231_v42 }
  0x39   : > { %861 = vmatprep.mubr.f32.mxu0 %v232_v43  ;;  %883 = vmatmul.mubr.f32.gmra.mrb[8].mxu1 %v247_v44 }
  0x3a   : > { %885 = vmatprep.mubr.f32.mxu1 %v248_v45 }
  0x3c   : > { %862 = vmatmul.mubr.f32.gmra.mrb[10].mxu0 %v233_v46 }
  0x3d   : > { %864 = vmatprep.mubr.f32.mxu0 %v234_v47  ;;  %886 = vmatmul.mubr.f32.gmra.mrb[10].mxu1 %v249_v48 }
  0x3e   : > { %888 = vmatprep.mubr.f32.mxu1 %v250_v49 }
  0x40   : > { %865 = vmatmul.mubr.f32.gmra.mrb[12].mxu0 %v235_v50 }
  0x41   : > { %867 = vmatprep.mubr.f32.mxu0 %v236_v51  ;;  %889 = vmatmul.mubr.f32.gmra.mrb[12].mxu1 %v251_v52 }
  0x42   : > { %891 = vmatprep.mubr.f32.mxu1 %v252_v53 }
  0x44   : > { %868 = vmatmul.mubr.f32.gmra.mrb[14].mxu0 %v237_v54 }
  0x45   : > { %892 = vmatmul.mubr.f32.gmra.mrb[14].mxu1 %v253_v55 }
  0xfb   : > { %v848_v56 = vpop.f32.mrb[0].mxu0 }
  0xfc   : > { %496 = vst [vmem:[%s1089_s8 + $0x8] sm:$0xff] %v848_v56  ;;  %v565_v57 = vmul.f32 %v848_v56, %v848_v56  ;;  %v336_v58 = vpop.f32.mrb[1].mxu0  ;;  %v1092_v59 = vpop.f32.mrb[0].mxu1 }
  0xfd   : > { %495 = vst [vmem:[%s1089_s8] sm:$0xff] %v336_v58  ;;  %v527_v60 = vadd.f32 %v848_v56, %v336_v58  ;;  %v564_v61 = vmul.f32 %v336_v58, %v336_v58  ;;  %512 = vst [vmem:[%s1089_s8 + $0x88] sm:$0xff] %v1092_v59  ;;  %v1097_v62 = vpop.f32.mrb[1].mxu1 }
  0xfe   : > { %511 = vst [vmem:[%s1089_s8 + $0x80] sm:$0xff] %v1097_v62 }
  0xff   : > { %v596_v63 = vadd.f32 %v565_v57, %v564_v61  ;;  %v851_v0 = vpop.f32.mrb[2].mxu0 }
 0x100   : > { %498 = vst [vmem:[%s1089_s8 + $0x18] sm:$0xff] %v851_v0  ;;  %v346_v1 = vpop.f32.mrb[3].mxu0  ;;  %v1102_v2 = vpop.f32.mrb[2].mxu1  ;;  %v567_v6 = vmul.f32 %v851_v0, %v851_v0 }
 0x101   : > { %497 = vst [vmem:[%s1089_s8 + $0x10] sm:$0xff] %v346_v1  ;;  %v528_v3 = vadd.f32 %v527_v60, %v346_v1  ;;  %v566_v4 = vmul.f32 %v346_v1, %v346_v1  ;;  %514 = vst [vmem:[%s1089_s8 + $0x98] sm:$0xff] %v1102_v2  ;;  %v1107_v5 = vpop.f32.mrb[3].mxu1 }
 0x102   : > { %513 = vst [vmem:[%s1089_s8 + $0x90] sm:$0xff] %v1107_v5 }
 0x103   : > { %v597_v7 = vadd.f32 %v596_v63, %v566_v4  ;;  %v854_v8 = vpop.f32.mrb[4].mxu0  ;;  %v529_v9 = vadd.f32 %v851_v0, %v528_v3 }
 0x104   : > { %500 = vst [vmem:[%s1089_s8 + $0x28] sm:$0xff] %v854_v8  ;;  %v356_v10 = vpop.f32.mrb[5].mxu0  ;;  %v1112_v11 = vpop.f32.mrb[4].mxu1  ;;  %v569_v16 = vmul.f32 %v854_v8, %v854_v8 }
 0x105   : > { %499 = vst [vmem:[%s1089_s8 + $0x20] sm:$0xff] %v356_v10  ;;  %v530_v12 = vadd.f32 %v529_v9, %v356_v10  ;;  %v568_v13 = vmul.f32 %v356_v10, %v356_v10  ;;  %v598_v14 = vadd.f32 %v597_v7, %v567_v6  ;;  %516 = vst [vmem:[%s1089_s8 + $0xa8] sm:$0xff] %v1112_v11  ;;  %v1117_v15 = vpop.f32.mrb[5].mxu1 }
 0x106   : > { %515 = vst [vmem:[%s1089_s8 + $0xa0] sm:$0xff] %v1117_v15  ;;  %v580_v9 = vmul.f32 %v1097_v62, %v1097_v62 }
 0x107   : > { %v599_v17 = vadd.f32 %v598_v14, %v568_v13  ;;  %v857_v18 = vpop.f32.mrb[6].mxu0  ;;  %v531_v19 = vadd.f32 %v854_v8, %v530_v12  ;;  %v581_v13 = vmul.f32 %v1092_v59, %v1092_v59 }
 0x108   : > { %502 = vst [vmem:[%s1089_s8 + $0x38] sm:$0xff] %v857_v18  ;;  %v366_v20 = vpop.f32.mrb[7].mxu0  ;;  %v1122_v21 = vpop.f32.mrb[6].mxu1  ;;  %v571_v26 = vmul.f32 %v857_v18, %v857_v18 }
 0x109   : > { %501 = vst [vmem:[%s1089_s8 + $0x30] sm:$0xff] %v366_v20  ;;  %v532_v22 = vadd.f32 %v531_v19, %v366_v20  ;;  %v570_v23 = vmul.f32 %v366_v20, %v366_v20  ;;  %v600_v24 = vadd.f32 %v599_v17, %v569_v16  ;;  %518 = vst [vmem:[%s1089_s8 + $0xb8] sm:$0xff] %v1122_v21  ;;  %v1127_v25 = vpop.f32.mrb[7].mxu1 }
 0x10a   : > { %517 = vst [vmem:[%s1089_s8 + $0xb0] sm:$0xff] %v1127_v25  ;;  %v582_v17 = vmul.f32 %v1107_v5, %v1107_v5  ;;  %v583_v20 = vmul.f32 %v1102_v2, %v1102_v2 }
 0x10b   : > { %v601_v27 = vadd.f32 %v600_v24, %v570_v23  ;;  %v860_v28 = vpop.f32.mrb[8].mxu0  ;;  %v533_v29 = vadd.f32 %v857_v18, %v532_v22 }
 0x10c   : > { %504 = vst [vmem:[%s1089_s8 + $0x48] sm:$0xff] %v860_v28  ;;  %v376_v30 = vpop.f32.mrb[9].mxu0  ;;  %v1132_v31 = vpop.f32.mrb[8].mxu1  ;;  %v573_v36 = vmul.f32 %v860_v28, %v860_v28 }
 0x10d   : > { %503 = vst [vmem:[%s1089_s8 + $0x40] sm:$0xff] %v376_v30  ;;  %v534_v32 = vadd.f32 %v533_v29, %v376_v30  ;;  %v572_v33 = vmul.f32 %v376_v30, %v376_v30  ;;  %v602_v34 = vadd.f32 %v601_v27, %v571_v26  ;;  %520 = vst [vmem:[%s1089_s8 + $0xc8] sm:$0xff] %v1132_v31  ;;  %v1137_v35 = vpop.f32.mrb[9].mxu1 }
 0x10e   : > { %519 = vst [vmem:[%s1089_s8 + $0xc0] sm:$0xff] %v1137_v35 }
 0x10f   : > { %v603_v37 = vadd.f32 %v602_v34, %v572_v33  ;;  %v863_v38 = vpop.f32.mrb[10].mxu0  ;;  %v535_v39 = vadd.f32 %v860_v28, %v534_v32 }
 0x110   : > { %506 = vst [vmem:[%s1089_s8 + $0x58] sm:$0xff] %v863_v38  ;;  %v386_v40 = vpop.f32.mrb[11].mxu0  ;;  %v1142_v41 = vpop.f32.mrb[10].mxu1  ;;  %v575_v46 = vmul.f32 %v863_v38, %v863_v38 }
 0x111   : > { %505 = vst [vmem:[%s1089_s8 + $0x50] sm:$0xff] %v386_v40  ;;  %v536_v42 = vadd.f32 %v535_v39, %v386_v40  ;;  %v574_v43 = vmul.f32 %v386_v40, %v386_v40  ;;  %v604_v44 = vadd.f32 %v603_v37, %v573_v36  ;;  %522 = vst [vmem:[%s1089_s8 + $0xd8] sm:$0xff] %v1142_v41  ;;  %v1147_v45 = vpop.f32.mrb[11].mxu1 }
 0x112   : > { %521 = vst [vmem:[%s1089_s8 + $0xd0] sm:$0xff] %v1147_v45 }
 0x113   : > { %v605_v47 = vadd.f32 %v604_v44, %v574_v43  ;;  %v866_v48 = vpop.f32.mrb[12].mxu0  ;;  %v537_v49 = vadd.f32 %v863_v38, %v536_v42 }
 0x114   : > { %508 = vst [vmem:[%s1089_s8 + $0x68] sm:$0xff] %v866_v48  ;;  %v396_v50 = vpop.f32.mrb[13].mxu0  ;;  %v1152_v51 = vpop.f32.mrb[12].mxu1  ;;  %v577_v56 = vmul.f32 %v866_v48, %v866_v48 }
 0x115   : > { %507 = vst [vmem:[%s1089_s8 + $0x60] sm:$0xff] %v396_v50  ;;  %v538_v52 = vadd.f32 %v537_v49, %v396_v50  ;;  %v576_v53 = vmul.f32 %v396_v50, %v396_v50  ;;  %v606_v54 = vadd.f32 %v605_v47, %v575_v46  ;;  %524 = vst [vmem:[%s1089_s8 + $0xe8] sm:$0xff] %v1152_v51  ;;  %v476_v55 = vpop.f32.mrb[13].mxu1 }
 0x116   : > { %523 = vst [vmem:[%s1089_s8 + $0xe0] sm:$0xff] %v476_v55  ;;  %v592_v43 = vmul.f32 %v476_v55, %v476_v55 }
 0x117   : > { %v607_v57 = vadd.f32 %v606_v54, %v576_v53  ;;  %v869_v58 = vpop.f32.mrb[14].mxu0  ;;  %v539_v60 = vadd.f32 %v866_v48, %v538_v52 }
 0x118   : > { %510 = vst [vmem:[%s1089_s8 + $0x78] sm:$0xff] %v869_v58  ;;  %v406_v61 = vpop.f32.mrb[15].mxu0  ;;  %v893_v63 = vpop.f32.mrb[14].mxu1  ;;  %v579_v6 = vmul.f32 %v869_v58, %v869_v58 }
 0x119   : > { %509 = vst [vmem:[%s1089_s8 + $0x70] sm:$0xff] %v406_v61  ;;  %v540_v0 = vadd.f32 %v539_v60, %v406_v61  ;;  %v578_v1 = vmul.f32 %v406_v61, %v406_v61  ;;  %v608_v3 = vadd.f32 %v607_v57, %v577_v56  ;;  %526 = vst [vmem:[%s1089_s8 + $0xf8] sm:$0xff] %v893_v63  ;;  %v486_v4 = vpop.f32.mrb[15].mxu1 }
 0x11a   : > { %525 = vst [vmem:[%s1089_s8 + $0xf0] sm:$0xff] %v486_v4  ;;  %v594_v49 = vmul.f32 %v486_v4, %v486_v4  ;;  %v595_v52 = vmul.f32 %v893_v63, %v893_v63 }
 0x11b   : > { %v541_v7 = vadd.f32 %v869_v58, %v540_v0  ;;  %v609_v8 = vadd.f32 %v608_v3, %v578_v1 }
 0x11d   : > { %v610_v10 = vadd.f32 %v609_v8, %v579_v6  ;;  %v542_v12 = vadd.f32 %v541_v7, %v1097_v62  ;;  %v584_v62 = vmul.f32 %v1117_v15, %v1117_v15 }
 0x11f   : > { %v611_v14 = vadd.f32 %v610_v10, %v580_v9  ;;  %v543_v16 = vadd.f32 %v1092_v59, %v542_v12  ;;  %v585_v59 = vmul.f32 %v1112_v11, %v1112_v11 }
 0x121   : > { %v544_v18 = vadd.f32 %v543_v16, %v1107_v5  ;;  %v612_v19 = vadd.f32 %v611_v14, %v581_v13  ;;  %v586_v5 = vmul.f32 %v1127_v25, %v1127_v25 }
 0x123   : > { %v613_v22 = vadd.f32 %v612_v19, %v582_v17  ;;  %v545_v23 = vadd.f32 %v1102_v2, %v544_v18  ;;  %v587_v2 = vmul.f32 %v1122_v21, %v1122_v21 }
 0x125   : > { %v546_v24 = vadd.f32 %v545_v23, %v1117_v15  ;;  %v614_v26 = vadd.f32 %v613_v22, %v583_v20  ;;  %v588_v15 = vmul.f32 %v1137_v35, %v1137_v35 }
 0x127   : > { %v615_v27 = vadd.f32 %v614_v26, %v584_v62  ;;  %v547_v28 = vadd.f32 %v1112_v11, %v546_v24  ;;  %v589_v11 = vmul.f32 %v1132_v31, %v1132_v31 }
 0x129   : > { %v548_v29 = vadd.f32 %v547_v28, %v1127_v25  ;;  %v616_v30 = vadd.f32 %v615_v27, %v585_v59  ;;  %v590_v25 = vmul.f32 %v1147_v45, %v1147_v45 }
 0x12b   : > { %v617_v32 = vadd.f32 %v616_v30, %v586_v5  ;;  %v549_v33 = vadd.f32 %v1122_v21, %v548_v29  ;;  %v591_v21 = vmul.f32 %v1142_v41, %v1142_v41 }
 0x12d   : > { %v550_v34 = vadd.f32 %v549_v33, %v1137_v35  ;;  %v618_v36 = vadd.f32 %v617_v32, %v587_v2 }
 0x12f   : > { %v619_v37 = vadd.f32 %v618_v36, %v588_v15  ;;  %v551_v38 = vadd.f32 %v1132_v31, %v550_v34  ;;  %v593_v31 = vmul.f32 %v1152_v51, %v1152_v51 }
 0x131   : > { %v552_v39 = vadd.f32 %v551_v38, %v1147_v45  ;;  %v620_v40 = vadd.f32 %v619_v37, %v589_v11 }
 0x133   : > { %v621_v42 = vadd.f32 %v620_v40, %v590_v25  ;;  %v553_v35 = vadd.f32 %v1142_v41, %v552_v39 }
 0x135   : > { %v554_v44 = vadd.f32 %v553_v35, %v476_v55  ;;  %v622_v46 = vadd.f32 %v621_v42, %v591_v21 }
 0x137   : > { %v623_v47 = vadd.f32 %v622_v46, %v592_v43  ;;  %v555_v48 = vadd.f32 %v1152_v51, %v554_v44 }
 0x139   : > { %v556_v50 = vadd.f32 %v555_v48, %v486_v4  ;;  %v624_v45 = vadd.f32 %v623_v47, %v593_v31 }
 0x13b   : > { %v557_v53 = vadd.f32 %v893_v63, %v556_v50  ;;  %v625_v54 = vadd.f32 %v624_v45, %v594_v49 }
 0x13d   : > { %v558_v56 = vrot.slane %v557_v53, 4  ;;  %v626_v57 = vadd.f32 %v625_v54, %v595_v52 }
 0x13f   : > { %v559_v41 = vadd.f32 %v558_v56, %v557_v53  ;;  %v627_v58 = vrot.slane %v626_v57, 4 }
 0x141   : > { %v560_v55 = vrot.slane %v559_v41, 2  ;;  %v628_v60 = vadd.f32 %v627_v58, %v626_v57 }
 0x143   : > { %v561_v61 = vadd.f32 %v560_v55, %v559_v41  ;;  %v629_v0 = vrot.slane %v628_v60, 2 }
 0x145   : > { %v562_v1 = vrot.slane %v561_v61, 1  ;;  %v630_v3 = vadd.f32 %v629_v0, %v628_v60 }
 0x147   : > { %v563_v51 = vadd.f32 %v562_v1, %v561_v61  ;;  %v631_v4 = vrot.slane %v630_v3, 1 }
 0x149   : > { %v632_v63 = vadd.f32 %v631_v4, %v630_v3  ;;  %633 = vst [vmem:[%s217_s10] sm:$0xff] %v563_v51 }
 0x14b   : > { %634 = vst [vmem:[%s221_s13] sm:$0xff] %v632_v63 }
 0x14c PF: > { %s15_s15 = sadd.s32 1, %s956_s15  }
 0x14d   : > { %p12_p5 = scmp.ge.s32.totalorder %s15_s15, 4  }
 0x14f   :  { %14 = sbr.rel (!%p12_p5) target bundleno = 1 (0x1), region = 82 }

// kernel: bottleneck_forward.7
= control target key start
LH: loop header
LB: loop body
LE: loop exit
PB: predicated region body
PF: predicated region fallthrough
CT: control target
= control target key end

     0   :  { %s585_s15 = smov 0   ;;  %s786_s0 = inlined_call_operand.vmem [shape: f32[512,128], index: 0, kind: input, shape index: {}]   ;;  %s787_s1 = inlined_call_operand.vmem [shape: f32[512,128], index: 1, kind: input, shape index: {}]   ;;  %s788_s2 = inlined_call_operand.vmem [shape: f32[1,128], index: 2, kind: input, shape index: {}]   ;;  %s789_s3 = inlined_call_operand.vmem [shape: f32[1,128], index: 3, kind: input, shape index: {}]   ;;  %s790_s4 = inlined_call_operand.vmem [shape: f32[512,128], index: 4, kind: output, shape index: {}]  }
   0x1 LB: > { %s529_s16 = sadd.s32 4294967295, %s558_s15   ;;  %p533_p0 = scmp.ge.s32.totalorder %s558_s15, 1  ;;  %s558_s15 = sphi %s585_s15, %s14_s15  }
   0x2   : > { %p174_p1 = scmp.lt.s32.totalorder %s558_s15, 3 }
   0x4   : > { %p175_p2 = pnand %p533_p0, %p174_p1 }
   0x5   : > { %s534_s17 = sshll.u32 (!%p175_p2), %s529_s16, 5  ;;  %v598_v0 = vld [vmem:[%s788_s2] ss:$0 sm:$0xff] (!%p175_p2) }
   0x6   : > { %178 = sbr.rel (%p175_p2) target bundleno = 55 (0x37), region = 36  ;;  %p206_p3 = scmp.lt.s32.totalorder (!%p175_p2), %s534_s17, 63  ;;  %v616_v2 = vld [vmem:[%s789_s3] ss:$0 sm:$0xff] (!%p175_p2) }
   0xd   : > { %s792_s17 = smov (!%p206_p3, %s534_s17), 63 }
   0xe   : > { %s593_s18 = sshll.u32 %s792_s17, 3 }
   0xf   : > { %s604_s23 = scalar_lea.vmem %s786_s0, %s593_s18  ;;  %s610_s26 = scalar_lea.vmem %s787_s1, %s593_s18 }
  0x10   : > { %v223_v1 = vld [vmem:[%s604_s23] sm:$0xff]  ;;  %v224_v3 = vld [vmem:[%s604_s23 + $0x8] sm:$0xff]  ;;  %v225_v7 = vld [vmem:[%s604_s23 + $0x10] sm:$0xff]  ;;  %s646_s5 = scalar_lea.vmem %s790_s4, %s593_s18 }
  0x11   : > { %v262_v4 = vmul.f32 %v598_v0, %v223_v1  ;;  %v333_v5 = vld [vmem:[%s610_s26] sm:$0xff]  ;;  %v263_v6 = vmul.f32 %v598_v0, %v224_v3  ;;  %v334_v8 = vld [vmem:[%s610_s26 + $0x8] sm:$0xff]  ;;  %v264_v9 = vmul.f32 %v598_v0, %v225_v7  ;;  %v226_v10 = vld [vmem:[%s604_s23 + $0x18] sm:$0xff] }
  0x12   : > { %v227_v11 = vld [vmem:[%s604_s23 + $0x20] sm:$0xff]  ;;  %v335_v14 = vld [vmem:[%s610_s26 + $0x10] sm:$0xff]  ;;  %v265_v15 = vmul.f32 %v598_v0, %v226_v10  ;;  %v336_v16 = vld [vmem:[%s610_s26 + $0x18] sm:$0xff] }
  0x13   : > { %v301_v12 = vadd.f32 %v616_v2, %v262_v4  ;;  %v302_v13 = vadd.f32 %v616_v2, %v263_v6  ;;  %v266_v17 = vmul.f32 %v598_v0, %v227_v11  ;;  %v228_v18 = vld [vmem:[%s604_s23 + $0x28] sm:$0xff]  ;;  %v303_v19 = vadd.f32 %v616_v2, %v264_v9  ;;  %v337_v20 = vld [vmem:[%s610_s26 + $0x20] sm:$0xff]  ;;  %v229_v22 = vld [vmem:[%s604_s23 + $0x30] sm:$0xff] }
  0x14   : > { %v267_v21 = vmul.f32 %v598_v0, %v228_v18  ;;  %v230_v23 = vld [vmem:[%s604_s23 + $0x38] sm:$0xff]  ;;  %v304_v26 = vadd.f32 %v616_v2, %v265_v15  ;;  %v338_v28 = vld [vmem:[%s610_s26 + $0x28] sm:$0xff]  ;;  %v268_v31 = vmul.f32 %v598_v0, %v229_v22  ;;  %v231_v33 = vld [vmem:[%s604_s23 + $0x40] sm:$0xff] }
  0x15   : > { %v365_v24 = vadd.f32 %v333_v5, %v301_v12  ;;  %v366_v25 = vadd.f32 %v334_v8, %v302_v13  ;;  %v305_v27 = vadd.f32 %v616_v2, %v266_v17  ;;  %v367_v29 = vadd.f32 %v335_v14, %v303_v19  ;;  %v232_v34 = vld [vmem:[%s604_s23 + $0x48] sm:$0xff]  ;;  %v339_v39 = vld [vmem:[%s610_s26 + $0x30] sm:$0xff]  ;;  %v340_v40 = vld [vmem:[%s610_s26 + $0x38] sm:$0xff] }
  0x16   : > { %v306_v30 = vadd.f32 %v616_v2, %v267_v21  ;;  %v269_v32 = vmul.f32 %v598_v0, %v230_v23  ;;  %v368_v37 = vadd.f32 %v336_v16, %v304_v26  ;;  %v233_v41 = vld [vmem:[%s604_s23 + $0x50] sm:$0xff]  ;;  %v307_v44 = vadd.f32 %v616_v2, %v268_v31  ;;  %v234_v46 = vld [vmem:[%s604_s23 + $0x58] sm:$0xff]  ;;  %v235_v47 = vld [vmem:[%s604_s23 + $0x60] sm:$0xff] }
  0x17   : > { %v397_v35 = vmax.f32 %v365_v24, 0.0  ;;  %v398_v36 = vmax.f32 %v366_v25, 0.0  ;;  %v369_v38 = vadd.f32 %v337_v20, %v305_v27  ;;  %v399_v42 = vmax.f32 %v367_v29, 0.0  ;;  %v236_v52 = vld [vmem:[%s604_s23 + $0x68] sm:$0xff]  ;;  %v341_v56 = vld [vmem:[%s610_s26 + $0x40] sm:$0xff]  ;;  %v343_v61 = vld [vmem:[%s610_s26 + $0x50] sm:$0xff] }
  0x18   : > { %v370_v43 = vadd.f32 %v338_v28, %v306_v30  ;;  %v308_v45 = vadd.f32 %v616_v2, %v269_v32  ;;  %v400_v48 = vmax.f32 %v368_v37, 0.0  ;;  %v270_v50 = vmul.f32 %v598_v0, %v231_v33  ;;  %v342_v57 = vld [vmem:[%s610_s26 + $0x48] sm:$0xff]  ;;  %v237_v1 = vld [vmem:[%s604_s23 + $0x70] sm:$0xff]  ;;  %v238_v3 = vld [vmem:[%s604_s23 + $0x78] sm:$0xff] }
  0x19   : > { %429 = vst [vmem:[%s646_s5] sm:$0xff] %v397_v35  ;;  %430 = vst [vmem:[%s646_s5 + $0x8] sm:$0xff] %v398_v36  ;;  %v401_v49 = vmax.f32 %v369_v38, 0.0  ;;  %v271_v51 = vmul.f32 %v598_v0, %v232_v34  ;;  %v371_v54 = vadd.f32 %v339_v39, %v307_v44  ;;  %v272_v58 = vmul.f32 %v598_v0, %v233_v41  ;;  %v344_v7 = vld [vmem:[%s610_s26 + $0x58] sm:$0xff]  ;;  %v345_v8 = vld [vmem:[%s610_s26 + $0x60] sm:$0xff] }
  0x1a   : > { %431 = vst [vmem:[%s646_s5 + $0x10] sm:$0xff] %v399_v42  ;;  %v402_v53 = vmax.f32 %v370_v43, 0.0  ;;  %v372_v55 = vadd.f32 %v340_v40, %v308_v45  ;;  %432 = vst [vmem:[%s646_s5 + $0x18] sm:$0xff] %v400_v48  ;;  %v309_v59 = vadd.f32 %v616_v2, %v270_v50  ;;  %v273_v62 = vmul.f32 %v598_v0, %v234_v46  ;;  %v346_v14 = vld [vmem:[%s610_s26 + $0x68] sm:$0xff]  ;;  %v239_v19 = vld [vmem:[%s604_s23 + $0x80] sm:$0xff] }
  0x1b   : > { %433 = vst [vmem:[%s646_s5 + $0x20] sm:$0xff] %v401_v49  ;;  %v310_v60 = vadd.f32 %v616_v2, %v271_v51  ;;  %v274_v63 = vmul.f32 %v598_v0, %v235_v47  ;;  %v403_v4 = vmax.f32 %v371_v54, 0.0  ;;  %v311_v6 = vadd.f32 %v616_v2, %v272_v58  ;;  %v240_v20 = vld [vmem:[%s604_s23 + $0x88] sm:$0xff]  ;;  %v347_v25 = vld [vmem:[%s610_s26 + $0x70] sm:$0xff]  ;;  %v348_v26 = vld [vmem:[%s610_s26 + $0x78] sm:$0xff] }
  0x1c   : > { %434 = vst [vmem:[%s646_s5 + $0x28] sm:$0xff] %v402_v53  ;;  %v404_v5 = vmax.f32 %v372_v55, 0.0  ;;  %v275_v9 = vmul.f32 %v598_v0, %v236_v52  ;;  %v373_v10 = vadd.f32 %v341_v56, %v309_v59  ;;  %v312_v12 = vadd.f32 %v616_v2, %v273_v62  ;;  %v241_v27 = vld [vmem:[%s604_s23 + $0x90] sm:$0xff]  ;;  %v242_v32 = vld [vmem:[%s604_s23 + $0x98] sm:$0xff]  ;;  %v243_v33 = vld [vmem:[%s604_s23 + $0xa0] sm:$0xff] }
  0x1d   : > { %v374_v11 = vadd.f32 %v342_v57, %v310_v60  ;;  %v313_v13 = vadd.f32 %v616_v2, %v274_v63  ;;  %435 = vst [vmem:[%s646_s5 + $0x30] sm:$0xff] %v403_v4  ;;  %v375_v15 = vadd.f32 %v343_v61, %v311_v6  ;;  %v276_v17 = vmul.f32 %v598_v0, %v237_v1  ;;  %v244_v38 = vld [vmem:[%s604_s23 + $0xa8] sm:$0xff]  ;;  %v349_v42 = vld [vmem:[%s610_s26 + $0x80] sm:$0xff]  ;;  %v351_v47 = vld [vmem:[%s610_s26 + $0x90] sm:$0xff] }
  0x1e   : > { %436 = vst [vmem:[%s646_s5 + $0x38] sm:$0xff] %v404_v5  ;;  %v314_v16 = vadd.f32 %v616_v2, %v275_v9  ;;  %v277_v18 = vmul.f32 %v598_v0, %v238_v3  ;;  %v405_v21 = vmax.f32 %v373_v10, 0.0  ;;  %v376_v23 = vadd.f32 %v344_v7, %v312_v12  ;;  %v350_v43 = vld [vmem:[%s610_s26 + $0x88] sm:$0xff]  ;;  %v245_v50 = vld [vmem:[%s604_s23 + $0xb0] sm:$0xff]  ;;  %v246_v51 = vld [vmem:[%s604_s23 + $0xb8] sm:$0xff] }
  0x1f   : > { %v406_v22 = vmax.f32 %v374_v11, 0.0  ;;  %v377_v24 = vadd.f32 %v345_v8, %v313_v13  ;;  %v407_v28 = vmax.f32 %v375_v15, 0.0  ;;  %v315_v30 = vadd.f32 %v616_v2, %v276_v17  ;;  %v352_v55 = vld [vmem:[%s610_s26 + $0x98] sm:$0xff]  ;;  %v353_v56 = vld [vmem:[%s610_s26 + $0xa0] sm:$0xff]  ;;  %v354_v62 = vld [vmem:[%s610_s26 + $0xa8] sm:$0xff] }
  0x20   : > { %v378_v29 = vadd.f32 %v346_v14, %v314_v16  ;;  %v316_v31 = vadd.f32 %v616_v2, %v277_v18  ;;  %437 = vst [vmem:[%s646_s5 + $0x40] sm:$0xff] %v405_v21  ;;  %v408_v34 = vmax.f32 %v376_v23, 0.0  ;;  %v278_v36 = vmul.f32 %v598_v0, %v239_v19  ;;  %v247_v5 = vld [vmem:[%s604_s23 + $0xc0] sm:$0xff]  ;;  %v248_v6 = vld [vmem:[%s604_s23 + $0xc8] sm:$0xff]  ;;  %v355_v11 = vld [vmem:[%s610_s26 + $0xb0] sm:$0xff] }
  0x21   : > { %438 = vst [vmem:[%s646_s5 + $0x48] sm:$0xff] %v406_v22  ;;  %v409_v35 = vmax.f32 %v377_v24, 0.0  ;;  %v279_v37 = vmul.f32 %v598_v0, %v240_v20  ;;  %439 = vst [vmem:[%s646_s5 + $0x50] sm:$0xff] %v407_v28  ;;  %v379_v40 = vadd.f32 %v347_v25, %v315_v30  ;;  %v280_v44 = vmul.f32 %v598_v0, %v241_v27  ;;  %v356_v12 = vld [vmem:[%s610_s26 + $0xb8] sm:$0xff]  ;;  %v249_v13 = vld [vmem:[%s604_s23 + $0xd0] sm:$0xff] }
  0x22   : > { %v410_v39 = vmax.f32 %v378_v29, 0.0  ;;  %v380_v41 = vadd.f32 %v348_v26, %v316_v31  ;;  %440 = vst [vmem:[%s646_s5 + $0x58] sm:$0xff] %v408_v34  ;;  %v317_v45 = vadd.f32 %v616_v2, %v278_v36  ;;  %v281_v48 = vmul.f32 %v598_v0, %v242_v32  ;;  %v250_v18 = vld [vmem:[%s604_s23 + $0xd8] sm:$0xff]  ;;  %v251_v19 = vld [vmem:[%s604_s23 + $0xe0] sm:$0xff]  ;;  %v252_v24 = vld [vmem:[%s604_s23 + $0xe8] sm:$0xff] }
  0x23   : > { %441 = vst [vmem:[%s646_s5 + $0x60] sm:$0xff] %v409_v35  ;;  %v318_v46 = vadd.f32 %v616_v2, %v279_v37  ;;  %v282_v49 = vmul.f32 %v598_v0, %v243_v33  ;;  %v411_v52 = vmax.f32 %v379_v40, 0.0  ;;  %v319_v54 = vadd.f32 %v616_v2, %v280_v44  ;;  %v357_v28 = vld [vmem:[%s610_s26 + $0xc0] sm:$0xff]  ;;  %v358_v29 = vld [vmem:[%s610_s26 + $0xc8] sm:$0xff]  ;;  %v359_v33 = vld [vmem:[%s610_s26 + $0xd0] sm:$0xff] }
  0x24   : > { %442 = vst [vmem:[%s646_s5 + $0x68] sm:$0xff] %v410_v39  ;;  %v412_v53 = vmax.f32 %v380_v41, 0.0  ;;  %v283_v57 = vmul.f32 %v598_v0, %v244_v38  ;;  %v381_v58 = vadd.f32 %v349_v42, %v317_v45  ;;  %v320_v60 = vadd.f32 %v616_v2, %v281_v48  ;;  %v253_v36 = vld [vmem:[%s604_s23 + $0xf0] sm:$0xff]  ;;  %v254_v37 = vld [vmem:[%s604_s23 + $0xf8] sm:$0xff]  ;;  %v361_v42 = vld [vmem:[%s610_s26 + $0xe0] sm:$0xff] }
  0x25   : > { %v382_v59 = vadd.f32 %v350_v43, %v318_v46  ;;  %v321_v61 = vadd.f32 %v616_v2, %v282_v49  ;;  %443 = vst [vmem:[%s646_s5 + $0x70] sm:$0xff] %v411_v52  ;;  %v383_v63 = vadd.f32 %v351_v47, %v319_v54  ;;  %v284_v3 = vmul.f32 %v598_v0, %v245_v50  ;;  %v360_v41 = vld [vmem:[%s610_s26 + $0xd8] sm:$0xff]  ;;  %v362_v48 = vld [vmem:[%s610_s26 + $0xe8] sm:$0xff] }
  0x26   : > { %444 = vst [vmem:[%s646_s5 + $0x78] sm:$0xff] %v412_v53  ;;  %v322_v1 = vadd.f32 %v616_v2, %v283_v57  ;;  %v285_v4 = vmul.f32 %v598_v0, %v246_v51  ;;  %v413_v7 = vmax.f32 %v381_v58, 0.0  ;;  %v384_v9 = vadd.f32 %v352_v55, %v320_v60  ;;  %v363_v57 = vld [vmem:[%s610_s26 + $0xf0] sm:$0xff]  ;;  %v364_v58 = vld [vmem:[%s610_s26 + $0xf8] sm:$0xff] }
  0x27   : > { %v414_v8 = vmax.f32 %v382_v59, 0.0  ;;  %v385_v10 = vadd.f32 %v353_v56, %v321_v61  ;;  %v415_v14 = vmax.f32 %v383_v63, 0.0  ;;  %v323_v16 = vadd.f32 %v616_v2, %v284_v3 }
  0x28   : > { %v386_v15 = vadd.f32 %v354_v62, %v322_v1  ;;  %v324_v17 = vadd.f32 %v616_v2, %v285_v4  ;;  %445 = vst [vmem:[%s646_s5 + $0x80] sm:$0xff] %v413_v7  ;;  %v416_v20 = vmax.f32 %v384_v9, 0.0  ;;  %v286_v22 = vmul.f32 %v598_v0, %v247_v5 }
  0x29   : > { %446 = vst [vmem:[%s646_s5 + $0x88] sm:$0xff] %v414_v8  ;;  %v417_v21 = vmax.f32 %v385_v10, 0.0  ;;  %v287_v23 = vmul.f32 %v598_v0, %v248_v6  ;;  %447 = vst [vmem:[%s646_s5 + $0x90] sm:$0xff] %v415_v14  ;;  %v387_v26 = vadd.f32 %v355_v11, %v323_v16  ;;  %v288_v30 = vmul.f32 %v598_v0, %v249_v13 }
  0x2a   : > { %v418_v25 = vmax.f32 %v386_v15, 0.0  ;;  %v388_v27 = vadd.f32 %v356_v12, %v324_v17  ;;  %448 = vst [vmem:[%s646_s5 + $0x98] sm:$0xff] %v416_v20  ;;  %v325_v31 = vadd.f32 %v616_v2, %v286_v22  ;;  %v289_v34 = vmul.f32 %v598_v0, %v250_v18 }
  0x2b   : > { %449 = vst [vmem:[%s646_s5 + $0xa0] sm:$0xff] %v417_v21  ;;  %v326_v32 = vadd.f32 %v616_v2, %v287_v23  ;;  %v290_v35 = vmul.f32 %v598_v0, %v251_v19  ;;  %v419_v38 = vmax.f32 %v387_v26, 0.0  ;;  %v327_v40 = vadd.f32 %v616_v2, %v288_v30 }
  0x2c   : > { %450 = vst [vmem:[%s646_s5 + $0xa8] sm:$0xff] %v418_v25  ;;  %v420_v39 = vmax.f32 %v388_v27, 0.0  ;;  %v291_v43 = vmul.f32 %v598_v0, %v252_v24  ;;  %v389_v44 = vadd.f32 %v357_v28, %v325_v31  ;;  %v328_v46 = vadd.f32 %v616_v2, %v289_v34 }
  0x2d   : > { %v390_v45 = vadd.f32 %v358_v29, %v326_v32  ;;  %v329_v47 = vadd.f32 %v616_v2, %v290_v35  ;;  %451 = vst [vmem:[%s646_s5 + $0xb0] sm:$0xff] %v419_v38  ;;  %v391_v49 = vadd.f32 %v359_v33, %v327_v40  ;;  %v292_v51 = vmul.f32 %v598_v0, %v253_v36 }
  0x2e   : > { %452 = vst [vmem:[%s646_s5 + $0xb8] sm:$0xff] %v420_v39  ;;  %v330_v50 = vadd.f32 %v616_v2, %v291_v43  ;;  %v293_v52 = vmul.f32 %v598_v0, %v254_v37  ;;  %v421_v53 = vmax.f32 %v389_v44, 0.0  ;;  %v392_v55 = vadd.f32 %v360_v41, %v328_v46 }
  0x2f   : > { %v422_v54 = vmax.f32 %v390_v45, 0.0  ;;  %v393_v56 = vadd.f32 %v361_v42, %v329_v47  ;;  %v423_v59 = vmax.f32 %v391_v49, 0.0  ;;  %v331_v61 = vadd.f32 %v616_v2, %v292_v51 }
  0x30   : > { %v394_v60 = vadd.f32 %v362_v48, %v330_v50  ;;  %v332_v62 = vadd.f32 %v616_v2, %v293_v52  ;;  %453 = vst [vmem:[%s646_s5 + $0xc0] sm:$0xff] %v421_v53  ;;  %v424_v0 = vmax.f32 %v392_v55, 0.0 }
  0x31   : > { %454 = vst [vmem:[%s646_s5 + $0xc8] sm:$0xff] %v422_v54  ;;  %v425_v63 = vmax.f32 %v393_v56, 0.0  ;;  %455 = vst [vmem:[%s646_s5 + $0xd0] sm:$0xff] %v423_v59  ;;  %v395_v3 = vadd.f32 %v363_v57, %v331_v61 }
  0x32   : > { %v426_v1 = vmax.f32 %v394_v60, 0.0  ;;  %v396_v4 = vadd.f32 %v364_v58, %v332_v62  ;;  %456 = vst [vmem:[%s646_s5 + $0xd8] sm:$0xff] %v424_v0 }
  0x33   : > { %457 = vst [vmem:[%s646_s5 + $0xe0] sm:$0xff] %v425_v63  ;;  %v427_v5 = vmax.f32 %v395_v3, 0.0 }
  0x34   : > { %458 = vst [vmem:[%s646_s5 + $0xe8] sm:$0xff] %v426_v1  ;;  %v428_v6 = vmax.f32 %v396_v4, 0.0 }
  0x35   : > { %459 = vst [vmem:[%s646_s5 + $0xf0] sm:$0xff] %v427_v5 }
  0x36   : > { %460 = vst [vmem:[%s646_s5 + $0xf8] sm:$0xff] %v428_v6 }
  0x37 PF: > { %s14_s15 = sadd.s32 1, %s558_s15  }
  0x38   : > { %p11_p4 = scmp.ge.s32.totalorder %s14_s15, 4  }
  0x3a   :  { %13 = sbr.rel (!%p11_p4) target bundleno = 1 (0x1), region = 69 }

// kernel: bottleneck_forward.6
= control target key start
LH: loop header
LB: loop body
LE: loop exit
PB: predicated region body
PF: predicated region fallthrough
CT: control target
= control target key end

     0   :  { %s1159_s21 = smov 0   ;;  %s1462_s0 = inlined_call_operand.vmem [shape: f32[512,128], index: 0, kind: input, shape index: {}]   ;;  %s1463_s1 = inlined_call_operand.vmem [shape: f32[128,128], index: 1, kind: input, shape index: {}]   ;;  %s1464_s2 = inlined_call_operand.vmem [shape: f32[1,128], index: 2, kind: input, shape index: {}]   ;;  %s1465_s3 = inlined_call_operand.vmem [shape: f32[1,128], index: 3, kind: input, shape index: {}]   ;;  %s1466_s4 = inlined_call_operand.vmem [shape: f32[512,128], index: 4, kind: output, shape index: {0}]   ;;  %s1467_s5 = inlined_call_operand.vmem [shape: f32[16,128], index: 5, kind: output, shape index: {1}]   ;;  %s1468_s6 = inlined_call_operand.vmem [shape: f32[16,128], index: 6, kind: output, shape index: {2}]  }
   0x1 LB: > { %s1165_s22 = sadd.s32 4294967295, %s1122_s21   ;;  %p921_p0 = scmp.ge.s32.totalorder %s1122_s21, 1  ;;  %s1122_s21 = sphi %s1159_s21, %s17_s21  }
   0x2   : > { %p218_p1 = scmp.lt.s32.totalorder %s1122_s21, 3 }
   0x4   : > { %p219_p2 = pnand %p921_p0, %p218_p1 }
   0x5   : > { %v418_v0 = vld [vmem:[%s1463_s1] sm:$0xff] (!%p219_p2)  ;;  %v419_v1 = vld [vmem:[%s1463_s1 + $0x8] sm:$0xff] (!%p219_p2)  ;;  %v420_v2 = vld [vmem:[%s1463_s1 + $0x10] sm:$0xff] (!%p219_p2)  ;;  %s922_s29 = sshll.u32 (!%p219_p2), %s1165_s22, 5  ;;  %p268_p4 = scmp.lt.s32.totalorder (!%p219_p2), %s1165_s22, 1 }
   0x6   : > { %222 = sbr.rel (%p219_p2) target bundleno = 332 (0x14c), region = 36  ;;  %v1060_v3 = vpack.c.bf16 (!%p219_p2), %v419_v1, %v418_v0  ;;  %v421_v4 = vld [vmem:[%s1463_s1 + $0x18] sm:$0xff] (!%p219_p2)  ;;  %p257_p3 = scmp.lt.s32.totalorder (!%p219_p2), %s922_s29, 63  ;;  %v422_v6 = vld [vmem:[%s1463_s1 + $0x20] sm:$0xff] (!%p219_p2)  ;;  %v423_v7 = vld [vmem:[%s1463_s1 + $0x28] sm:$0xff] (!%p219_p2) }
   0x7   : > { %v1064_v5 = vpack.c.bf16 (!%p219_p2), %v421_v4, %v420_v2  ;;  %v1068_v8 = vpack.c.bf16 (!%p219_p2), %v423_v7, %v422_v6  ;;  %v1194_v9 = vld [vmem:[%s1464_s2] ss:$0 sm:$0xff] (!%p219_p2)  ;;  %v424_v10 = vld [vmem:[%s1463_s1 + $0x30] sm:$0xff] (!%p219_p2)  ;;  %v425_v11 = vld [vmem:[%s1463_s1 + $0x38] sm:$0xff] (!%p219_p2) }
   0x8   : > { %1061 = vmatprep.subr.bf16.mxu0 (!%p219_p2), %v1060_v3  ;;  %1092 = vmatprep.subr.bf16.mxu1 (!%p219_p2), %v1060_v3  ;;  %v1213_v13 = vld [vmem:[%s1465_s3] ss:$0 sm:$0xff] (!%p219_p2)  ;;  %v1072_v15 = vpack.c.bf16 (!%p219_p2), %v425_v11, %v424_v10  ;;  %v427_v17 = vld [vmem:[%s1463_s1 + $0x48] sm:$0xff] (!%p219_p2)  ;;  %v428_v21 = vld [vmem:[%s1463_s1 + $0x50] sm:$0xff] (!%p219_p2) }
   0x9   : > { %1063 = vmatpush3.bf16.msra.mxu0 (!%p219_p2), %v1060_v3  ;;  %1100 = vmatpush3.bf16.msra.mxu1 (!%p219_p2), %v1060_v3  ;;  %v426_v16 = vld [vmem:[%s1463_s1 + $0x40] sm:$0xff] (!%p219_p2)  ;;  %v429_v22 = vld [vmem:[%s1463_s1 + $0x58] sm:$0xff] (!%p219_p2)  ;;  %v431_v26 = vld [vmem:[%s1463_s1 + $0x68] sm:$0xff] (!%p219_p2) }
   0xa   : > { %1065 = vmatprep.subr.bf16.mxu0 (!%p219_p2), %v1064_v5  ;;  %1093 = vmatprep.subr.bf16.mxu1 (!%p219_p2), %v1064_v5  ;;  %v1076_v20 = vpack.c.bf16 (!%p219_p2), %v427_v17, %v426_v16  ;;  %v1080_v23 = vpack.c.bf16 (!%p219_p2), %v429_v22, %v428_v21  ;;  %v430_v25 = vld [vmem:[%s1463_s1 + $0x60] sm:$0xff] (!%p219_p2)  ;;  %v432_v33 = vld [vmem:[%s1463_s1 + $0x70] sm:$0xff] (!%p219_p2)  ;;  %v433_v34 = vld [vmem:[%s1463_s1 + $0x78] sm:$0xff] (!%p219_p2) }
   0xb   : > { %v1084_v30 = vpack.c.bf16 (!%p219_p2), %v431_v26, %v430_v25  ;;  %v1088_v44 = vpack.c.bf16 (!%p219_p2), %v433_v34, %v432_v33 }
   0xd   : > { %s1470_s29 = smov (!%p257_p3, %s922_s29), 63  ;;  %1067 = vmatpush3.bf16.msra.mxu0 %v1064_v5  ;;  %1101 = vmatpush3.bf16.msra.mxu1 %v1064_v5  ;;  %s1472_s22 = smov (!%p268_p4, %s1165_s22), 1 }
   0xe   : > { %s923_s12 = sshll.u32 %s1470_s29, 3  ;;  %1069 = vmatprep.subr.bf16.mxu0 %v1068_v8  ;;  %1094 = vmatprep.subr.bf16.mxu1 %v1068_v8  ;;  %s926_s29 = sshll.u32 %s1472_s22, 3 }
   0xf   : > { %s1207_s23 = scalar_lea.vmem %s1462_s0, %s923_s12  ;;  %s1339_s24 = scalar_lea.vmem %s1466_s4, %s923_s12 }
  0x10   : > { %v276_v12 = vld [vmem:[%s1207_s23] sm:$0xff]  ;;  %v277_v27 = vld [vmem:[%s1207_s23 + $0x8] sm:$0xff]  ;;  %v278_v31 = vld [vmem:[%s1207_s23 + $0x10] sm:$0xff]  ;;  %s271_s26 = scalar_lea.vmem %s1467_s5, %s926_s29  ;;  %s275_s30 = scalar_lea.vmem %s1468_s6, %s926_s29 }
  0x11   : > { %v315_v14 = vmul.f32 %v1194_v9, %v276_v12  ;;  %1071 = vmatpush3.bf16.msra.mxu0 %v1068_v8  ;;  %1102 = vmatpush3.bf16.msra.mxu1 %v1068_v8  ;;  %v292_v24 = vld [vmem:[%s1207_s23 + $0x80] sm:$0xff]  ;;  %v293_v29 = vld [vmem:[%s1207_s23 + $0x88] sm:$0xff]  ;;  %v294_v32 = vld [vmem:[%s1207_s23 + $0x90] sm:$0xff]  ;;  %v316_v36 = vmul.f32 %v1194_v9, %v277_v27  ;;  %v317_v40 = vmul.f32 %v1194_v9, %v278_v31 }
  0x12   : > { %1073 = vmatprep.subr.bf16.mxu0 %v1072_v15  ;;  %1095 = vmatprep.subr.bf16.mxu1 %v1072_v15  ;;  %v331_v28 = vmul.f32 %v1194_v9, %v292_v24  ;;  %v279_v37 = vld [vmem:[%s1207_s23 + $0x18] sm:$0xff]  ;;  %v280_v38 = vld [vmem:[%s1207_s23 + $0x20] sm:$0xff]  ;;  %v332_v39 = vmul.f32 %v1194_v9, %v293_v29  ;;  %v333_v42 = vmul.f32 %v1194_v9, %v294_v32  ;;  %v281_v49 = vld [vmem:[%s1207_s23 + $0x28] sm:$0xff] }
  0x13   : > { %v354_v18 = vadd.f32 %v1213_v13, %v315_v14  ;;  %v295_v43 = vld [vmem:[%s1207_s23 + $0x98] sm:$0xff]  ;;  %v296_v45 = vld [vmem:[%s1207_s23 + $0xa0] sm:$0xff]  ;;  %v318_v46 = vmul.f32 %v1194_v9, %v279_v37  ;;  %v319_v47 = vmul.f32 %v1194_v9, %v280_v38  ;;  %v355_v48 = vadd.f32 %v1213_v13, %v316_v36  ;;  %v282_v50 = vld [vmem:[%s1207_s23 + $0x30] sm:$0xff] }
  0x14   : > { %v370_v35 = vadd.f32 %v1213_v13, %v331_v28  ;;  %v371_v51 = vadd.f32 %v1213_v13, %v332_v39  ;;  %v334_v52 = vmul.f32 %v1194_v9, %v295_v43  ;;  %v356_v53 = vadd.f32 %v1213_v13, %v317_v40  ;;  %v297_v56 = vld [vmem:[%s1207_s23 + $0xa8] sm:$0xff]  ;;  %v298_v57 = vld [vmem:[%s1207_s23 + $0xb0] sm:$0xff]  ;;  %v283_v63 = vld [vmem:[%s1207_s23 + $0x38] sm:$0xff] }
  0x15   : > { %v386_v19 = vmax.f32 %v354_v18, 0.0  ;;  %1075 = vmatpush3.bf16.msra.mxu0 %v1072_v15  ;;  %1103 = vmatpush3.bf16.msra.mxu1 %v1072_v15  ;;  %v372_v54 = vadd.f32 %v1213_v13, %v333_v42  ;;  %v335_v55 = vmul.f32 %v1194_v9, %v296_v45  ;;  %v357_v58 = vadd.f32 %v1213_v13, %v318_v46  ;;  %v299_v7 = vld [vmem:[%s1207_s23 + $0xb8] sm:$0xff]  ;;  %v284_v8 = vld [vmem:[%s1207_s23 + $0x40] sm:$0xff]  ;;  %v285_v17 = vld [vmem:[%s1207_s23 + $0x48] sm:$0xff] }
  0x16   : > { %1077 = vmatprep.subr.bf16.mxu0 %v1076_v20  ;;  %1096 = vmatprep.subr.bf16.mxu1 %v1076_v20  ;;  %v402_v41 = vmax.f32 %v370_v35, 0.0  ;;  %v358_v59 = vadd.f32 %v1213_v13, %v319_v47  ;;  %v320_v60 = vmul.f32 %v1194_v9, %v281_v49  ;;  %v321_v61 = vmul.f32 %v1194_v9, %v282_v50  ;;  %v300_v10 = vld [vmem:[%s1207_s23 + $0xc0] sm:$0xff]  ;;  %v286_v22 = vld [vmem:[%s1207_s23 + $0x50] sm:$0xff]  ;;  %v301_v26 = vld [vmem:[%s1207_s23 + $0xc8] sm:$0xff] }
  0x17   : > { %1012 = vmatprep.mubr.f32.mxu0 %v386_v19  ;;  %v387_v62 = vmax.f32 %v355_v48, 0.0  ;;  %v403_v0 = vmax.f32 %v371_v51, 0.0  ;;  %v373_v1 = vadd.f32 %v1213_v13, %v334_v52  ;;  %v336_v2 = vmul.f32 %v1194_v9, %v297_v56  ;;  %v302_v27 = vld [vmem:[%s1207_s23 + $0xd0] sm:$0xff]  ;;  %v287_v33 = vld [vmem:[%s1207_s23 + $0x58] sm:$0xff]  ;;  %v288_v34 = vld [vmem:[%s1207_s23 + $0x60] sm:$0xff] }
  0x18   : > { %1036 = vmatprep.mubr.f32.mxu1 %v402_v41  ;;  %v388_v3 = vmax.f32 %v356_v53, 0.0  ;;  %v404_v4 = vmax.f32 %v372_v54, 0.0  ;;  %v374_v5 = vadd.f32 %v1213_v13, %v335_v55  ;;  %v337_v6 = vmul.f32 %v1194_v9, %v298_v57  ;;  %v303_v42 = vld [vmem:[%s1207_s23 + $0xd8] sm:$0xff]  ;;  %v304_v43 = vld [vmem:[%s1207_s23 + $0xe0] sm:$0xff]  ;;  %v289_v49 = vld [vmem:[%s1207_s23 + $0x68] sm:$0xff] }
  0x19   : > { %1079 = vmatpush3.bf16.msra.mxu0 %v1076_v20  ;;  %1104 = vmatpush3.bf16.msra.mxu1 %v1076_v20  ;;  %v389_v11 = vmax.f32 %v357_v58, 0.0  ;;  %v359_v12 = vadd.f32 %v1213_v13, %v320_v60  ;;  %v360_v14 = vadd.f32 %v1213_v13, %v321_v61  ;;  %v322_v15 = vmul.f32 %v1194_v9, %v283_v63  ;;  %v305_v57 = vld [vmem:[%s1207_s23 + $0xe8] sm:$0xff]  ;;  %v290_v58 = vld [vmem:[%s1207_s23 + $0x70] sm:$0xff] }
  0x1a   : > { %1081 = vmatprep.subr.bf16.mxu0 %v1080_v23  ;;  %1097 = vmatprep.subr.bf16.mxu1 %v1080_v23  ;;  %v390_v16 = vmax.f32 %v358_v59, 0.0  ;;  %v405_v18 = vmax.f32 %v373_v1, 0.0  ;;  %v375_v19 = vadd.f32 %v1213_v13, %v336_v2  ;;  %v338_v20 = vmul.f32 %v1194_v9, %v299_v7  ;;  %v306_v59 = vld [vmem:[%s1207_s23 + $0xf0] sm:$0xff] }
  0x1b   : > { %v323_v21 = vmul.f32 %v1194_v9, %v284_v8  ;;  %v376_v24 = vadd.f32 %v1213_v13, %v337_v6  ;;  %v339_v25 = vmul.f32 %v1194_v9, %v300_v10  ;;  %v391_v28 = vmax.f32 %v359_v12, 0.0  ;;  %v307_v10 = vld [vmem:[%s1207_s23 + $0xf8] sm:$0xff] }
  0x1c   : > { %v392_v29 = vmax.f32 %v360_v14, 0.0  ;;  %v324_v31 = vmul.f32 %v1194_v9, %v285_v17  ;;  %v325_v32 = vmul.f32 %v1194_v9, %v286_v22  ;;  %v407_v35 = vmax.f32 %v375_v19, 0.0 }
  0x1d   : > { %1083 = vmatpush3.bf16.msra.mxu0 %v1080_v23  ;;  %1105 = vmatpush3.bf16.msra.mxu1 %v1080_v23  ;;  %v406_v23 = vmax.f32 %v374_v5, 0.0  ;;  %v377_v36 = vadd.f32 %v1213_v13, %v338_v20  ;;  %v340_v37 = vmul.f32 %v1194_v9, %v301_v26  ;;  %v362_v38 = vadd.f32 %v1213_v13, %v323_v21  ;;  %v291_v5 = vld [vmem:[%s1207_s23 + $0x78] sm:$0xff] }
  0x1e   : > { %1085 = vmatprep.subr.bf16.mxu0 %v1084_v30  ;;  %1098 = vmatprep.subr.bf16.mxu1 %v1084_v30  ;;  %v408_v39 = vmax.f32 %v376_v24, 0.0  ;;  %v378_v40 = vadd.f32 %v1213_v13, %v339_v25  ;;  %v341_v41 = vmul.f32 %v1194_v9, %v302_v27  ;;  %v363_v45 = vadd.f32 %v1213_v13, %v324_v31 }
  0x1f   : > { %v326_v46 = vmul.f32 %v1194_v9, %v287_v33  ;;  %v327_v47 = vmul.f32 %v1194_v9, %v288_v34  ;;  %v364_v48 = vadd.f32 %v1213_v13, %v325_v32  ;;  %v409_v50 = vmax.f32 %v377_v36, 0.0 }
  0x20   : > { %v379_v51 = vadd.f32 %v1213_v13, %v340_v37  ;;  %v342_v52 = vmul.f32 %v1194_v9, %v303_v42  ;;  %v394_v53 = vmax.f32 %v362_v38, 0.0  ;;  %v410_v54 = vmax.f32 %v378_v40, 0.0 }
  0x21   : > { %1087 = vmatpush3.bf16.msra.mxu0 %v1084_v30  ;;  %1106 = vmatpush3.bf16.msra.mxu1 %v1084_v30  ;;  %v361_v30 = vadd.f32 %v1213_v13, %v322_v15  ;;  %v380_v55 = vadd.f32 %v1213_v13, %v341_v41  ;;  %v343_v56 = vmul.f32 %v1194_v9, %v304_v43  ;;  %v395_v60 = vmax.f32 %v363_v45, 0.0 }
  0x22   : > { %1089 = vmatprep.subr.bf16.mxu0 %v1088_v44  ;;  %1099 = vmatprep.subr.bf16.mxu1 %v1088_v44  ;;  %v365_v61 = vadd.f32 %v1213_v13, %v326_v46  ;;  %v328_v63 = vmul.f32 %v1194_v9, %v289_v49  ;;  %v411_v1 = vmax.f32 %v379_v51, 0.0  ;;  %v381_v2 = vadd.f32 %v1213_v13, %v342_v52 }
  0x23   : > { %v412_v6 = vmax.f32 %v380_v55, 0.0  ;;  %v382_v7 = vadd.f32 %v1213_v13, %v343_v56  ;;  %v345_v8 = vmul.f32 %v1194_v9, %v306_v59  ;;  %v330_v14 = vmul.f32 %v1194_v9, %v291_v5 }
  0x24   : > { %v367_v12 = vadd.f32 %v1213_v13, %v328_v63  ;;  %v413_v15 = vmax.f32 %v381_v2, 0.0  ;;  %v346_v17 = vmul.f32 %v1194_v9, %v307_v10 }
  0x25   : > { %1091 = vmatpush3.bf16.msra.mxu0 %v1088_v44  ;;  %1107 = vmatpush3.bf16.msra.mxu1 %v1088_v44  ;;  %v393_v44 = vmax.f32 %v361_v30, 0.0  ;;  %v414_v20 = vmax.f32 %v382_v7, 0.0  ;;  %v384_v21 = vadd.f32 %v1213_v13, %v345_v8 }
  0x26   : > { %v399_v22 = vmax.f32 %v367_v12, 0.0  ;;  %v385_v25 = vadd.f32 %v1213_v13, %v346_v17 }
  0x28   : > { %1013 = vmatmul.mubr.f32.vlgmr.msra.gmra.mrb[0].mxu0 %v387_v62  ;;  %1037 = vmatmul.mubr.f32.vlgmr.msra.gmra.mrb[0].mxu1 %v403_v0  ;;  %v366_v62 = vadd.f32 %v1213_v13, %v327_v47  ;;  %v396_v0 = vmax.f32 %v364_v48, 0.0 }
  0x29   : > { %1015 = vmatprep.mubr.f32.mxu0 %v388_v3  ;;  %1039 = vmatprep.mubr.f32.mxu1 %v404_v4  ;;  %v344_v3 = vmul.f32 %v1194_v9, %v305_v57  ;;  %v329_v4 = vmul.f32 %v1194_v9, %v290_v58  ;;  %v416_v9 = vmax.f32 %v384_v21, 0.0 }
  0x2b   : > { %v368_v19 = vadd.f32 %v1213_v13, %v329_v4 }
  0x2c   : > { %1016 = vmatmul.mubr.f32.gmra.mrb[2].mxu0 %v389_v11  ;;  %1040 = vmatmul.mubr.f32.gmra.mrb[2].mxu1 %v405_v18  ;;  %v397_v11 = vmax.f32 %v365_v61, 0.0  ;;  %v398_v18 = vmax.f32 %v366_v62, 0.0 }
  0x2d   : > { %1018 = vmatprep.mubr.f32.mxu0 %v390_v16  ;;  %1042 = vmatprep.mubr.f32.mxu1 %v406_v23  ;;  %v383_v16 = vadd.f32 %v1213_v13, %v344_v3  ;;  %v369_v23 = vadd.f32 %v1213_v13, %v330_v14  ;;  %v400_v26 = vmax.f32 %v368_v19, 0.0 }
  0x2f   : > { %v415_v24 = vmax.f32 %v383_v16, 0.0  ;;  %v401_v27 = vmax.f32 %v369_v23, 0.0 }
  0x30   : > { %1019 = vmatmul.mubr.f32.gmra.mrb[4].mxu0 %v391_v28  ;;  %1043 = vmatmul.mubr.f32.gmra.mrb[4].mxu1 %v407_v35  ;;  %v417_v28 = vmax.f32 %v385_v25, 0.0 }
  0x31   : > { %1021 = vmatprep.mubr.f32.mxu0 %v392_v29  ;;  %1045 = vmatprep.mubr.f32.mxu1 %v408_v39 }
  0x34   : > { %1022 = vmatmul.mubr.f32.gmra.mrb[6].mxu0 %v393_v44  ;;  %1046 = vmatmul.mubr.f32.gmra.mrb[6].mxu1 %v409_v50 }
  0x35   : > { %1024 = vmatprep.mubr.f32.mxu0 %v394_v53  ;;  %1048 = vmatprep.mubr.f32.mxu1 %v410_v54 }
  0x38   : > { %1025 = vmatmul.mubr.f32.gmra.mrb[8].mxu0 %v395_v60  ;;  %1049 = vmatmul.mubr.f32.gmra.mrb[8].mxu1 %v411_v1 }
  0x39   : > { %1027 = vmatprep.mubr.f32.mxu0 %v396_v0  ;;  %1051 = vmatprep.mubr.f32.mxu1 %v412_v6 }
  0x3c   : > { %1028 = vmatmul.mubr.f32.gmra.mrb[10].mxu0 %v397_v11  ;;  %1052 = vmatmul.mubr.f32.gmra.mrb[10].mxu1 %v413_v15 }
  0x3d   : > { %1030 = vmatprep.mubr.f32.mxu0 %v398_v18  ;;  %1054 = vmatprep.mubr.f32.mxu1 %v414_v20 }
  0x40   : > { %1031 = vmatmul.mubr.f32.gmra.mrb[12].mxu0 %v399_v22  ;;  %1055 = vmatmul.mubr.f32.gmra.mrb[12].mxu1 %v415_v24 }
  0x41   : > { %1033 = vmatprep.mubr.f32.mxu0 %v400_v26  ;;  %1057 = vmatprep.mubr.f32.mxu1 %v416_v9 }
  0x44   : > { %1034 = vmatmul.mubr.f32.gmra.mrb[14].mxu0 %v401_v27  ;;  %1058 = vmatmul.mubr.f32.gmra.mrb[14].mxu1 %v417_v28 }
  0xfb   : > { %v1014_v13 = vpop.f32.mrb[0].mxu0  ;;  %v1341_v29 = vpop.f32.mrb[0].mxu1 }
  0xfc   : > { %660 = vst [vmem:[%s1339_s24 + $0x8] sm:$0xff] %v1014_v13  ;;  %v729_v30 = vmul.f32 %v1014_v13, %v1014_v13  ;;  %v500_v31 = vpop.f32.mrb[1].mxu0  ;;  %676 = vst [vmem:[%s1339_s24 + $0x88] sm:$0xff] %v1341_v29  ;;  %v1346_v32 = vpop.f32.mrb[1].mxu1 }
  0xfd   : > { %659 = vst [vmem:[%s1339_s24] sm:$0xff] %v500_v31  ;;  %v691_v33 = vadd.f32 %v1014_v13, %v500_v31  ;;  %v728_v34 = vmul.f32 %v500_v31, %v500_v31  ;;  %675 = vst [vmem:[%s1339_s24 + $0x80] sm:$0xff] %v1346_v32 }
  0xff   : > { %v760_v35 = vadd.f32 %v729_v30, %v728_v34  ;;  %v1017_v36 = vpop.f32.mrb[2].mxu0  ;;  %v1351_v37 = vpop.f32.mrb[2].mxu1 }
 0x100   : > { %662 = vst [vmem:[%s1339_s24 + $0x18] sm:$0xff] %v1017_v36  ;;  %v510_v38 = vpop.f32.mrb[3].mxu0  ;;  %678 = vst [vmem:[%s1339_s24 + $0x98] sm:$0xff] %v1351_v37  ;;  %v1356_v39 = vpop.f32.mrb[3].mxu1  ;;  %v731_v42 = vmul.f32 %v1017_v36, %v1017_v36 }
 0x101   : > { %661 = vst [vmem:[%s1339_s24 + $0x10] sm:$0xff] %v510_v38  ;;  %v692_v40 = vadd.f32 %v691_v33, %v510_v38  ;;  %v730_v41 = vmul.f32 %v510_v38, %v510_v38  ;;  %677 = vst [vmem:[%s1339_s24 + $0x90] sm:$0xff] %v1356_v39 }
 0x103   : > { %v761_v43 = vadd.f32 %v760_v35, %v730_v41  ;;  %v1020_v44 = vpop.f32.mrb[4].mxu0  ;;  %v693_v45 = vadd.f32 %v1017_v36, %v692_v40  ;;  %v1361_v46 = vpop.f32.mrb[4].mxu1 }
 0x104   : > { %664 = vst [vmem:[%s1339_s24 + $0x28] sm:$0xff] %v1020_v44  ;;  %v520_v47 = vpop.f32.mrb[5].mxu0  ;;  %680 = vst [vmem:[%s1339_s24 + $0xa8] sm:$0xff] %v1361_v46  ;;  %v1366_v48 = vpop.f32.mrb[5].mxu1  ;;  %v733_v52 = vmul.f32 %v1020_v44, %v1020_v44 }
 0x105   : > { %663 = vst [vmem:[%s1339_s24 + $0x20] sm:$0xff] %v520_v47  ;;  %v694_v49 = vadd.f32 %v693_v45, %v520_v47  ;;  %v732_v50 = vmul.f32 %v520_v47, %v520_v47  ;;  %v762_v51 = vadd.f32 %v761_v43, %v731_v42  ;;  %679 = vst [vmem:[%s1339_s24 + $0xa0] sm:$0xff] %v1366_v48 }
 0x106   : > { %v744_v45 = vmul.f32 %v1346_v32, %v1346_v32 }
 0x107   : > { %v763_v53 = vadd.f32 %v762_v51, %v732_v50  ;;  %v1023_v54 = vpop.f32.mrb[6].mxu0  ;;  %v695_v55 = vadd.f32 %v1020_v44, %v694_v49  ;;  %v1371_v56 = vpop.f32.mrb[6].mxu1  ;;  %v745_v50 = vmul.f32 %v1341_v29, %v1341_v29 }
 0x108   : > { %666 = vst [vmem:[%s1339_s24 + $0x38] sm:$0xff] %v1023_v54  ;;  %v530_v57 = vpop.f32.mrb[7].mxu0  ;;  %682 = vst [vmem:[%s1339_s24 + $0xb8] sm:$0xff] %v1371_v56  ;;  %v1376_v58 = vpop.f32.mrb[7].mxu1  ;;  %v735_v62 = vmul.f32 %v1023_v54, %v1023_v54 }
 0x109   : > { %665 = vst [vmem:[%s1339_s24 + $0x30] sm:$0xff] %v530_v57  ;;  %v696_v59 = vadd.f32 %v695_v55, %v530_v57  ;;  %v734_v60 = vmul.f32 %v530_v57, %v530_v57  ;;  %v764_v61 = vadd.f32 %v763_v53, %v733_v52  ;;  %681 = vst [vmem:[%s1339_s24 + $0xb0] sm:$0xff] %v1376_v58 }
 0x10a   : > { %v746_v53 = vmul.f32 %v1356_v39, %v1356_v39  ;;  %v747_v57 = vmul.f32 %v1351_v37, %v1351_v37 }
 0x10b   : > { %v765_v63 = vadd.f32 %v764_v61, %v734_v60  ;;  %v1026_v0 = vpop.f32.mrb[8].mxu0  ;;  %v697_v1 = vadd.f32 %v1023_v54, %v696_v59  ;;  %v1381_v2 = vpop.f32.mrb[8].mxu1 }
 0x10c   : > { %668 = vst [vmem:[%s1339_s24 + $0x48] sm:$0xff] %v1026_v0  ;;  %v540_v3 = vpop.f32.mrb[9].mxu0  ;;  %684 = vst [vmem:[%s1339_s24 + $0xc8] sm:$0xff] %v1381_v2  ;;  %v1386_v4 = vpop.f32.mrb[9].mxu1  ;;  %v737_v8 = vmul.f32 %v1026_v0, %v1026_v0 }
 0x10d   : > { %667 = vst [vmem:[%s1339_s24 + $0x40] sm:$0xff] %v540_v3  ;;  %v698_v5 = vadd.f32 %v697_v1, %v540_v3  ;;  %v736_v6 = vmul.f32 %v540_v3, %v540_v3  ;;  %v766_v7 = vadd.f32 %v765_v63, %v735_v62  ;;  %683 = vst [vmem:[%s1339_s24 + $0xc0] sm:$0xff] %v1386_v4 }
 0x10f   : > { %v767_v10 = vadd.f32 %v766_v7, %v736_v6  ;;  %v1029_v11 = vpop.f32.mrb[10].mxu0  ;;  %v699_v12 = vadd.f32 %v1026_v0, %v698_v5  ;;  %v1391_v14 = vpop.f32.mrb[10].mxu1 }
 0x110   : > { %670 = vst [vmem:[%s1339_s24 + $0x58] sm:$0xff] %v1029_v11  ;;  %v550_v15 = vpop.f32.mrb[11].mxu0  ;;  %686 = vst [vmem:[%s1339_s24 + $0xd8] sm:$0xff] %v1391_v14  ;;  %v1396_v16 = vpop.f32.mrb[11].mxu1  ;;  %v739_v20 = vmul.f32 %v1029_v11, %v1029_v11 }
 0x111   : > { %669 = vst [vmem:[%s1339_s24 + $0x50] sm:$0xff] %v550_v15  ;;  %v700_v17 = vadd.f32 %v699_v12, %v550_v15  ;;  %v738_v18 = vmul.f32 %v550_v15, %v550_v15  ;;  %v768_v19 = vadd.f32 %v767_v10, %v737_v8  ;;  %685 = vst [vmem:[%s1339_s24 + $0xd0] sm:$0xff] %v1396_v16 }
 0x113   : > { %v769_v21 = vadd.f32 %v768_v19, %v738_v18  ;;  %v1032_v22 = vpop.f32.mrb[12].mxu0  ;;  %v701_v23 = vadd.f32 %v1029_v11, %v700_v17  ;;  %v1401_v24 = vpop.f32.mrb[12].mxu1 }
 0x114   : > { %672 = vst [vmem:[%s1339_s24 + $0x68] sm:$0xff] %v1032_v22  ;;  %v560_v25 = vpop.f32.mrb[13].mxu0  ;;  %688 = vst [vmem:[%s1339_s24 + $0xe8] sm:$0xff] %v1401_v24  ;;  %v640_v26 = vpop.f32.mrb[13].mxu1  ;;  %v741_v13 = vmul.f32 %v1032_v22, %v1032_v22 }
 0x115   : > { %671 = vst [vmem:[%s1339_s24 + $0x60] sm:$0xff] %v560_v25  ;;  %v702_v9 = vadd.f32 %v701_v23, %v560_v25  ;;  %v740_v27 = vmul.f32 %v560_v25, %v560_v25  ;;  %v770_v28 = vadd.f32 %v769_v21, %v739_v20  ;;  %687 = vst [vmem:[%s1339_s24 + $0xe0] sm:$0xff] %v640_v26 }
 0x116   : > { %v756_v18 = vmul.f32 %v640_v26, %v640_v26 }
 0x117   : > { %v771_v30 = vadd.f32 %v770_v28, %v740_v27  ;;  %v1035_v31 = vpop.f32.mrb[14].mxu0  ;;  %v703_v33 = vadd.f32 %v1032_v22, %v702_v9  ;;  %v1059_v34 = vpop.f32.mrb[14].mxu1 }
 0x118   : > { %674 = vst [vmem:[%s1339_s24 + $0x78] sm:$0xff] %v1035_v31  ;;  %v570_v35 = vpop.f32.mrb[15].mxu0  ;;  %690 = vst [vmem:[%s1339_s24 + $0xf8] sm:$0xff] %v1059_v34  ;;  %v650_v36 = vpop.f32.mrb[15].mxu1  ;;  %v743_v42 = vmul.f32 %v1035_v31, %v1035_v31  ;;  %v759_v9 = vmul.f32 %v1059_v34, %v1059_v34 }
 0x119   : > { %673 = vst [vmem:[%s1339_s24 + $0x70] sm:$0xff] %v570_v35  ;;  %v704_v38 = vadd.f32 %v703_v33, %v570_v35  ;;  %v742_v40 = vmul.f32 %v570_v35, %v570_v35  ;;  %v772_v41 = vadd.f32 %v771_v30, %v741_v13  ;;  %689 = vst [vmem:[%s1339_s24 + $0xf0] sm:$0xff] %v650_v36 }
 0x11a   : > { %v758_v23 = vmul.f32 %v650_v36, %v650_v36 }
 0x11b   : > { %v705_v43 = vadd.f32 %v1035_v31, %v704_v38  ;;  %v773_v44 = vadd.f32 %v772_v41, %v742_v40 }
 0x11d   : > { %v774_v47 = vadd.f32 %v773_v44, %v743_v42  ;;  %v706_v49 = vadd.f32 %v705_v43, %v1346_v32  ;;  %v748_v32 = vmul.f32 %v1366_v48, %v1366_v48 }
 0x11f   : > { %v775_v51 = vadd.f32 %v774_v47, %v744_v45  ;;  %v707_v52 = vadd.f32 %v1341_v29, %v706_v49  ;;  %v749_v29 = vmul.f32 %v1361_v46, %v1361_v46 }
 0x121   : > { %v708_v54 = vadd.f32 %v707_v52, %v1356_v39  ;;  %v776_v55 = vadd.f32 %v775_v51, %v745_v50  ;;  %v750_v39 = vmul.f32 %v1376_v58, %v1376_v58 }
 0x123   : > { %v777_v59 = vadd.f32 %v776_v55, %v746_v53  ;;  %v709_v60 = vadd.f32 %v1351_v37, %v708_v54  ;;  %v751_v37 = vmul.f32 %v1371_v56, %v1371_v56 }
 0x125   : > { %v710_v61 = vadd.f32 %v709_v60, %v1366_v48  ;;  %v778_v62 = vadd.f32 %v777_v59, %v747_v57  ;;  %v752_v48 = vmul.f32 %v1386_v4, %v1386_v4 }
 0x127   : > { %v779_v63 = vadd.f32 %v778_v62, %v748_v32  ;;  %v711_v0 = vadd.f32 %v1361_v46, %v710_v61  ;;  %v753_v46 = vmul.f32 %v1381_v2, %v1381_v2 }
 0x129   : > { %v712_v1 = vadd.f32 %v711_v0, %v1376_v58  ;;  %v780_v3 = vadd.f32 %v779_v63, %v749_v29  ;;  %v754_v58 = vmul.f32 %v1396_v16, %v1396_v16 }
 0x12b   : > { %v781_v5 = vadd.f32 %v780_v3, %v750_v39  ;;  %v713_v6 = vadd.f32 %v1371_v56, %v712_v1  ;;  %v755_v56 = vmul.f32 %v1391_v14, %v1391_v14 }
 0x12d   : > { %v714_v7 = vadd.f32 %v713_v6, %v1386_v4  ;;  %v782_v8 = vadd.f32 %v781_v5, %v751_v37 }
 0x12f   : > { %v783_v10 = vadd.f32 %v782_v8, %v752_v48  ;;  %v715_v11 = vadd.f32 %v1381_v2, %v714_v7  ;;  %v757_v2 = vmul.f32 %v1401_v24, %v1401_v24 }
 0x131   : > { %v716_v12 = vadd.f32 %v715_v11, %v1396_v16  ;;  %v784_v15 = vadd.f32 %v783_v10, %v753_v46 }
 0x133   : > { %v785_v17 = vadd.f32 %v784_v15, %v754_v58  ;;  %v717_v4 = vadd.f32 %v1391_v14, %v716_v12 }
 0x135   : > { %v718_v19 = vadd.f32 %v717_v4, %v640_v26  ;;  %v786_v20 = vadd.f32 %v785_v17, %v755_v56 }
 0x137   : > { %v787_v21 = vadd.f32 %v786_v20, %v756_v18  ;;  %v719_v22 = vadd.f32 %v1401_v24, %v718_v19 }
 0x139   : > { %v720_v25 = vadd.f32 %v719_v22, %v650_v36  ;;  %v788_v16 = vadd.f32 %v787_v21, %v757_v2 }
 0x13b   : > { %v721_v27 = vadd.f32 %v1059_v34, %v720_v25  ;;  %v789_v28 = vadd.f32 %v788_v16, %v758_v23 }
 0x13d   : > { %v722_v13 = vrot.slane %v721_v27, 4  ;;  %v790_v30 = vadd.f32 %v789_v28, %v759_v9 }
 0x13f   : > { %v723_v14 = vadd.f32 %v722_v13, %v721_v27  ;;  %v791_v31 = vrot.slane %v790_v30, 4 }
 0x141   : > { %v724_v26 = vrot.slane %v723_v14, 2  ;;  %v792_v33 = vadd.f32 %v791_v31, %v790_v30 }
 0x143   : > { %v725_v35 = vadd.f32 %v724_v26, %v723_v14  ;;  %v793_v38 = vrot.slane %v792_v33, 2 }
 0x145   : > { %v726_v40 = vrot.slane %v725_v35, 1  ;;  %v794_v41 = vadd.f32 %v793_v38, %v792_v33 }
 0x147   : > { %v727_v24 = vadd.f32 %v726_v40, %v725_v35  ;;  %v795_v36 = vrot.slane %v794_v41, 1 }
 0x149   : > { %v796_v34 = vadd.f32 %v795_v36, %v794_v41  ;;  %797 = vst [vmem:[%s271_s26] sm:$0xff] %v727_v24 }
 0x14b   : > { %798 = vst [vmem:[%s275_s30] sm:$0xff] %v796_v34 }
 0x14c PF: > { %s17_s21 = sadd.s32 1, %s1122_s21  }
 0x14d   : > { %p14_p5 = scmp.ge.s32.totalorder %s17_s21, 4  }
 0x14f   :  { %16 = sbr.rel (!%p14_p5) target bundleno = 1 (0x1), region = 90 }

// kernel: bottleneck_forward.5
= control target key start
LH: loop header
LB: loop body
LE: loop exit
PB: predicated region body
PF: predicated region fallthrough
CT: control target
= control target key end

     0   :  { %s5502_s21 = smov 0   ;;  %s7183_s0 = inlined_call_operand.vmem [shape: f32[2,18,18,128], index: 0, kind: input, shape index: {}]   ;;  %s7184_s1 = inlined_call_operand.vmem [shape: f32[3,3,128,128], index: 1, kind: input, shape index: {}]   ;;  %s7185_s2 = inlined_call_operand.vmem [shape: f32[1,128], index: 2, kind: input, shape index: {}]   ;;  %s7186_s3 = inlined_call_operand.vmem [shape: f32[1,128], index: 3, kind: input, shape index: {}]   ;;  %s7187_s4 = inlined_call_operand.vmem [shape: f32[2,16,16,128], index: 4, kind: output, shape index: {0}]   ;;  %s7188_s5 = inlined_call_operand.vmem [shape: f32[16,128], index: 5, kind: output, shape index: {1}]   ;;  %s7189_s6 = inlined_call_operand.vmem [shape: f32[16,128], index: 6, kind: output, shape index: {2}]  }
   0x1 LB: > { %s3545_s22 = sadd.s32 4294967295, %s5464_s21   ;;  %p3549_p0 = scmp.ge.s32.totalorder %s5464_s21, 1  ;;  %s5464_s21 = sphi %s5502_s21, %s17_s21  }
   0x2   : > { %p217_p1 = scmp.lt.s32.totalorder %s5464_s21, 3 }
   0x4   : > { %p218_p2 = pnand %p3549_p0, %p217_p1 }
   0x6   : > { %221 = sbr.rel (%p218_p2) target bundleno = 567 (0x237), region = 36 }
   0xd   : > { %v3557_v0 = vld [vmem:[%s7184_s1 + $0x80] sm:$0xff]  ;;  %v3558_v1 = vld [vmem:[%s7184_s1 + $0x88] sm:$0xff]  ;;  %p255_p3 = scmp.lt.s32.totalorder %s3545_s22, 1  ;;  %v3559_v5 = vld [vmem:[%s7184_s1 + $0x90] sm:$0xff]  ;;  %v7190_v7 = vmov 0.0   ;;  %v503_v9 = vlaneseq  ;;  %vm643_vm0 = vcmask 1046528  }
   0xe   : > { %v3636_v2 = vld [vmem:[%s7184_s1 + $0x200] sm:$0xff]  ;;  %v4886_v3 = vpack.c.bf16 %v3558_v1, %v3557_v0  ;;  %v3637_v4 = vld [vmem:[%s7184_s1 + $0x208] sm:$0xff]  ;;  %v3560_v6 = vld [vmem:[%s7184_s1 + $0x98] sm:$0xff]  ;;  %v5529_v8 = vrot.slane %v7190_v7, 1  ;;  %vm1223_vm3 = vcmask 1045504  }
   0xf   : > { %v5531_v10 = vpack.c.bf16 %v3637_v4, %v3636_v2  ;;  %v4890_v11 = vpack.c.bf16 %v3560_v6, %v3559_v5  ;;  %v3638_v12 = vld [vmem:[%s7184_s1 + $0x210] sm:$0xff]  ;;  %v3639_v13 = vld [vmem:[%s7184_s1 + $0x218] sm:$0xff]  ;;  %v3561_v14 = vld [vmem:[%s7184_s1 + $0xa0] sm:$0xff]  ;;  %s7433_s22 = smov (!%p255_p3, %s3545_s22), 1  ;;  %v5559_v20 = vshrl.u32 %v503_v9, 7 }
  0x10   : > { %7298 = vst [vmem:[#allocation2_spill] sm:$0xff] %v5529_v8  ;;  %4887 = vmatprep.subr.bf16.mxu1 %v4886_v3  ;;  %v5544_v15 = vpack.c.bf16 %v3639_v13, %v3638_v12  ;;  %v3562_v16 = vld [vmem:[%s7184_s1 + $0xa8] sm:$0xff]  ;;  %v3640_v17 = vld [vmem:[%s7184_s1 + $0x220] sm:$0xff]  ;;  %4198 = vmatprep.mubr.f32.mxu1 %v5529_v8  ;;  %s5446_s25 = smul.u32 432, %s7433_s22  ;;  %v3563_v22 = vld [vmem:[%s7184_s1 + $0xb0] sm:$0xff] }
  0x11   : > { %7299 = vst [vmem:[#allocation3_spill] sm:$0xff] %v5531_v10  ;;  %v3641_v18 = vld [vmem:[%s7184_s1 + $0x228] sm:$0xff]  ;;  %5015 = vmatprep.subr.bf16.mxu0 %v5531_v10  ;;  %4889 = vmatpush3.bf16.msra.mxu1 %v4886_v3  ;;  %v4894_v19 = vpack.c.bf16 %v3562_v16, %v3561_v14  ;;  %v3564_v23 = vld [vmem:[%s7184_s1 + $0xb8] sm:$0xff]  ;;  %v3642_v24 = vld [vmem:[%s7184_s1 + $0x230] sm:$0xff]  ;;  %v5607_v35 = vadd.s32 16, %v5559_v20  ;;  %vm507_vm1 = vcmp.ge.s32.totalorder %v5559_v20, 1 }
  0x12   : > { %7300 = vst [vmem:[#allocation4_spill] sm:$0xff] %v5544_v15  ;;  %5017 = vmatpush3.bf16.msra.mxu0 %v5531_v10  ;;  %4891 = vmatprep.subr.bf16.mxu1 %v4890_v11  ;;  %v5562_v21 = vpack.c.bf16 %v3641_v18, %v3640_v17  ;;  %v3643_v25 = vld [vmem:[%s7184_s1 + $0x238] sm:$0xff]  ;;  %v3565_v26 = vld [vmem:[%s7184_s1 + $0xc0] sm:$0xff]  ;;  %v3566_v27 = vld [vmem:[%s7184_s1 + $0xc8] sm:$0xff]  ;;  %s5585_s16 = scalar_lea.vmem %s7183_s0, %s5446_s25  ;;  %v4898_v31 = vpack.c.bf16 %v3564_v23, %v3563_v22  ;;  %s3553_s25 = sshll.u32 %s7433_s22, 3 }
  0x13   : > { %5019 = vmatprep.subr.bf16.mxu0 %v5544_v15  ;;  %v3644_v28 = vld [vmem:[%s7184_s1 + $0x240] sm:$0xff]  ;;  %v3645_v29 = vld [vmem:[%s7184_s1 + $0x248] sm:$0xff]  ;;  %v3567_v30 = vld [vmem:[%s7184_s1 + $0xd0] sm:$0xff]  ;;  %v5610_v36 = vpack.c.bf16 %v3643_v25, %v3642_v24  ;;  %v4902_v43 = vpack.c.bf16 %v3566_v27, %v3565_v26  ;;  %vm518_vm2 = vcmp.le.s32.totalorder %v5607_v35, 16  ;;  %s268_s28 = scalar_lea.vmem %s7188_s5, %s3553_s25  ;;  %s272_s7 = scalar_lea.vmem %s7189_s6, %s3553_s25 }
  0x14   : > { %7301 = vst [vmem:[#allocation5_spill] sm:$0xff] %v5562_v21  ;;  %v3568_v32 = vld [vmem:[%s7184_s1 + $0xd8] sm:$0xff]  ;;  %v3646_v33 = vld [vmem:[%s7184_s1 + $0x250] sm:$0xff]  ;;  %v3569_v37 = vld [vmem:[%s7184_s1 + $0xe0] sm:$0xff]  ;;  %v5631_v44 = vpack.c.bf16 %v3645_v29, %v3644_v28 }
  0x15   : > { %4893 = vmatpush3.bf16.msra.mxu1 %v4890_v11  ;;  %v3647_v34 = vld [vmem:[%s7184_s1 + $0x258] sm:$0xff]  ;;  %7302 = vst [vmem:[#allocation6_spill] sm:$0xff] %v5610_v36  ;;  %v3570_v38 = vld [vmem:[%s7184_s1 + $0xe8] sm:$0xff]  ;;  %v277_v40 = vld [vmem:[%s5585_s16 + $0x20] sm:$0xff]  ;;  %v5643_v50 = vpack.c.bf16 %v3568_v32, %v3567_v30 }
  0x16   : > { %5021 = vmatpush3.bf16.msra.mxu0 %v5544_v15  ;;  %4895 = vmatprep.subr.bf16.mxu1 %v4894_v19  ;;  %v276_v39 = vld [vmem:[%s5585_s16 + $0x18] sm:$0xff]  ;;  %v5623_v41 = vld [vmem:[%s7185_s2] ss:$0 sm:$0xff]  ;;  %7303 = vst [vmem:[#allocation7_spill] sm:$0xff] %v5631_v44  ;;  %v3649_v46 = vld [vmem:[%s7184_s1 + $0x268] sm:$0xff]  ;;  %v5645_v51 = vpack.c.bf16 %v3647_v34, %v3646_v33  ;;  %v5657_v56 = vpack.c.bf16 %v3570_v38, %v3569_v37 }
  0x17   : > { %5023 = vmatprep.subr.bf16.mxu0 %v5562_v21  ;;  %v5628_v42 = vld [vmem:[%s7186_s3] ss:$0 sm:$0xff]  ;;  %v337_v47 = vmul.f32 %v5623_v41, %v276_v39  ;;  %v338_v48 = vmul.f32 %v5623_v41, %v277_v40  ;;  %v278_v49 = vld [vmem:[%s5585_s16 + $0x28] sm:$0x3]  ;;  %v3571_v52 = vld [vmem:[%s7184_s1 + $0xf0] sm:$0xff] }
  0x18   : > { %v3648_v45 = vld [vmem:[%s7184_s1 + $0x260] sm:$0xff]  ;;  %7304 = vst [vmem:[#allocation8_spill] sm:$0xff] %v5645_v51  ;;  %v3572_v53 = vld [vmem:[%s7184_s1 + $0xf8] sm:$0xff]  ;;  %v339_v54 = vmul.f32 %v5623_v41, %v278_v49  ;;  %v279_v55 = vld [vmem:[%s5585_s16 + $0x30] sm:$0xff] }
  0x19   : > { %4897 = vmatpush3.bf16.msra.mxu1 %v4894_v19  ;;  %v398_v57 = vadd.f32 %v5628_v42, %v337_v47  ;;  %v399_v58 = vadd.f32 %v5628_v42, %v338_v48  ;;  %v280_v59 = vld [vmem:[%s5585_s16 + $0x38] sm:$0xff]  ;;  %v340_v60 = vmul.f32 %v5623_v41, %v279_v55  ;;  %v281_v61 = vld [vmem:[%s5585_s16 + $0x40] sm:$0x3]  ;;  %v5664_v62 = vpack.c.bf16 %v3649_v46, %v3648_v45  ;;  %v282_v2 = vld [vmem:[%s5585_s16 + $0x48] sm:$0xff] }
  0x1a   : > { %5025 = vmatpush3.bf16.msra.mxu0 %v5562_v21  ;;  %4899 = vmatprep.subr.bf16.mxu1 %v4898_v31  ;;  %v400_v63 = vadd.f32 %v5628_v42, %v339_v54  ;;  %v341_v0 = vmul.f32 %v5623_v41, %v280_v59  ;;  %v342_v1 = vmul.f32 %v5623_v41, %v281_v61  ;;  %v283_v3 = vld [vmem:[%s5585_s16 + $0x50] sm:$0xff]  ;;  %v3651_v12 = vld [vmem:[%s7184_s1 + $0x278] sm:$0xff]  ;;  %v579_v22 = vld [vmem:[%s7184_s1] sm:$0xff] }
  0x1b   : > { %5027 = vmatprep.subr.bf16.mxu0 %v5610_v36  ;;  %7305 = vst [vmem:[#allocation9_spill] sm:$0xff] %v5664_v62  ;;  %v5671_v4 = vpack.c.bf16 %v3572_v53, %v3571_v52  ;;  %v5673_v5 = vmax.f32 %v398_v57, 0.0  ;;  %v5675_v6 = vmax.f32 %v399_v58, 0.0  ;;  %v401_v9 = vadd.f32 %v5628_v42, %v340_v60  ;;  %v3650_v11 = vld [vmem:[%s7184_s1 + $0x270] sm:$0xff]  ;;  %v580_v23 = vld [vmem:[%s7184_s1 + $0x8] sm:$0xff]  ;;  %v3652_v28 = vld [vmem:[%s7184_s1 + $0x280] sm:$0xff] }
  0x1c   : > { %v454_v13 = vmax.f32 %v400_v63, 0.0  ;;  %v402_v14 = vadd.f32 %v5628_v42, %v341_v0  ;;  %v403_v16 = vadd.f32 %v5628_v42, %v342_v1  ;;  %v343_v17 = vmul.f32 %v5623_v41, %v282_v2  ;;  %v3653_v29 = vld [vmem:[%s7184_s1 + $0x288] sm:$0xff]  ;;  %v3654_v37 = vld [vmem:[%s7184_s1 + $0x290] sm:$0xff]  ;;  %v3655_v38 = vld [vmem:[%s7184_s1 + $0x298] sm:$0xff] }
  0x1d   : > { %4901 = vmatpush3.bf16.msra.mxu1 %v4898_v31  ;;  %7306 = vst [vmem:[#allocation10_spill] sm:$0xff] %v5673_v5  ;;  %7307 = vst [vmem:[#allocation11_spill] sm:$0xff] %v5675_v6  ;;  %v5692_v18 = vsel %vm507_vm1, %v5673_v5, 0.0  ;;  %v650_v19 = vrot.slane %v5675_v6, 1  ;;  %v5701_v24 = vmax.f32 %v401_v9, 0.0  ;;  %v344_v25 = vmul.f32 %v5623_v41, %v283_v3  ;;  %v581_v48 = vld [vmem:[%s7184_s1 + $0x10] sm:$0xff] }
  0x1e   : > { %5029 = vmatpush3.bf16.msra.mxu0 %v5610_v36  ;;  %4903 = vmatprep.subr.bf16.mxu1 %v4902_v43  ;;  %v649_v26 = vrot.slane %v5692_v18, 1  ;;  %v5707_v27 = vsel %vm518_vm2, %v454_v13, 0.0  ;;  %v5715_v30 = vmax.f32 %v402_v14, 0.0  ;;  %v457_v31 = vmax.f32 %v403_v16, 0.0  ;;  %v284_v40 = vld [vmem:[%s5585_s16 + $0x58] sm:$0x3] }
  0x1f   : > { %5031 = vmatprep.subr.bf16.mxu0 %v5631_v44  ;;  %v5717_v32 = vpack.c.bf16 %v3651_v12, %v3650_v11  ;;  %v652_v33 = vrot.slane %v5707_v27, 1  ;;  %v5723_v34 = vsel %vm507_vm1, %v5701_v24, 0.0  ;;  %v404_v39 = vadd.f32 %v5628_v42, %v343_v17  ;;  %v582_v49 = vld [vmem:[%s7184_s1 + $0x18] sm:$0xff]  ;;  %v285_v52 = vld [vmem:[%s5585_s16 + $0x60] sm:$0xff]  ;;  %v286_v58 = vld [vmem:[%s5585_s16 + $0x68] sm:$0xff] }
  0x20   : > { %v654_v45 = vrot.slane %v5723_v34, 1  ;;  %v655_v46 = vrot.slane %v5715_v30, 1  ;;  %v5742_v47 = vsel %vm518_vm2, %v457_v31, 0.0  ;;  %v5753_v53 = vpack.c.bf16 %v580_v23, %v579_v22  ;;  %v287_v59 = vld [vmem:[%s5585_s16 + $0x70] sm:$0x3]  ;;  %v3656_v1 = vld [vmem:[%s7184_s1 + $0x2a0] sm:$0xff] }
  0x21   : > { %4905 = vmatpush3.bf16.msra.mxu1 %v4902_v43  ;;  %7308 = vst [vmem:[#allocation12_spill] sm:$0xff] %v5717_v32  ;;  %v5736_v43 = vsel %vm643_vm0, %v649_v26, %v650_v19  ;;  %v657_v54 = vrot.slane %v5742_v47, 1  ;;  %v405_v55 = vadd.f32 %v5628_v42, %v344_v25  ;;  %v5757_v57 = vmax.f32 %v404_v39, 0.0  ;;  %v3657_v2 = vld [vmem:[%s7184_s1 + $0x2a8] sm:$0xff]  ;;  %v288_v3 = vld [vmem:[%s5585_s16 + $0x78] sm:$0xff]  ;;  %v289_v14 = vld [vmem:[%s5585_s16 + $0x80] sm:$0xff] }
  0x22   : > { %5033 = vmatpush3.bf16.msra.mxu0 %v5631_v44  ;;  %4907 = vmatprep.subr.bf16.mxu1 %v5643_v50  ;;  %v5762_v60 = vsel %vm643_vm0, %v650_v19, %v652_v33  ;;  %v5764_v61 = vpack.c.bf16 %v3653_v29, %v3652_v28  ;;  %v5766_v63 = vpack.c.bf16 %v3655_v38, %v3654_v37  ;;  %v290_v37 = vld [vmem:[%s5585_s16 + $0x88] sm:$0x3]  ;;  %v1232_v21 = vrot.slane %v5707_v27, 2  ;;  %v301_v10 = vld [vmem:[%s5585_s16 + $0xe0] sm:$0xff] }
  0x23   : > { %5035 = vmatprep.subr.bf16.mxu0 %v5645_v51  ;;  %4518 = vmatprep.mubr.f32.mxu0 %v5736_v43  ;;  %v345_v0 = vmul.f32 %v5623_v41, %v284_v40  ;;  %v5778_v9 = vsel %vm643_vm0, %v654_v45, %v655_v46  ;;  %v5780_v11 = vmax.f32 %v405_v55, 0.0  ;;  %v5782_v12 = vpack.c.bf16 %v582_v49, %v581_v48 }
  0x24   : > { %7309 = vst [vmem:[#allocation13_spill] sm:$0xff] %v5778_v9  ;;  %v346_v13 = vmul.f32 %v5623_v41, %v285_v52  ;;  %v5791_v16 = vsel %vm507_vm1, %v5757_v57, 0.0  ;;  %v347_v17 = vmul.f32 %v5623_v41, %v286_v58  ;;  %v348_v19 = vmul.f32 %v5623_v41, %v287_v59  ;;  %v3659_v52 = vld [vmem:[%s7184_s1 + $0x2b8] sm:$0xff] }
  0x25   : > { %4909 = vmatpush3.bf16.msra.mxu1 %v5643_v50  ;;  %v406_v50 = vadd.f32 %v5628_v42, %v345_v0  ;;  %v5798_v22 = vsel %vm643_vm0, %v655_v46, %v657_v54  ;;  %v5800_v23 = vpack.c.bf16 %v3657_v2, %v3656_v1  ;;  %v349_v26 = vmul.f32 %v5623_v41, %v288_v3  ;;  %v583_v0 = vld [vmem:[%s7184_s1 + $0x20] sm:$0xff]  ;;  %v584_v1 = vld [vmem:[%s7184_s1 + $0x28] sm:$0xff] }
  0x26   : > { %5037 = vmatpush3.bf16.msra.mxu0 %v5645_v51  ;;  %4911 = vmatprep.subr.bf16.mxu1 %v5657_v56  ;;  %7310 = vst [vmem:[#allocation14_spill] sm:$0xff] %v5798_v22  ;;  %v407_v25 = vadd.f32 %v5628_v42, %v346_v13  ;;  %v408_v29 = vadd.f32 %v5628_v42, %v347_v17  ;;  %v659_v38 = vrot.slane %v5791_v16, 1  ;;  %v660_v39 = vrot.slane %v5780_v11, 1  ;;  %v3660_v3 = vld [vmem:[%s7184_s1 + $0x2c0] sm:$0xff]  ;;  %v299_v51 = vld [vmem:[%s5585_s16 + $0xd0] sm:$0x3] }
  0x27   : > { %5039 = vmatprep.subr.bf16.mxu0 %v5664_v62  ;;  %v460_v28 = vmax.f32 %v406_v50, 0.0  ;;  %v409_v31 = vadd.f32 %v5628_v42, %v348_v19  ;;  %v350_v33 = vmul.f32 %v5623_v41, %v289_v14  ;;  %v410_v45 = vadd.f32 %v5628_v42, %v349_v26  ;;  %v291_v19 = vld [vmem:[%s5585_s16 + $0x90] sm:$0xff] }
  0x28   : > { %v5811_v40 = vmax.f32 %v407_v25, 0.0  ;;  %v5820_v48 = vmax.f32 %v408_v29, 0.0  ;;  %v351_v2 = vmul.f32 %v5623_v41, %v290_v37  ;;  %v292_v25 = vld [vmem:[%s5585_s16 + $0x98] sm:$0xff]  ;;  %v5860_v26 = vsel %vm643_vm0, %v659_v38, %v660_v39  ;;  %v293_v37 = vld [vmem:[%s5585_s16 + $0xa0] sm:$0x3] }
  0x29   : > { %4913 = vmatpush3.bf16.msra.mxu1 %v5657_v56  ;;  %v5818_v46 = vsel %vm518_vm2, %v460_v28, 0.0  ;;  %v463_v49 = vmax.f32 %v409_v31, 0.0  ;;  %v3658_v56 = vld [vmem:[%s7184_s1 + $0x2b0] sm:$0xff]  ;;  %v411_v54 = vadd.f32 %v5628_v42, %v350_v33  ;;  %v5836_v59 = vmax.f32 %v410_v45, 0.0  ;;  %7313 = vst [vmem:[#allocation17_spill] sm:$0xff] %v5860_v26  ;;  %v3661_v33 = vld [vmem:[%s7184_s1 + $0x2c8] sm:$0xff] }
  0x2a   : > { %7311 = vst [vmem:[#allocation15_spill] sm:$0xff] %v5811_v40  ;;  %5041 = vmatpush3.bf16.msra.mxu0 %v5664_v62  ;;  %4915 = vmatprep.subr.bf16.mxu1 %v5671_v4  ;;  %v662_v55 = vrot.slane %v5818_v46, 1  ;;  %v5834_v58 = vsel %vm507_vm1, %v5811_v40, 0.0  ;;  %v665_v14 = vrot.slane %v5820_v48, 1  ;;  %v5862_v28 = vpack.c.bf16 %v3659_v52, %v3658_v56  ;;  %v294_v45 = vld [vmem:[%s5585_s16 + $0xa8] sm:$0xff]  ;;  %v295_v52 = vld [vmem:[%s5585_s16 + $0xb0] sm:$0xff] }
  0x2b   : > { %5043 = vmatprep.subr.bf16.mxu0 %v5717_v32  ;;  %7312 = vst [vmem:[#allocation16_spill] sm:$0xff] %v5836_v59  ;;  %v664_v13 = vrot.slane %v5834_v58, 1  ;;  %v5852_v50 = vsel %vm518_vm2, %v463_v49, 0.0  ;;  %v5854_v17 = vmax.f32 %v411_v54, 0.0  ;;  %v5867_v29 = vsel %vm507_vm1, %v5836_v59, 0.0 }
  0x2c   : > { %v412_v31 = vadd.f32 %v5628_v42, %v351_v2  ;;  %v667_v49 = vrot.slane %v5852_v50, 1  ;;  %v5884_v56 = vpack.c.bf16 %v584_v1, %v583_v0  ;;  %v669_v54 = vrot.slane %v5867_v29, 1  ;;  %v296_v1 = vld [vmem:[%s5585_s16 + $0xb8] sm:$0x3]  ;;  %v311_v40 = vld [vmem:[%s5585_s16 + $0x130] sm:$0x3] }
  0x2d   : > { %4917 = vmatpush3.bf16.msra.mxu1 %v5671_v4  ;;  %v5878_v4 = vsel %vm643_vm0, %v660_v39, %v662_v55  ;;  %v5881_v38 = vsel %vm643_vm0, %v664_v13, %v665_v14  ;;  %v352_v7 = vmul.f32 %v5623_v41, %v291_v19  ;;  %v670_v39 = vrot.slane %v5854_v17, 1 }
  0x2e   : > { %5045 = vmatpush3.bf16.msra.mxu0 %v5717_v32  ;;  %4919 = vmatprep.subr.bf16.mxu1 %v5753_v53  ;;  %7314 = vst [vmem:[#allocation18_spill] sm:$0xff] %v5878_v4  ;;  %7315 = vst [vmem:[#allocation19_spill] sm:$0xff] %v5881_v38  ;;  %v466_v2 = vmax.f32 %v412_v31, 0.0  ;;  %v353_v32 = vmul.f32 %v5623_v41, %v292_v25  ;;  %v5893_v55 = vpack.c.bf16 %v3661_v33, %v3660_v3  ;;  %v3662_v3 = vld [vmem:[%s7184_s1 + $0x2d0] sm:$0xff]  ;;  %v3663_v33 = vld [vmem:[%s7184_s1 + $0x2d8] sm:$0xff] }
  0x2f   : > { %5047 = vmatprep.subr.bf16.mxu0 %v5764_v61  ;;  %v354_v13 = vmul.f32 %v5623_v41, %v293_v37  ;;  %v355_v0 = vmul.f32 %v5623_v41, %v294_v45  ;;  %v413_v25 = vadd.f32 %v5628_v42, %v352_v7  ;;  %v356_v37 = vmul.f32 %v5623_v41, %v295_v52 }
  0x30   : > { %4199 = vmatmul.mubr.f32.vlgmr.msra.gmra.mrb[0].mxu1 %v5529_v8  ;;  %v5902_v19 = vsel %vm518_vm2, %v466_v2, 0.0  ;;  %v414_v31 = vadd.f32 %v5628_v42, %v353_v32 }
  0x31   : > { %4519 = vmatmul.mubr.f32.vlgmr.msra.gmra.mrb[0].mxu0 %v5762_v60  ;;  %4921 = vmatpush3.bf16.msra.mxu1 %v5753_v53  ;;  %v5916_v53 = vsel %vm643_vm0, %v665_v14, %v667_v49  ;;  %v672_v7 = vrot.slane %v5902_v19, 1  ;;  %v415_v32 = vadd.f32 %v5628_v42, %v354_v13  ;;  %v416_v45 = vadd.f32 %v5628_v42, %v355_v0  ;;  %v297_v14 = vld [vmem:[%s5585_s16 + $0xc0] sm:$0xff] }
  0x32   : > { %5049 = vmatpush3.bf16.msra.mxu0 %v5764_v61  ;;  %4201 = vmatprep.mubr.f32.mxu1 %v5736_v43  ;;  %7316 = vst [vmem:[#allocation20_spill] sm:$0xff] %v5916_v53  ;;  %v5923_v2 = vmax.f32 %v413_v25, 0.0  ;;  %v5925_v52 = vmax.f32 %v414_v31, 0.0  ;;  %v417_v61 = vadd.f32 %v5628_v42, %v356_v37  ;;  %v357_v43 = vmul.f32 %v5623_v41, %v296_v1  ;;  %v585_v31 = vld [vmem:[%s7184_s1 + $0x30] sm:$0xff]  ;;  %v586_v1 = vld [vmem:[%s7184_s1 + $0x38] sm:$0xff]  ;;  %v3664_v37 = vld [vmem:[%s7184_s1 + $0x2e0] sm:$0xff] }
  0x33   : > { %4521 = vmatprep.mubr.f32.mxu0 %v5778_v9  ;;  %5051 = vmatprep.subr.bf16.mxu0 %v5766_v63  ;;  %v5933_v49 = vsel %vm643_vm0, %v669_v54, %v670_v39  ;;  %v469_v13 = vmax.f32 %v415_v32, 0.0  ;;  %v5935_v0 = vpack.c.bf16 %v3663_v33, %v3662_v3  ;;  %v5937_v25 = vmax.f32 %v416_v45, 0.0  ;;  %v3665_v32 = vld [vmem:[%s7184_s1 + $0x2e8] sm:$0xff] }
  0x34   : > { %7317 = vst [vmem:[#allocation21_spill] sm:$0xff] %v5923_v2  ;;  %4202 = vmatmul.mubr.f32.gmra.mrb[2].mxu1 %v5762_v60  ;;  %4923 = vmatprep.subr.bf16.mxu1 %v5782_v12  ;;  %7318 = vst [vmem:[#allocation22_spill] sm:$0xff] %v5933_v49  ;;  %v5950_v60 = vsel %vm507_vm1, %v5923_v2, 0.0  ;;  %v675_v54 = vrot.slane %v5925_v52, 1  ;;  %v5953_v3 = vmax.f32 %v417_v61, 0.0  ;;  %v418_v33 = vadd.f32 %v5628_v42, %v357_v43  ;;  %v298_v45 = vld [vmem:[%s5585_s16 + $0xc8] sm:$0xff] }
  0x35   : > { %7319 = vst [vmem:[#allocation23_spill] sm:$0xff] %v5937_v25  ;;  %4522 = vmatmul.mubr.f32.gmra.mrb[2].mxu0 %v5798_v22  ;;  %4204 = vmatprep.mubr.f32.mxu1 %v5778_v9  ;;  %v674_v8 = vrot.slane %v5950_v60, 1  ;;  %v5968_v61 = vsel %vm518_vm2, %v469_v13, 0.0  ;;  %v5973_v43 = vsel %vm507_vm1, %v5937_v25, 0.0  ;;  %v358_v62 = vmul.f32 %v5623_v41, %v297_v14 }
  0x36   : > { %5053 = vmatpush3.bf16.msra.mxu0 %v5766_v63  ;;  %4524 = vmatprep.mubr.f32.mxu0 %v5860_v26  ;;  %v5980_v63 = vsel %vm643_vm0, %v670_v39, %v672_v7  ;;  %v677_v44 = vrot.slane %v5968_v61, 1  ;;  %v4930_v36 = vpack.c.bf16 %v586_v1, %v585_v31  ;;  %v472_v13 = vmax.f32 %v418_v33, 0.0  ;;  %v3666_v39 = vld [vmem:[%s7184_s1 + $0x2f0] sm:$0xff]  ;;  %v588_v33 = vld [vmem:[%s7184_s1 + $0x48] sm:$0xff] }
  0x37   : > { %5055 = vmatprep.subr.bf16.mxu0 %v5800_v23  ;;  %4925 = vmatpush3.bf16.msra.mxu1 %v5782_v12  ;;  %7320 = vst [vmem:[#allocation24_spill] sm:$0xff] %v5980_v63  ;;  %v5986_v14 = vpack.c.bf16 %v3665_v32, %v3664_v37  ;;  %v359_v15 = vmul.f32 %v5623_v41, %v298_v45  ;;  %v679_v27 = vrot.slane %v5973_v43, 1  ;;  %v680_v7 = vrot.slane %v5953_v3, 1  ;;  %v300_v37 = vld [vmem:[%s5585_s16 + $0xd8] sm:$0xff] }
  0x38   : > { %4205 = vmatmul.mubr.f32.gmra.mrb[4].mxu1 %v5798_v22  ;;  %4927 = vmatprep.subr.bf16.mxu1 %v5884_v56  ;;  %v419_v12 = vadd.f32 %v5628_v42, %v358_v62  ;;  %v5999_v31 = vsel %vm518_vm2, %v472_v13, 0.0  ;;  %v360_v1 = vmul.f32 %v5623_v41, %v299_v51  ;;  %v587_v62 = vld [vmem:[%s7184_s1 + $0x40] sm:$0xff]  ;;  %v6012_v32 = vsel %vm643_vm0, %v674_v8, %v675_v54  ;;  %v3667_v13 = vld [vmem:[%s7184_s1 + $0x2f8] sm:$0xff]  ;;  %v3669_v8 = vld [vmem:[%s7184_s1 + $0x308] sm:$0xff] }
  0x39   : > { %4525 = vmatmul.mubr.f32.gmra.mrb[4].mxu0 %v5878_v4  ;;  %4207 = vmatprep.mubr.f32.mxu1 %v5860_v26  ;;  %7321 = vst [vmem:[#allocation25_spill] sm:$0xff] %v6012_v32  ;;  %v420_v45 = vadd.f32 %v5628_v42, %v359_v15  ;;  %v1229_v26 = vrot.slane %v5692_v18, 2  ;;  %v6030_v15 = vsel %vm643_vm0, %v675_v54, %v677_v44  ;;  %v1230_v22 = vrot.slane %v5675_v6, 2  ;;  %v302_v54 = vld [vmem:[%s5585_s16 + $0xe8] sm:$0x3] }
  0x3a   : > { %5057 = vmatpush3.bf16.msra.mxu0 %v5800_v23  ;;  %4527 = vmatprep.mubr.f32.mxu0 %v5881_v38  ;;  %v6015_v51 = vmax.f32 %v419_v12, 0.0  ;;  %v3668_v23 = vld [vmem:[%s7184_s1 + $0x300] sm:$0xff]  ;;  %7323 = vst [vmem:[#allocation27_spill] sm:$0xff] %v6030_v15  ;;  %v682_v12 = vrot.slane %v5999_v31, 1  ;;  %v421_v18 = vadd.f32 %v5628_v42, %v360_v1  ;;  %v361_v44 = vmul.f32 %v5623_v41, %v300_v37 }
  0x3b   : > { %5059 = vmatprep.subr.bf16.mxu0 %v5862_v28  ;;  %4929 = vmatpush3.bf16.msra.mxu1 %v5884_v56  ;;  %v6037_v9 = vmax.f32 %v420_v45, 0.0  ;;  %v4934_v56 = vpack.c.bf16 %v588_v33, %v587_v62  ;;  %v6049_v1 = vsel %vm643_vm0, %v679_v27, %v680_v7  ;;  %v6051_v45 = vpack.c.bf16 %v3667_v13, %v3666_v39 }
  0x3c   : > { %7322 = vst [vmem:[#allocation26_spill] sm:$0xff] %v6015_v51  ;;  %4208 = vmatmul.mubr.f32.gmra.mrb[6].mxu1 %v5878_v4  ;;  %4931 = vmatprep.subr.bf16.mxu1 %v4930_v36  ;;  %v6042_v25 = vsel %vm507_vm1, %v6015_v51, 0.0  ;;  %7324 = vst [vmem:[#allocation28_spill] sm:$0xff] %v6049_v1  ;;  %v475_v4 = vmax.f32 %v421_v18, 0.0  ;;  %v6053_v2 = vpack.c.bf16 %v3669_v8, %v3668_v23  ;;  %v303_v23 = vld [vmem:[%s5585_s16 + $0xf0] sm:$0xff]  ;;  %v1234_v18 = vrot.slane %v5723_v34, 2 }
  0x3d   : > { %4528 = vmatmul.mubr.f32.gmra.mrb[6].mxu0 %v5916_v53  ;;  %4210 = vmatprep.mubr.f32.mxu1 %v5881_v38  ;;  %v684_v62 = vrot.slane %v6042_v25, 1  ;;  %v685_v33 = vrot.slane %v6037_v9, 1  ;;  %v362_v37 = vmul.f32 %v5623_v41, %v301_v10  ;;  %v422_v27 = vadd.f32 %v5628_v42, %v361_v44 }
  0x3e   : > { %5061 = vmatpush3.bf16.msra.mxu0 %v5862_v28  ;;  %4530 = vmatprep.mubr.f32.mxu0 %v5933_v49  ;;  %v6063_v39 = vsel %vm643_vm0, %v680_v7, %v682_v12  ;;  %v6066_v28 = vsel %vm1223_vm3, %v1229_v26, %v1230_v22  ;;  %v363_v13 = vmul.f32 %v5623_v41, %v302_v54  ;;  %v6073_v8 = vsel %vm518_vm2, %v475_v4, 0.0  ;;  %v305_v26 = vld [vmem:[%s5585_s16 + $0x100] sm:$0x3] }
  0x3f   : > { %5063 = vmatprep.subr.bf16.mxu0 %v5893_v55  ;;  %7325 = vst [vmem:[#allocation29_spill] sm:$0xff] %v6063_v39  ;;  %4933 = vmatpush3.bf16.msra.mxu1 %v4930_v36  ;;  %7326 = vst [vmem:[#allocation30_spill] sm:$0xff] %v6066_v28  ;;  %v6076_v10 = vsel %vm1223_vm3, %v1230_v22, %v1232_v21  ;;  %v423_v7 = vadd.f32 %v5628_v42, %v362_v37  ;;  %v6079_v12 = vmax.f32 %v422_v27, 0.0  ;;  %v304_v36 = vld [vmem:[%s5585_s16 + $0xf8] sm:$0xff]  ;;  %v589_v21 = vld [vmem:[%s7184_s1 + $0x50] sm:$0xff] }
  0x40   : > { %4211 = vmatmul.mubr.f32.gmra.mrb[8].mxu1 %v5916_v53  ;;  %4935 = vmatprep.subr.bf16.mxu1 %v4934_v56  ;;  %7327 = vst [vmem:[#allocation31_spill] sm:$0xff] %v6076_v10  ;;  %v1235_v44 = vrot.slane %v5715_v30, 2  ;;  %v424_v4 = vadd.f32 %v5628_v42, %v363_v13  ;;  %v1237_v54 = vrot.slane %v5742_v47, 2  ;;  %v590_v22 = vld [vmem:[%s7184_s1 + $0x58] sm:$0xff]  ;;  %v6098_v34 = vsel %vm643_vm0, %v684_v62, %v685_v33 }
  0x41   : > { %7328 = vst [vmem:[#allocation32_spill] sm:$0xff] %v6079_v12  ;;  %4531 = vmatmul.mubr.f32.gmra.mrb[8].mxu0 %v5980_v63  ;;  %4213 = vmatprep.mubr.f32.mxu1 %v5933_v49  ;;  %7329 = vst [vmem:[#allocation33_spill] sm:$0xff] %v6098_v34  ;;  %v6100_v37 = vmax.f32 %v423_v7, 0.0  ;;  %v6105_v47 = vsel %vm507_vm1, %v6079_v12, 0.0  ;;  %v364_v27 = vmul.f32 %v5623_v41, %v303_v23  ;;  %v687_v13 = vrot.slane %v6073_v8, 1  ;;  %v306_v12 = vld [vmem:[%s5585_s16 + $0x108] sm:$0xff] }
  0x42   : > { %5065 = vmatpush3.bf16.msra.mxu0 %v5893_v55  ;;  %4533 = vmatprep.mubr.f32.mxu0 %v6012_v32  ;;  %v478_v55 = vmax.f32 %v424_v4, 0.0  ;;  %v365_v49 = vmul.f32 %v5623_v41, %v304_v36  ;;  %v1239_v62 = vrot.slane %v5791_v16, 2  ;;  %v689_v7 = vrot.slane %v6105_v47, 1 }
  0x43   : > { %7330 = vst [vmem:[#allocation34_spill] sm:$0xff] %v6100_v37  ;;  %5067 = vmatprep.subr.bf16.mxu0 %v5935_v0  ;;  %4937 = vmatpush3.bf16.msra.mxu1 %v4934_v56  ;;  %v425_v53 = vadd.f32 %v5628_v42, %v364_v27  ;;  %v366_v38 = vmul.f32 %v5623_v41, %v305_v26  ;;  %v690_v56 = vrot.slane %v6100_v37, 1  ;;  %v1240_v4 = vrot.slane %v5780_v11, 2  ;;  %v307_v27 = vld [vmem:[%s5585_s16 + $0x110] sm:$0xff] }
  0x44   : > { %4214 = vmatmul.mubr.f32.gmra.mrb[10].mxu1 %v5980_v63  ;;  %v4938_v23 = vpack.c.bf16 %v590_v22, %v589_v21  ;;  %v6122_v36 = vsel %vm518_vm2, %v478_v55, 0.0  ;;  %v426_v16 = vadd.f32 %v5628_v42, %v365_v49  ;;  %v6130_v26 = vsel %vm1223_vm3, %v1234_v18, %v1235_v44  ;;  %v308_v63 = vld [vmem:[%s5585_s16 + $0x118] sm:$0x3] }
  0x45   : > { %4534 = vmatmul.mubr.f32.gmra.mrb[10].mxu0 %v6030_v15  ;;  %4216 = vmatprep.mubr.f32.mxu1 %v6012_v32  ;;  %7331 = vst [vmem:[#allocation35_spill] sm:$0xff] %v6130_v26  ;;  %v6133_v21 = vsel %vm1223_vm3, %v1235_v44, %v1237_v54  ;;  %v6135_v22 = vmax.f32 %v425_v53, 0.0  ;;  %v427_v55 = vadd.f32 %v5628_v42, %v366_v38  ;;  %v692_v53 = vrot.slane %v6122_v36, 1  ;;  %v3670_v44 = vld [vmem:[%s7184_s1 + $0x310] sm:$0xff] }
  0x46   : > { %5069 = vmatpush3.bf16.msra.mxu0 %v5935_v0  ;;  %4536 = vmatprep.mubr.f32.mxu0 %v6049_v1  ;;  %v6140_v49 = vsel %vm643_vm0, %v685_v33, %v687_v13  ;;  %v6142_v32 = vmax.f32 %v426_v16, 0.0  ;;  %v1242_v0 = vrot.slane %v5818_v46, 2  ;;  %v367_v18 = vmul.f32 %v5623_v41, %v306_v12  ;;  %v3671_v46 = vld [vmem:[%s7184_s1 + $0x318] sm:$0xff] }
  0x47   : > { %7332 = vst [vmem:[#allocation36_spill] sm:$0xff] %v6135_v22  ;;  %5071 = vmatprep.subr.bf16.mxu0 %v5986_v14  ;;  %7333 = vst [vmem:[#allocation37_spill] sm:$0xff] %v6140_v49  ;;  %4939 = vmatprep.subr.bf16.mxu1 %v4938_v23  ;;  %v6152_v38 = vsel %vm507_vm1, %v6135_v22, 0.0  ;;  %v481_v33 = vmax.f32 %v427_v55, 0.0  ;;  %v368_v12 = vmul.f32 %v5623_v41, %v307_v27  ;;  %v309_v55 = vld [vmem:[%s5585_s16 + $0x120] sm:$0xff]  ;;  %v310_v22 = vld [vmem:[%s5585_s16 + $0x128] sm:$0xff] }
  0x48   : > { %4217 = vmatmul.mubr.f32.gmra.mrb[12].mxu1 %v6030_v15  ;;  %v6164_v54 = vsel %vm643_vm0, %v689_v7, %v690_v56  ;;  %v6167_v13 = vsel %vm1223_vm3, %v1239_v62, %v1240_v4  ;;  %v428_v16 = vadd.f32 %v5628_v42, %v367_v18  ;;  %v694_v15 = vrot.slane %v6152_v38, 1 }
  0x49   : > { %4537 = vmatmul.mubr.f32.gmra.mrb[12].mxu0 %v6063_v39  ;;  %4219 = vmatprep.mubr.f32.mxu1 %v6049_v1  ;;  %7334 = vst [vmem:[#allocation38_spill] sm:$0xff] %v6164_v54  ;;  %7335 = vst [vmem:[#allocation39_spill] sm:$0xff] %v6167_v13  ;;  %v695_v27 = vrot.slane %v6142_v32, 1  ;;  %v429_v1 = vadd.f32 %v5628_v42, %v368_v12  ;;  %v369_v7 = vmul.f32 %v5623_v41, %v308_v63 }
  0x4a   : > { %5073 = vmatpush3.bf16.msra.mxu0 %v5986_v14  ;;  %4539 = vmatprep.mubr.f32.mxu0 %v6098_v34  ;;  %v6181_v62 = vsel %vm518_vm2, %v481_v33, 0.0  ;;  %v6184_v14 = vsel %vm1223_vm3, %v1240_v4, %v1242_v0  ;;  %v6186_v18 = vpack.c.bf16 %v3671_v46, %v3670_v44  ;;  %v6188_v51 = vmax.f32 %v428_v16, 0.0  ;;  %v591_v0 = vld [vmem:[%s7184_s1 + $0x60] sm:$0xff] }
  0x4b   : > { %5075 = vmatprep.subr.bf16.mxu0 %v6051_v45  ;;  %7336 = vst [vmem:[#allocation40_spill] sm:$0xff] %v6184_v14  ;;  %4941 = vmatpush3.bf16.msra.mxu1 %v4938_v23  ;;  %v6192_v12 = vsel %vm643_vm0, %v690_v56, %v692_v53  ;;  %v6194_v63 = vmax.f32 %v429_v1, 0.0  ;;  %v430_v59 = vadd.f32 %v5628_v42, %v369_v7  ;;  %v1244_v4 = vrot.slane %v5834_v58, 2  ;;  %v592_v53 = vld [vmem:[%s7184_s1 + $0x68] sm:$0xff] }
  0x4c   : > { %4220 = vmatmul.mubr.f32.gmra.mrb[14].mxu1 %v6063_v39  ;;  %7337 = vst [vmem:[#allocation41_spill] sm:$0xff] %v6192_v12  ;;  %v370_v33 = vmul.f32 %v5623_v41, %v309_v55  ;;  %v6204_v23 = vsel %vm507_vm1, %v6188_v51, 0.0  ;;  %v1245_v1 = vrot.slane %v5820_v48, 2  ;;  %v371_v56 = vmul.f32 %v5623_v41, %v310_v22 }
  0x4d   : > { %4540 = vmatmul.mubr.f32.gmra.mrb[14].mxu0 %v6140_v49  ;;  %4222 = vmatprep.mubr.f32.mxu1 %v6098_v34  ;;  %v6218_v44 = vsel %vm643_vm0, %v694_v15, %v695_v27  ;;  %v697_v58 = vrot.slane %v6181_v62, 1  ;;  %v484_v46 = vmax.f32 %v430_v59, 0.0  ;;  %v699_v16 = vrot.slane %v6204_v23, 1  ;;  %v312_v34 = vld [vmem:[%s5585_s16 + $0x138] sm:$0xff] }
  0x4e   : > { %5077 = vmatpush3.bf16.msra.mxu0 %v6051_v45  ;;  %4598 = vmatprep.mubr.f32.mxu0 %v6066_v28  ;;  %7338 = vst [vmem:[#allocation42_spill] sm:$0xff] %v6218_v44  ;;  %v431_v22 = vadd.f32 %v5628_v42, %v370_v33  ;;  %v1247_v55 = vrot.slane %v5852_v50, 2  ;;  %v432_v7 = vadd.f32 %v5628_v42, %v371_v56  ;;  %v700_v15 = vrot.slane %v6194_v63, 1  ;;  %v3672_v50 = vld [vmem:[%s7184_s1 + $0x320] sm:$0xff] }
  0x4f   : > { %5079 = vmatprep.subr.bf16.mxu0 %v6053_v2  ;;  %v372_v45 = vmul.f32 %v5623_v41, %v311_v40  ;;  %v6232_v59 = vsel %vm518_vm2, %v484_v46, 0.0  ;;  %v4942_v39 = vpack.c.bf16 %v592_v53, %v591_v0  ;;  %v3673_v40 = vld [vmem:[%s7184_s1 + $0x328] sm:$0xff]  ;;  %v6245_v56 = vsel %vm1223_vm3, %v1244_v4, %v1245_v1 }
  0x50   : > { %4223 = vmatmul.mubr.f32.gmra.mrb[16].mxu1 %v6140_v49  ;;  %v6234_v33 = vmax.f32 %v431_v22, 0.0  ;;  %7340 = vst [vmem:[#allocation44_spill] sm:$0xff] %v6245_v56  ;;  %v6247_v46 = vmax.f32 %v432_v7, 0.0  ;;  %v1249_v0 = vrot.slane %v5867_v29, 2  ;;  %v313_v22 = vld [vmem:[%s5585_s16 + $0x140] sm:$0xff]  ;;  %v702_v49 = vrot.slane %v6232_v59, 1 }
  0x51   : > { %4599 = vmatmul.mubr.f32.vlgmr.msra.gmra.mrb[0].mxu0 %v6076_v10  ;;  %4225 = vmatprep.mubr.f32.mxu1 %v6164_v54  ;;  %v433_v53 = vadd.f32 %v5628_v42, %v372_v45  ;;  %v1250_v4 = vrot.slane %v5854_v17, 2  ;;  %v373_v7 = vmul.f32 %v5623_v41, %v312_v34  ;;  %v314_v29 = vld [vmem:[%s5585_s16 + $0x148] sm:$0x3]  ;;  %v6264_v45 = vsel %vm643_vm0, %v695_v27, %v697_v58  ;;  %v315_v58 = vld [vmem:[%s5585_s16 + $0x150] sm:$0xff] }
  0x52   : > { %7339 = vst [vmem:[#allocation43_spill] sm:$0xff] %v6234_v33  ;;  %7341 = vst [vmem:[#allocation45_spill] sm:$0xff] %v6247_v46  ;;  %5081 = vmatpush3.bf16.msra.mxu0 %v6053_v2  ;;  %4601 = vmatprep.mubr.f32.mxu0 %v6130_v26  ;;  %v6258_v54 = vsel %vm507_vm1, %v6234_v33, 0.0  ;;  %v1252_v26 = vrot.slane %v5902_v19, 2  ;;  %v5086_v10 = vpack.c.bf16 %v3673_v40, %v3672_v50  ;;  %v705_v50 = vrot.slane %v6247_v46, 1 }
  0x53   : > { %7342 = vst [vmem:[#allocation46_spill] sm:$0xff] %v6264_v45  ;;  %5083 = vmatprep.subr.bf16.mxu0 %v6186_v18  ;;  %v487_v2 = vmax.f32 %v433_v53, 0.0  ;;  %4943 = vmatprep.subr.bf16.mxu1 %v4942_v39  ;;  %v6270_v28 = vsel %vm643_vm0, %v699_v16, %v700_v15  ;;  %v6273_v33 = vsel %vm1223_vm3, %v1245_v1, %v1247_v55  ;;  %v704_v19 = vrot.slane %v6258_v54, 1 }
  0x54   : > { %4226 = vmatmul.mubr.f32.gmra.mrb[18].mxu1 %v6192_v12  ;;  %7343 = vst [vmem:[#allocation47_spill] sm:$0xff] %v6270_v28  ;;  %7344 = vst [vmem:[#allocation48_spill] sm:$0xff] %v6273_v33  ;;  %v374_v34 = vmul.f32 %v5623_v41, %v313_v22  ;;  %v434_v27 = vadd.f32 %v5628_v42, %v373_v7  ;;  %v375_v1 = vmul.f32 %v5623_v41, %v314_v29  ;;  %v316_v7 = vld [vmem:[%s5585_s16 + $0x158] sm:$0xff] }
  0x55   : > { %4602 = vmatmul.mubr.f32.gmra.mrb[2].mxu0 %v6133_v21  ;;  %4228 = vmatprep.mubr.f32.mxu1 %v6218_v44  ;;  %v6284_v16 = vsel %vm518_vm2, %v487_v2, 0.0  ;;  %v6290_v55 = vsel %vm643_vm0, %v700_v15, %v702_v49  ;;  %v6293_v40 = vsel %vm1223_vm3, %v1249_v0, %v1250_v4  ;;  %v6300_v2 = vsel %vm1223_vm3, %v1250_v4, %v1252_v26  ;;  %v317_v15 = vld [vmem:[%s5585_s16 + $0x160] sm:$0x3]  ;;  %v593_v0 = vld [vmem:[%s7184_s1 + $0x70] sm:$0xff] }
  0x56   : > { %4604 = vmatprep.mubr.f32.mxu0 %v6167_v13  ;;  %5085 = vmatpush3.bf16.msra.mxu0 %v6186_v18  ;;  %7345 = vst [vmem:[#allocation49_spill] sm:$0xff] %v6290_v55  ;;  %v435_v53 = vadd.f32 %v5628_v42, %v374_v34  ;;  %v6296_v22 = vmax.f32 %v434_v27, 0.0  ;;  %v1254_v29 = vrot.slane %v5950_v60, 2  ;;  %v436_v18 = vadd.f32 %v5628_v42, %v375_v1  ;;  %v594_v34 = vld [vmem:[%s7184_s1 + $0x78] sm:$0xff] }
  0x57   : > { %5087 = vmatprep.subr.bf16.mxu0 %v5086_v10  ;;  %4945 = vmatpush3.bf16.msra.mxu1 %v4942_v39  ;;  %v376_v49 = vmul.f32 %v5623_v41, %v315_v58  ;;  %v707_v26 = vrot.slane %v6284_v16, 1  ;;  %v1255_v4 = vrot.slane %v5925_v52, 2  ;;  %v6325_v27 = vsel %vm643_vm0, %v704_v19, %v705_v50  ;;  %v3674_v19 = vld [vmem:[%s7184_s1 + $0x330] sm:$0xff] }
  0x58   : > { %7346 = vst [vmem:[#allocation50_spill] sm:$0xff] %v6296_v22  ;;  %4229 = vmatmul.mubr.f32.gmra.mrb[20].mxu1 %v6264_v45  ;;  %v6314_v39 = vmax.f32 %v435_v53, 0.0  ;;  %v6319_v60 = vsel %vm507_vm1, %v6296_v22, 0.0  ;;  %7347 = vst [vmem:[#allocation51_spill] sm:$0xff] %v6325_v27  ;;  %v490_v58 = vmax.f32 %v436_v18, 0.0  ;;  %v377_v1 = vmul.f32 %v5623_v41, %v316_v7  ;;  %v3675_v7 = vld [vmem:[%s7184_s1 + $0x338] sm:$0xff] }
  0x59   : > { %4605 = vmatmul.mubr.f32.gmra.mrb[4].mxu0 %v6184_v14  ;;  %4231 = vmatprep.mubr.f32.mxu1 %v6270_v28  ;;  %v437_v53 = vadd.f32 %v5628_v42, %v376_v49  ;;  %v709_v45 = vrot.slane %v6319_v60, 1  ;;  %v378_v12 = vmul.f32 %v5623_v41, %v317_v15  ;;  %v4946_v28 = vpack.c.bf16 %v594_v34, %v593_v0  ;;  %v318_v15 = vld [vmem:[%s5585_s16 + $0x168] sm:$0xff] }
  0x5a   : > { %4607 = vmatprep.mubr.f32.mxu0 %v6245_v56  ;;  %5089 = vmatpush3.bf16.msra.mxu0 %v5086_v10  ;;  %v710_v44 = vrot.slane %v6314_v39, 1  ;;  %v6341_v18 = vsel %vm518_vm2, %v490_v58, 0.0  ;;  %v1257_v10 = vrot.slane %v5968_v61, 2  ;;  %v438_v49 = vadd.f32 %v5628_v42, %v377_v1  ;;  %v319_v61 = vld [vmem:[%s5585_s16 + $0x170] sm:$0xff] }
  0x5b   : > { %v6345_v56 = vmax.f32 %v437_v53, 0.0  ;;  %v6350_v0 = vsel %vm643_vm0, %v705_v50, %v707_v26  ;;  %v6353_v34 = vsel %vm1223_vm3, %v1254_v29, %v1255_v4  ;;  %v1259_v14 = vrot.slane %v5973_v43, 2  ;;  %4947 = vmatprep.subr.bf16.mxu1 %v4946_v28  ;;  %v320_v26 = vld [vmem:[%s5585_s16 + $0x178] sm:$0x3] }
  0x5c   : > { %4232 = vmatmul.mubr.f32.gmra.mrb[22].mxu1 %v6290_v55  ;;  %7348 = vst [vmem:[#allocation52_spill] sm:$0xff] %v6350_v0  ;;  %v439_v58 = vadd.f32 %v5628_v42, %v378_v12  ;;  %v712_v1 = vrot.slane %v6341_v18, 1  ;;  %v6361_v53 = vmax.f32 %v438_v49, 0.0  ;;  %v5090_v29 = vpack.c.bf16 %v3675_v7, %v3674_v19 }
  0x5d   : > { %4608 = vmatmul.mubr.f32.gmra.mrb[6].mxu0 %v6273_v33  ;;  %4234 = vmatprep.mubr.f32.mxu1 %v6325_v27  ;;  %v6366_v50 = vsel %vm507_vm1, %v6345_v56, 0.0  ;;  %v6371_v43 = vsel %vm643_vm0, %v709_v45, %v710_v44  ;;  %v379_v27 = vmul.f32 %v5623_v41, %v318_v15  ;;  %v6376_v49 = vsel %vm1223_vm3, %v1255_v4, %v1257_v10  ;;  %v3588_v10 = vld [vmem:[%s7184_s1 + $0x100] sm:$0xff]  ;;  %v3589_v15 = vld [vmem:[%s7184_s1 + $0x108] sm:$0xff] }
  0x5e   : > { %4610 = vmatprep.mubr.f32.mxu0 %v6293_v40  ;;  %7349 = vst [vmem:[#allocation53_spill] sm:$0xff] %v6371_v43  ;;  %v714_v12 = vrot.slane %v6366_v50, 1  ;;  %v493_v55 = vmax.f32 %v439_v58, 0.0  ;;  %4949 = vmatpush3.bf16.msra.mxu1 %v4946_v28  ;;  %v715_v33 = vrot.slane %v6361_v53, 1  ;;  %v1260_v13 = vrot.slane %v5953_v3, 2  ;;  %v3676_v58 = vld [vmem:[%s7184_s1 + $0x340] sm:$0xff] }
  0x5f   : > { %5091 = vmatprep.subr.bf16.mxu0 %v5090_v29  ;;  %v380_v19 = vmul.f32 %v5623_v41, %v319_v61  ;;  %v1262_v28 = vrot.slane %v5999_v31, 2  ;;  %v440_v7 = vadd.f32 %v5628_v42, %v379_v27  ;;  %v381_v4 = vmul.f32 %v5623_v41, %v320_v26  ;;  %v3677_v61 = vld [vmem:[%s7184_s1 + $0x348] sm:$0xff] }
  0x60   : > { %4235 = vmatmul.mubr.f32.gmra.mrb[24].mxu1 %v6350_v0  ;;  %v6384_v45 = vsel %vm518_vm2, %v493_v55, 0.0  ;;  %5093 = vmatpush3.bf16.msra.mxu0 %v5090_v29  ;;  %v6398_v55 = vsel %vm643_vm0, %v710_v44, %v712_v1  ;;  %v1264_v41 = vrot.slane %v6042_v25, 2  ;;  %v6411_v29 = vsel %vm643_vm0, %v714_v12, %v715_v33 }
  0x61   : > { %4611 = vmatmul.mubr.f32.gmra.mrb[8].mxu0 %v6300_v2  ;;  %4237 = vmatprep.mubr.f32.mxu1 %v6371_v43  ;;  %7350 = vst [vmem:[#allocation54_spill] sm:$0xff] %v6398_v55  ;;  %v717_v31 = vrot.slane %v6384_v45, 1  ;;  %v441_v27 = vadd.f32 %v5628_v42, %v380_v19  ;;  %7351 = vst [vmem:[#allocation55_spill] sm:$0xff] %v6411_v29  ;;  %v6413_v44 = vmax.f32 %v440_v7, 0.0  ;;  %v1265_v1 = vrot.slane %v6037_v9, 2 }
  0x62   : > { %4613 = vmatprep.mubr.f32.mxu0 %v6353_v34  ;;  %v442_v26 = vadd.f32 %v5628_v42, %v381_v4  ;;  %v6418_v25 = vsel %vm1223_vm3, %v1259_v14, %v1260_v13  ;;  %v4950_v43 = vpack.c.bf16 %v3589_v15, %v3588_v10  ;;  %v5094_v7 = vpack.c.bf16 %v3677_v61, %v3676_v58 }
  0x63   : > { %v6420_v19 = vmax.f32 %v441_v27, 0.0  ;;  %v6426_v0 = vsel %vm507_vm1, %v6413_v44, 0.0  ;;  %v6431_v42 = vsel %vm643_vm0, %v715_v33, %v717_v31  ;;  %v6437_v10 = vsel %vm1223_vm3, %v1260_v13, %v1262_v28  ;;  %v3678_v33 = vld [vmem:[%s7184_s1 + $0x350] sm:$0xff]  ;;  %v3679_v31 = vld [vmem:[%s7184_s1 + $0x358] sm:$0xff] }
  0x64   : > { %4238 = vmatmul.mubr.f32.gmra.mrb[26].mxu1 %v6398_v55  ;;  %v496_v12 = vmax.f32 %v442_v26, 0.0  ;;  %7353 = vst [vmem:[#allocation57_spill] sm:$0xff] %v6431_v42  ;;  %v719_v14 = vrot.slane %v6426_v0, 1  ;;  %v6440_v15 = vsel %vm1223_vm3, %v1264_v41, %v1265_v1  ;;  %v1267_v58 = vrot.slane %v6073_v8, 2  ;;  %4951 = vmatprep.subr.bf16.mxu1 %v4950_v43  ;;  %v3680_v8 = vld [vmem:[%s7184_s1 + $0x360] sm:$0xff]  ;;  %v3681_v26 = vld [vmem:[%s7184_s1 + $0x368] sm:$0xff] }
  0x65   : > { %7352 = vst [vmem:[#allocation56_spill] sm:$0xff] %v6420_v19  ;;  %4614 = vmatmul.mubr.f32.gmra.mrb[10].mxu0 %v6376_v49  ;;  %4240 = vmatprep.mubr.f32.mxu1 %v6411_v29  ;;  %v720_v4 = vrot.slane %v6420_v19, 1  ;;  %v1269_v41 = vrot.slane %v6105_v47, 2  ;;  %v1270_v61 = vrot.slane %v6100_v37, 2  ;;  %v1274_v29 = vrot.slane %v6152_v38, 2  ;;  %v3683_v38 = vld [vmem:[%s7184_s1 + $0x378] sm:$0xff] }
  0x66   : > { %4616 = vmatprep.mubr.f32.mxu0 %v6418_v25  ;;  %v6444_v27 = vsel %vm518_vm2, %v496_v12, 0.0  ;;  %5095 = vmatprep.subr.bf16.mxu0 %v5094_v7  ;;  %v5098_v12 = vpack.c.bf16 %v3679_v31, %v3678_v33  ;;  %v1275_v55 = vrot.slane %v6142_v32, 2  ;;  %v5102_v33 = vpack.c.bf16 %v3681_v26, %v3680_v8 }
  0x67   : > { %v6454_v13 = vsel %vm643_vm0, %v719_v14, %v720_v4  ;;  %v722_v28 = vrot.slane %v6444_v27, 1  ;;  %5097 = vmatpush3.bf16.msra.mxu0 %v5094_v7  ;;  %v6473_v7 = vsel %vm1223_vm3, %v1265_v1, %v1267_v58  ;;  %v1272_v14 = vrot.slane %v6122_v36, 2  ;;  %v3591_v1 = vld [vmem:[%s7184_s1 + $0x118] sm:$0xff]  ;;  %v3682_v36 = vld [vmem:[%s7184_s1 + $0x370] sm:$0xff] }
  0x68   : > { %7354 = vst [vmem:[#allocation58_spill] sm:$0xff] %v6454_v13  ;;  %4241 = vmatmul.mubr.f32.gmra.mrb[28].mxu1 %v6431_v42  ;;  %v6477_v42 = vsel %vm1223_vm3, %v1269_v41, %v1270_v61  ;;  %5099 = vmatprep.subr.bf16.mxu0 %v5098_v12  ;;  %v7356_v58 = vmov 0.0   ;;  %v1279_v41 = vrot.slane %v6204_v23, 2  ;;  %v6503_v8 = vsel %vm1223_vm3, %v1274_v29, %v1275_v55  ;;  %v3699_v23 = vld [vmem:[%s7184_s1 + $0x380] sm:$0xff]  ;;  %v3700_v29 = vld [vmem:[%s7184_s1 + $0x388] sm:$0xff] }
  0x69   : > { %4617 = vmatmul.mubr.f32.gmra.mrb[12].mxu0 %v6437_v10  ;;  %4243 = vmatprep.mubr.f32.mxu1 %v6454_v13  ;;  %v6469_v47 = vsel %vm643_vm0, %v720_v4, %v722_v28  ;;  %v3590_v4 = vld [vmem:[%s7184_s1 + $0x110] sm:$0xff]  ;;  %v6498_v31 = vsel %vm1223_vm3, %v1270_v61, %v1272_v14  ;;  %v1277_v28 = vrot.slane %v6181_v62, 2  ;;  %v1280_v26 = vrot.slane %v6194_v63, 2  ;;  %v3593_v62 = vld [vmem:[%s7184_s1 + $0x128] sm:$0xff]  ;;  %v321_v61 = vld [vmem:[%s5585_s16 + $0x180] sm:$0xff] }
  0x6a   : > { %7355 = vst [vmem:[#allocation59_spill] sm:$0xff] %v6469_v47  ;;  %4619 = vmatprep.mubr.f32.mxu0 %v6440_v15  ;;  %7357 = vst [vmem:[#allocation60_spill] sm:$0xff] %v6498_v31  ;;  %v5106_v13 = vpack.c.bf16 %v3683_v38, %v3682_v36  ;;  %v3594_v38 = vld [vmem:[%s7184_s1 + $0x130] sm:$0xff] }
  0x6b   : > { %5101 = vmatpush3.bf16.msra.mxu0 %v5098_v12  ;;  %v4954_v12 = vpack.c.bf16 %v3591_v1, %v3590_v4  ;;  %v6526_v14 = vsel %vm1223_vm3, %v1275_v55, %v1277_v28  ;;  %v1282_v4 = vrot.slane %v6232_v59, 2  ;;  %v1285_v1 = vrot.slane %v6247_v46, 2  ;;  %v322_v59 = vld [vmem:[%s5585_s16 + $0x188] sm:$0xff]  ;;  %v5456_v55 = vld [vmem:[%s7185_s2] ss:$0 sm:$0xff] }
  0x6c   : > { %4244 = vmatmul.mubr.f32.gmra.mrb[30].mxu1 %v6469_v47  ;;  %5103 = vmatprep.subr.bf16.mxu0 %v5102_v33  ;;  %v3592_v47 = vld [vmem:[%s7184_s1 + $0x120] sm:$0xff]  ;;  %7358 = vst [vmem:[#allocation61_spill] sm:$0xff] %v6526_v14  ;;  %v323_v28 = vld [vmem:[%s5585_s16 + $0x190] sm:$0x3]  ;;  %s3733_s16 = sshll.u32 %s7433_s22, 8 }
  0x6d   : > { %4620 = vmatmul.mubr.f32.gmra.mrb[14].mxu0 %v6473_v7  ;;  %4278 = vmatprep.mubr.f32.mxu1 %v7356_v58  ;;  %v4958_v36 = vpack.c.bf16 %v3593_v62, %v3592_v47  ;;  %v382_v47 = vmul.f32 %v5456_v55, %v321_v61  ;;  %v1287_v62 = vrot.slane %v6284_v16, 2  ;;  %v3596_v16 = vld [vmem:[%s7184_s1 + $0x140] sm:$0xff]  ;;  %s7133_s24 = scalar_lea.vmem %s7187_s4, %s3733_s16 }
  0x6e   : > { %4622 = vmatprep.mubr.f32.mxu0 %v6477_v42 }
  0x6f   : > { %5105 = vmatpush3.bf16.msra.mxu0 %v5102_v33  ;;  %v1284_v33 = vrot.slane %v6258_v54, 2  ;;  %v3595_v54 = vld [vmem:[%s7184_s1 + $0x138] sm:$0xff] }
  0x70   : > { %4279 = vmatmul.mubr.f32.vlgmr.msra.gmra.mrb[0].mxu1 %v7356_v58  ;;  %5107 = vmatprep.subr.bf16.mxu0 %v5106_v13  ;;  %v4962_v61 = vpack.c.bf16 %v3595_v54, %v3594_v38  ;;  %v1294_v38 = vrot.slane %v6366_v50, 2  ;;  %v1295_v54 = vrot.slane %v6361_v53, 2  ;;  %v3599_v50 = vld [vmem:[%s7184_s1 + $0x158] sm:$0xff] }
  0x71   : > { %4623 = vmatmul.mubr.f32.gmra.mrb[16].mxu0 %v6498_v31  ;;  %4953 = vmatpush3.bf16.msra.mxu1 %v4950_v43  ;;  %v6532_v43 = vsel %vm1223_vm3, %v1279_v41, %v1280_v26  ;;  %v6554_v41 = vsel %vm1223_vm3, %v1280_v26, %v1282_v4  ;;  %v5457_v26 = vld [vmem:[%s7186_s3] ss:$0 sm:$0xff]  ;;  %v6579_v4 = vsel %vm1223_vm3, %v1285_v1, %v1287_v62  ;;  %v1300_v62 = vrot.slane %v6420_v19, 2 }
  0x72   : > { %4281 = vmatprep.mubr.msk.f32.mxu1 %vm507_vm1, %v5673_v5  ;;  %4625 = vmatprep.mubr.f32.mxu0 %v6503_v8  ;;  %7359 = vst [vmem:[#allocation62_spill] sm:$0xff] %v6532_v43  ;;  %v6537_v5 = vpack.c.bf16 %v3700_v29, %v3699_v23  ;;  %v1289_v23 = vrot.slane %v6319_v60, 2  ;;  %v1290_v29 = vrot.slane %v6314_v39, 2  ;;  %v3597_v60 = vld [vmem:[%s7184_s1 + $0x148] sm:$0xff] }
  0x73   : > { %4955 = vmatprep.subr.bf16.mxu1 %v4954_v12  ;;  %5109 = vmatpush3.bf16.msra.mxu0 %v5106_v13  ;;  %v6557_v13 = vsel %vm1223_vm3, %v1284_v33, %v1285_v1  ;;  %v1292_v33 = vrot.slane %v6341_v18, 2  ;;  %v3598_v18 = vld [vmem:[%s7184_s1 + $0x150] sm:$0xff]  ;;  %v7362_v1 = vld [vmem:[#allocation15_spill] sm:$0xff] }
  0x74   : > { %4282 = vmatmul.mubr.f32.gmra.mrb[2].mxu1 %v5675_v6  ;;  %7360 = vst [vmem:[#allocation63_spill] sm:$0xff] %v6557_v13  ;;  %v383_v6 = vmul.f32 %v5456_v55, %v322_v59  ;;  %5111 = vmatprep.subr.bf16.mxu0 %v6537_v5  ;;  %v6585_v59 = vsel %vm1223_vm3, %v1289_v23, %v1290_v29 }
  0x75   : > { %4626 = vmatmul.mubr.f32.gmra.mrb[18].mxu0 %v6526_v14  ;;  %4284 = vmatprep.mubr.msk.f32.mxu1 %vm507_vm1, %v5701_v24  ;;  %v384_v14 = vmul.f32 %v5456_v55, %v323_v28  ;;  %v4966_v28 = vpack.c.bf16 %v3597_v60, %v3596_v16  ;;  %v6608_v23 = vsel %vm1223_vm3, %v1294_v38, %v1295_v54  ;;  %v1302_v38 = vrot.slane %v6444_v27, 2  ;;  %v3603_v27 = vld [vmem:[%s7184_s1 + $0x178] sm:$0xff] }
  0x76   : > { %4628 = vmatprep.mubr.f32.mxu0 %v6532_v43  ;;  %4957 = vmatpush3.bf16.msra.mxu1 %v4954_v12  ;;  %v443_v12 = vadd.f32 %v5457_v26, %v382_v47  ;;  %v444_v55 = vadd.f32 %v5457_v26, %v383_v6  ;;  %v6602_v6 = vsel %vm1223_vm3, %v1290_v29, %v1292_v33 }
  0x77   : > { %4959 = vmatprep.subr.bf16.mxu1 %v4958_v36  ;;  %v445_v47 = vadd.f32 %v5457_v26, %v384_v14  ;;  %v1297_v14 = vrot.slane %v6384_v45, 2  ;;  %v4970_v16 = vpack.c.bf16 %v3599_v50, %v3598_v18  ;;  %v3601_v45 = vld [vmem:[%s7184_s1 + $0x168] sm:$0xff]  ;;  %v6655_v35 = vsel %vm1223_vm3, %v1300_v62, %v1302_v38 }
  0x78   : > { %4285 = vmatmul.mubr.f32.gmra.mrb[4].mxu1 %v5715_v30  ;;  %v6610_v26 = vmax.f32 %v444_v55, 0.0 }
  0x79   : > { %4629 = vmatmul.mubr.f32.gmra.mrb[20].mxu0 %v6554_v41  ;;  %4287 = vmatprep.mubr.msk.f32.mxu1 %vm507_vm1, %v5757_v57  ;;  %v6630_v60 = vsel %vm1223_vm3, %v1295_v54, %v1297_v14  ;;  %v3602_v54 = vld [vmem:[%s7184_s1 + $0x170] sm:$0xff] }
  0x7a   : > { %4631 = vmatprep.mubr.f32.mxu0 %v6557_v13  ;;  %4961 = vmatpush3.bf16.msra.mxu1 %v4958_v36  ;;  %v6588_v13 = vmax.f32 %v443_v12, 0.0  ;;  %v1299_v36 = vrot.slane %v6426_v0, 2  ;;  %v499_v12 = vmax.f32 %v445_v47, 0.0  ;;  %v3600_v0 = vld [vmem:[%s7184_s1 + $0x160] sm:$0xff]  ;;  %v2169_v47 = vrot.slane %v6610_v26, 2 }
  0x7b   : > { %4963 = vmatprep.subr.bf16.mxu1 %v4962_v61  ;;  %v4974_v50 = vpack.c.bf16 %v3601_v45, %v3600_v0  ;;  %v3604_v0 = vld [vmem:[%s7184_s1 + $0x180] sm:$0xff]  ;;  %v3605_v45 = vld [vmem:[%s7184_s1 + $0x188] sm:$0xff] }
  0x7c   : > { %4288 = vmatmul.mubr.f32.gmra.mrb[6].mxu1 %v5780_v11  ;;  %7361 = vst [vmem:[#allocation64_spill] sm:$0xff] %v6588_v13  ;;  %v6616_v29 = vsel %vm507_vm1, %v6588_v13, 0.0  ;;  %v6633_v33 = vsel %vm1223_vm3, %v1299_v36, %v1300_v62  ;;  %v6640_v18 = vsel %vm518_vm2, %v499_v12, 0.0  ;;  %v4978_v12 = vpack.c.bf16 %v3603_v27, %v3602_v54  ;;  %v7366_v62 = vld [vmem:[#allocation23_spill] sm:$0xff]  ;;  %v3702_v54 = vld [vmem:[%s7184_s1 + $0x398] sm:$0xff]  ;;  %v7368_v27 = vld [vmem:[#allocation26_spill] sm:$0xff] }
  0x7d   : > { %4632 = vmatmul.mubr.f32.gmra.mrb[22].mxu0 %v6579_v4  ;;  %4290 = vmatprep.mubr.msk.f32.mxu1 %vm507_vm1, %v7362_v1  ;;  %v2168_v55 = vrot.slane %v6616_v29, 2  ;;  %v2171_v14 = vrot.slane %v6640_v18, 2  ;;  %v6676_v38 = vpack.c.bf16 %v3605_v45, %v3604_v0  ;;  %v7369_v0 = vld [vmem:[#allocation32_spill] sm:$0xff] }
  0x7e   : > { %4634 = vmatprep.mubr.f32.mxu0 %v6585_v59  ;;  %4965 = vmatpush3.bf16.msra.mxu1 %v4962_v61  ;;  %v7363_v61 = vld [vmem:[#allocation16_spill] sm:$0xff] }
  0x7f   : > { %4967 = vmatprep.subr.bf16.mxu1 %v4966_v28  ;;  %v6659_v36 = vsel %vm1223_vm3, %v2168_v55, %v2169_v47  ;;  %v3701_v55 = vld [vmem:[%s7184_s1 + $0x390] sm:$0xff] }
  0x80   : > { %4291 = vmatmul.mubr.f32.gmra.mrb[8].mxu1 %v5820_v48  ;;  %7365 = vst [vmem:[#allocation15_spill] sm:$0xff] %v6659_v36  ;;  %v3705_v45 = vld [vmem:[%s7184_s1 + $0x3b0] sm:$0xff] }
  0x81   : > { %4635 = vmatmul.mubr.f32.gmra.mrb[24].mxu0 %v6602_v6  ;;  %4293 = vmatprep.mubr.msk.f32.mxu1 %vm507_vm1, %v7363_v61 }
  0x82   : > { %4637 = vmatprep.mubr.f32.mxu0 %v6608_v23  ;;  %4969 = vmatpush3.bf16.msra.mxu1 %v4966_v28  ;;  %v7364_v28 = vld [vmem:[#allocation21_spill] sm:$0xff] }
  0x83   : > { %4971 = vmatprep.subr.bf16.mxu1 %v4970_v16 }
  0x84   : > { %4294 = vmatmul.mubr.f32.gmra.mrb[10].mxu1 %v5854_v17 }
  0x85   : > { %4638 = vmatmul.mubr.f32.gmra.mrb[26].mxu0 %v6630_v60  ;;  %4296 = vmatprep.mubr.msk.f32.mxu1 %vm507_vm1, %v7364_v28 }
  0x86   : > { %4640 = vmatprep.mubr.f32.mxu0 %v6633_v33  ;;  %4973 = vmatpush3.bf16.msra.mxu1 %v4970_v16  ;;  %v6674_v16 = vsel %vm1223_vm3, %v2169_v47, %v2171_v14  ;;  %v5114_v47 = vpack.c.bf16 %v3702_v54, %v3701_v55  ;;  %v3704_v14 = vld [vmem:[%s7184_s1 + $0x3a8] sm:$0xff]  ;;  %v3706_v55 = vld [vmem:[%s7184_s1 + $0x3b8] sm:$0xff]  ;;  %v7370_v54 = vld [vmem:[#allocation36_spill] sm:$0xff] }
  0x87   : > { %4975 = vmatprep.subr.bf16.mxu1 %v4974_v50  ;;  %7367 = vst [vmem:[#allocation16_spill] sm:$0xff] %v6674_v16  ;;  %v7429_v20 = vld [vmem:[#allocation15_spill] sm:$0xff] }
  0x88   : > { %4297 = vmatmul.mubr.f32.gmra.mrb[12].mxu1 %v5925_v52 }
  0x89   : > { %4641 = vmatmul.mubr.f32.gmra.mrb[28].mxu0 %v6655_v35  ;;  %4299 = vmatprep.mubr.msk.f32.mxu1 %vm507_vm1, %v7366_v62 }
  0x8a   : > { %4643 = vmatprep.mubr.f32.mxu0 %v6659_v36  ;;  %4977 = vmatpush3.bf16.msra.mxu1 %v4974_v50  ;;  %v3703_v50 = vld [vmem:[%s7184_s1 + $0x3a0] sm:$0xff]  ;;  %v3607_v36 = vld [vmem:[%s7184_s1 + $0x198] sm:$0xff] }
  0x8b   : > { %4979 = vmatprep.subr.bf16.mxu1 %v4978_v12 }
  0x8c   : > { %4300 = vmatmul.mubr.f32.gmra.mrb[14].mxu1 %v5953_v3 }
  0x8d   : > { %4644 = vmatmul.mubr.f32.gmra.mrb[30].mxu0 %v6674_v16  ;;  %4302 = vmatprep.mubr.msk.f32.mxu1 %vm507_vm1, %v7368_v27  ;;  %v7371_v16 = vld [vmem:[#allocation43_spill] sm:$0xff] }
  0x8e   : > { %4678 = vmatprep.mubr.msk.f32.mxu0 %vm507_vm1, %v5701_v24  ;;  %4981 = vmatpush3.bf16.msra.mxu1 %v4978_v12  ;;  %v5118_v12 = vpack.c.bf16 %v3704_v14, %v3703_v50  ;;  %v3707_v50 = vld [vmem:[%s7184_s1 + $0x3c0] sm:$0xff]  ;;  %v3708_v14 = vld [vmem:[%s7184_s1 + $0x3c8] sm:$0xff] }
  0x8f   : > { %4983 = vmatprep.subr.bf16.mxu1 %v6676_v38 }
  0x90   : > { %4303 = vmatmul.mubr.f32.gmra.mrb[16].mxu1 %v6037_v9 }
  0x91   : > { %4679 = vmatmul.mubr.f32.vlgmr.msra.gmra.mrb[0].mxu0 %v5715_v30  ;;  %4305 = vmatprep.mubr.msk.f32.mxu1 %vm507_vm1, %v7369_v0 }
  0x92   : > { %5113 = vmatpush3.bf16.msra.mxu0 %v6537_v5  ;;  %4681 = vmatprep.mubr.msk.f32.mxu0 %vm507_vm1, %v5757_v57  ;;  %v5122_v5 = vpack.c.bf16 %v3706_v55, %v3705_v45  ;;  %v3709_v45 = vld [vmem:[%s7184_s1 + $0x3d0] sm:$0xff]  ;;  %v3710_v55 = vld [vmem:[%s7184_s1 + $0x3d8] sm:$0xff] }
  0x93   : > { %5115 = vmatprep.subr.bf16.mxu0 %v5114_v47 }
  0x94   : > { %4306 = vmatmul.mubr.f32.gmra.mrb[18].mxu1 %v6100_v37 }
  0x95   : > { %4682 = vmatmul.mubr.f32.gmra.mrb[2].mxu0 %v5780_v11  ;;  %4308 = vmatprep.mubr.msk.f32.mxu1 %vm507_vm1, %v7370_v54 }
  0x96   : > { %4684 = vmatprep.mubr.msk.f32.mxu0 %vm507_vm1, %v7362_v1  ;;  %5117 = vmatpush3.bf16.msra.mxu0 %v5114_v47  ;;  %v5126_v47 = vpack.c.bf16 %v3708_v14, %v3707_v50  ;;  %v3711_v50 = vld [vmem:[%s7184_s1 + $0x3e0] sm:$0xff]  ;;  %v3712_v14 = vld [vmem:[%s7184_s1 + $0x3e8] sm:$0xff] }
  0x97   : > { %5119 = vmatprep.subr.bf16.mxu0 %v5118_v12 }
  0x98   : > { %4309 = vmatmul.mubr.f32.gmra.mrb[20].mxu1 %v6142_v32 }
  0x99   : > { %4685 = vmatmul.mubr.f32.gmra.mrb[4].mxu0 %v5820_v48  ;;  %4311 = vmatprep.mubr.msk.f32.mxu1 %vm507_vm1, %v6188_v51 }
  0x9a   : > { %4687 = vmatprep.mubr.msk.f32.mxu0 %vm507_vm1, %v7363_v61  ;;  %5121 = vmatpush3.bf16.msra.mxu0 %v5118_v12  ;;  %v5130_v12 = vpack.c.bf16 %v3710_v55, %v3709_v45  ;;  %v3713_v45 = vld [vmem:[%s7184_s1 + $0x3f0] sm:$0xff]  ;;  %v3714_v55 = vld [vmem:[%s7184_s1 + $0x3f8] sm:$0xff] }
  0x9b   : > { %5123 = vmatprep.subr.bf16.mxu0 %v5122_v5 }
  0x9c   : > { %4312 = vmatmul.mubr.f32.gmra.mrb[22].mxu1 %v6194_v63 }
  0x9d   : > { %4688 = vmatmul.mubr.f32.gmra.mrb[6].mxu0 %v5854_v17  ;;  %4314 = vmatprep.mubr.msk.f32.mxu1 %vm507_vm1, %v7371_v16 }
  0x9e   : > { %4690 = vmatprep.mubr.msk.f32.mxu0 %vm507_vm1, %v7364_v28  ;;  %5125 = vmatpush3.bf16.msra.mxu0 %v5122_v5  ;;  %v5134_v5 = vpack.c.bf16 %v3712_v14, %v3711_v50  ;;  %v3715_v50 = vld [vmem:[%s7184_s1 + $0x400] sm:$0xff]  ;;  %v3716_v14 = vld [vmem:[%s7184_s1 + $0x408] sm:$0xff] }
  0x9f   : > { %5127 = vmatprep.subr.bf16.mxu0 %v5126_v47 }
  0xa0   : > { %4315 = vmatmul.mubr.f32.gmra.mrb[24].mxu1 %v6247_v46 }
  0xa1   : > { %4691 = vmatmul.mubr.f32.gmra.mrb[8].mxu0 %v5925_v52  ;;  %4317 = vmatprep.mubr.msk.f32.mxu1 %vm507_vm1, %v6296_v22 }
  0xa2   : > { %4693 = vmatprep.mubr.msk.f32.mxu0 %vm507_vm1, %v7366_v62  ;;  %5129 = vmatpush3.bf16.msra.mxu0 %v5126_v47  ;;  %v5138_v47 = vpack.c.bf16 %v3714_v55, %v3713_v45  ;;  %v6795_v45 = vpack.c.bf16 %v3716_v14, %v3715_v50  ;;  %v3606_v55 = vld [vmem:[%s7184_s1 + $0x190] sm:$0xff]  ;;  %v3608_v50 = vld [vmem:[%s7184_s1 + $0x1a0] sm:$0xff]  ;;  %v3609_v14 = vld [vmem:[%s7184_s1 + $0x1a8] sm:$0xff] }
  0xa3   : > { %5131 = vmatprep.subr.bf16.mxu0 %v5130_v12 }
  0xa4   : > { %4318 = vmatmul.mubr.f32.gmra.mrb[26].mxu1 %v6314_v39 }
  0xa5   : > { %4694 = vmatmul.mubr.f32.gmra.mrb[10].mxu0 %v5953_v3  ;;  %4320 = vmatprep.mubr.msk.f32.mxu1 %vm507_vm1, %v6345_v56 }
  0xa6   : > { %4696 = vmatprep.mubr.msk.f32.mxu0 %vm507_vm1, %v7368_v27  ;;  %5133 = vmatpush3.bf16.msra.mxu0 %v5130_v12  ;;  %v6790_v12 = vrot.slane %v7356_v58, 2 }
  0xa7   : > { %5135 = vmatprep.subr.bf16.mxu0 %v5134_v5 }
  0xa8   : > { %4321 = vmatmul.mubr.f32.gmra.mrb[28].mxu1 %v6361_v53  ;;  %7372 = vst [vmem:[#allocation21_spill] sm:$0xff] %v6790_v12 }
  0xa9   : > { %4697 = vmatmul.mubr.f32.gmra.mrb[12].mxu0 %v6037_v9  ;;  %4323 = vmatprep.mubr.msk.f32.mxu1 %vm507_vm1, %v6413_v44 }
  0xaa   : > { %4699 = vmatprep.mubr.msk.f32.mxu0 %vm507_vm1, %v7369_v0  ;;  %5137 = vmatpush3.bf16.msra.mxu0 %v5134_v5  ;;  %v4986_v5 = vpack.c.bf16 %v3607_v36, %v3606_v55  ;;  %v4990_v36 = vpack.c.bf16 %v3609_v14, %v3608_v50  ;;  %v3610_v55 = vld [vmem:[%s7184_s1 + $0x1b0] sm:$0xff]  ;;  %v3612_v50 = vld [vmem:[%s7184_s1 + $0x1c0] sm:$0xff]  ;;  %v3613_v14 = vld [vmem:[%s7184_s1 + $0x1c8] sm:$0xff] }
  0xab   : > { %5139 = vmatprep.subr.bf16.mxu0 %v5138_v47 }
  0xac   : > { %4324 = vmatmul.mubr.f32.gmra.mrb[30].mxu1 %v6420_v19 }
  0xad   : > { %4700 = vmatmul.mubr.f32.gmra.mrb[14].mxu0 %v6100_v37  ;;  %4358 = vmatprep.mubr.f32.mxu1 %v6790_v12  ;;  %v7373_v37 = vld [vmem:[#allocation30_spill] sm:$0xff] }
  0xae   : > { %4702 = vmatprep.mubr.msk.f32.mxu0 %vm507_vm1, %v7370_v54  ;;  %5141 = vmatpush3.bf16.msra.mxu0 %v5138_v47  ;;  %v7374_v47 = vld [vmem:[#allocation31_spill] sm:$0xff] }
  0xaf   : > { %5143 = vmatprep.subr.bf16.mxu0 %v6795_v45 }
  0xb0   : > { %4359 = vmatmul.mubr.f32.vlgmr.msra.gmra.mrb[0].mxu1 %v6790_v12  ;;  %v3611_v12 = vld [vmem:[%s7184_s1 + $0x1b8] sm:$0xff] }
  0xb1   : > { %4703 = vmatmul.mubr.f32.gmra.mrb[16].mxu0 %v6142_v32  ;;  %4985 = vmatpush3.bf16.msra.mxu1 %v6676_v38  ;;  %v7375_v38 = vld [vmem:[#allocation35_spill] sm:$0xff] }
  0xb2   : > { %4361 = vmatprep.mubr.f32.mxu1 %v7373_v37  ;;  %4705 = vmatprep.mubr.msk.f32.mxu0 %vm507_vm1, %v6188_v51  ;;  %v4994_v37 = vpack.c.bf16 %v3611_v12, %v3610_v55  ;;  %v4998_v12 = vpack.c.bf16 %v3613_v14, %v3612_v50  ;;  %v3614_v55 = vld [vmem:[%s7184_s1 + $0x1d0] sm:$0xff]  ;;  %v3616_v14 = vld [vmem:[%s7184_s1 + $0x1e0] sm:$0xff] }
  0xb3   : > { %4987 = vmatprep.subr.bf16.mxu1 %v4986_v5  ;;  %v7379_v50 = vld [vmem:[#allocation48_spill] sm:$0xff] }
  0xb4   : > { %4362 = vmatmul.mubr.f32.gmra.mrb[2].mxu1 %v7374_v47  ;;  %v7376_v47 = vld [vmem:[#allocation39_spill] sm:$0xff] }
  0xb5   : > { %4706 = vmatmul.mubr.f32.gmra.mrb[18].mxu0 %v6194_v63  ;;  %4364 = vmatprep.mubr.f32.mxu1 %v7375_v38 }
  0xb6   : > { %4708 = vmatprep.mubr.msk.f32.mxu0 %vm507_vm1, %v7371_v16  ;;  %4989 = vmatpush3.bf16.msra.mxu1 %v4986_v5  ;;  %v7377_v5 = vld [vmem:[#allocation40_spill] sm:$0xff]  ;;  %v3615_v16 = vld [vmem:[%s7184_s1 + $0x1d8] sm:$0xff] }
  0xb7   : > { %4991 = vmatprep.subr.bf16.mxu1 %v4990_v36 }
  0xb8   : > { %4365 = vmatmul.mubr.f32.gmra.mrb[4].mxu1 %v6133_v21 }
  0xb9   : > { %4709 = vmatmul.mubr.f32.gmra.mrb[20].mxu0 %v6247_v46  ;;  %4367 = vmatprep.mubr.f32.mxu1 %v7376_v47  ;;  %v7378_v46 = vld [vmem:[#allocation44_spill] sm:$0xff] }
  0xba   : > { %4711 = vmatprep.mubr.msk.f32.mxu0 %vm507_vm1, %v6296_v22  ;;  %4993 = vmatpush3.bf16.msra.mxu1 %v4990_v36  ;;  %v5002_v36 = vpack.c.bf16 %v3615_v16, %v3614_v55  ;;  %v3617_v22 = vld [vmem:[%s7184_s1 + $0x1e8] sm:$0xff]  ;;  %v3619_v55 = vld [vmem:[%s7184_s1 + $0x1f8] sm:$0xff] }
  0xbb   : > { %4995 = vmatprep.subr.bf16.mxu1 %v4994_v37  ;;  %v5006_v16 = vpack.c.bf16 %v3617_v22, %v3616_v14  ;;  %v7380_v14 = vld [vmem:[#allocation13_spill] sm:$0xff] }
  0xbc   : > { %4368 = vmatmul.mubr.f32.gmra.mrb[6].mxu1 %v7377_v5 }
  0xbd   : > { %4712 = vmatmul.mubr.f32.gmra.mrb[22].mxu0 %v6314_v39  ;;  %4370 = vmatprep.mubr.f32.mxu1 %v7378_v46 }
  0xbe   : > { %4714 = vmatprep.mubr.msk.f32.mxu0 %vm507_vm1, %v6345_v56  ;;  %4997 = vmatpush3.bf16.msra.mxu1 %v4994_v37  ;;  %v3618_v37 = vld [vmem:[%s7184_s1 + $0x1f0] sm:$0xff] }
  0xbf   : > { %4999 = vmatprep.subr.bf16.mxu1 %v4998_v12  ;;  %v5010_v22 = vpack.c.bf16 %v3619_v55, %v3618_v37  ;;  %v3719_v55 = vld [vmem:[%s7184_s1 + $0x420] sm:$0xff] }
  0xc0   : > { %4371 = vmatmul.mubr.f32.gmra.mrb[8].mxu1 %v7379_v50 }
  0xc1   : > { %4715 = vmatmul.mubr.f32.gmra.mrb[24].mxu0 %v6361_v53  ;;  %4373 = vmatprep.mubr.f32.mxu1 %v6293_v40 }
  0xc2   : > { %4717 = vmatprep.mubr.msk.f32.mxu0 %vm507_vm1, %v6413_v44  ;;  %5001 = vmatpush3.bf16.msra.mxu1 %v4998_v12  ;;  %v3717_v12 = vld [vmem:[%s7184_s1 + $0x410] sm:$0xff] }
  0xc3   : > { %5003 = vmatprep.subr.bf16.mxu1 %v5002_v36 }
  0xc4   : > { %4374 = vmatmul.mubr.f32.gmra.mrb[10].mxu1 %v6300_v2 }
  0xc5   : > { %4718 = vmatmul.mubr.f32.gmra.mrb[26].mxu0 %v6420_v19  ;;  %4376 = vmatprep.mubr.f32.mxu1 %v6353_v34  ;;  %v7382_v19 = vld [vmem:[#allocation14_spill] sm:$0xff] }
  0xc6   : > { %4720 = vmatprep.mubr.msk.f32.mxu0 %vm507_vm1, %v6588_v13  ;;  %5005 = vmatpush3.bf16.msra.mxu1 %v5002_v36  ;;  %v3718_v36 = vld [vmem:[%s7184_s1 + $0x418] sm:$0xff]  ;;  %v3720_v13 = vld [vmem:[%s7184_s1 + $0x428] sm:$0xff] }
  0xc7   : > { %5007 = vmatprep.subr.bf16.mxu1 %v5006_v16  ;;  %v5146_v37 = vpack.c.bf16 %v3718_v36, %v3717_v12  ;;  %v3721_v12 = vld [vmem:[%s7184_s1 + $0x430] sm:$0xff]  ;;  %v3722_v36 = vld [vmem:[%s7184_s1 + $0x438] sm:$0xff] }
  0xc8   : > { %4377 = vmatmul.mubr.f32.gmra.mrb[12].mxu1 %v6376_v49 }
  0xc9   : > { %4721 = vmatmul.mubr.f32.gmra.mrb[28].mxu0 %v6610_v26  ;;  %4379 = vmatprep.mubr.f32.mxu1 %v6418_v25 }
  0xca   : > { %4723 = vmatprep.mubr.f32.mxu0 %v7356_v58  ;;  %5009 = vmatpush3.bf16.msra.mxu1 %v5006_v16  ;;  %v7381_v16 = vld [vmem:[#allocation3_spill] sm:$0xff] }
  0xcb   : > { %5011 = vmatprep.subr.bf16.mxu1 %v5010_v22 }
  0xcc   : > { %4380 = vmatmul.mubr.f32.gmra.mrb[14].mxu1 %v6437_v10 }
  0xcd   : > { %4724 = vmatmul.mubr.f32.gmra.mrb[30].mxu0 %v7356_v58  ;;  %4382 = vmatprep.mubr.f32.mxu1 %v6440_v15  ;;  %v7383_v58 = vld [vmem:[#allocation17_spill] sm:$0xff] }
  0xce   : > { %4758 = vmatprep.mubr.f32.mxu0 %v7380_v14  ;;  %5013 = vmatpush3.bf16.msra.mxu1 %v5010_v22  ;;  %v5150_v22 = vpack.c.bf16 %v3720_v13, %v3719_v55  ;;  %v7384_v14 = vld [vmem:[#allocation18_spill] sm:$0xff]  ;;  %v7386_v13 = vld [vmem:[#allocation61_spill] sm:$0xff] }
  0xcf   : > { %5174 = vmatprep.subr.bf16.mxu1 %v7381_v16  ;;  %v3723_v55 = vld [vmem:[%s7184_s1 + $0x440] sm:$0xff] }
  0xd0   : > { %4383 = vmatmul.mubr.f32.gmra.mrb[16].mxu1 %v6473_v7 }
  0xd1   : > { %4759 = vmatmul.mubr.f32.vlgmr.msra.gmra.mrb[0].mxu0 %v7382_v19  ;;  %4385 = vmatprep.mubr.f32.mxu1 %v6477_v42  ;;  %v7385_v19 = vld [vmem:[#allocation19_spill] sm:$0xff] }
  0xd2   : > { %5145 = vmatpush3.bf16.msra.mxu0 %v6795_v45  ;;  %4761 = vmatprep.mubr.f32.mxu0 %v7383_v58  ;;  %v5154_v45 = vpack.c.bf16 %v3722_v36, %v3721_v12  ;;  %v3724_v58 = vld [vmem:[%s7184_s1 + $0x448] sm:$0xff]  ;;  %v3725_v12 = vld [vmem:[%s7184_s1 + $0x450] sm:$0xff]  ;;  %v3726_v36 = vld [vmem:[%s7184_s1 + $0x458] sm:$0xff] }
  0xd3   : > { %5147 = vmatprep.subr.bf16.mxu0 %v5146_v37 }
  0xd4   : > { %4386 = vmatmul.mubr.f32.gmra.mrb[18].mxu1 %v6498_v31  ;;  %v7387_v31 = vld [vmem:[#allocation20_spill] sm:$0xff] }
  0xd5   : > { %4762 = vmatmul.mubr.f32.gmra.mrb[2].mxu0 %v7384_v14  ;;  %4388 = vmatprep.mubr.f32.mxu1 %v6503_v8  ;;  %v7388_v14 = vld [vmem:[#allocation22_spill] sm:$0xff] }
  0xd6   : > { %4764 = vmatprep.mubr.f32.mxu0 %v7385_v19  ;;  %5149 = vmatpush3.bf16.msra.mxu0 %v5146_v37  ;;  %v5158_v37 = vpack.c.bf16 %v3724_v58, %v3723_v55  ;;  %v7389_v19 = vld [vmem:[#allocation24_spill] sm:$0xff]  ;;  %v3727_v55 = vld [vmem:[%s7184_s1 + $0x460] sm:$0xff]  ;;  %v3728_v58 = vld [vmem:[%s7184_s1 + $0x468] sm:$0xff] }
  0xd7   : > { %5151 = vmatprep.subr.bf16.mxu0 %v5150_v22 }
  0xd8   : > { %4389 = vmatmul.mubr.f32.gmra.mrb[20].mxu1 %v7386_v13 }
  0xd9   : > { %4765 = vmatmul.mubr.f32.gmra.mrb[4].mxu0 %v7387_v31  ;;  %4391 = vmatprep.mubr.f32.mxu1 %v6532_v43  ;;  %v7390_v31 = vld [vmem:[#allocation63_spill] sm:$0xff]  ;;  %v7391_v43 = vld [vmem:[#allocation25_spill] sm:$0xff] }
  0xda   : > { %4767 = vmatprep.mubr.f32.mxu0 %v7388_v14  ;;  %5153 = vmatpush3.bf16.msra.mxu0 %v5150_v22  ;;  %v5162_v22 = vpack.c.bf16 %v3726_v36, %v3725_v12  ;;  %v7392_v14 = vld [vmem:[#allocation27_spill] sm:$0xff]  ;;  %v3730_v12 = vld [vmem:[%s7184_s1 + $0x478] sm:$0xff] }
  0xdb   : > { %5155 = vmatprep.subr.bf16.mxu0 %v5154_v45  ;;  %v7394_v36 = vld [vmem:[#allocation29_spill] sm:$0xff] }
  0xdc   : > { %4392 = vmatmul.mubr.f32.gmra.mrb[22].mxu1 %v6554_v41 }
  0xdd   : > { %4768 = vmatmul.mubr.f32.gmra.mrb[6].mxu0 %v7389_v19  ;;  %4394 = vmatprep.mubr.f32.mxu1 %v7390_v31  ;;  %v7393_v19 = vld [vmem:[#allocation28_spill] sm:$0xff] }
  0xde   : > { %4770 = vmatprep.mubr.f32.mxu0 %v7391_v43  ;;  %5157 = vmatpush3.bf16.msra.mxu0 %v5154_v45  ;;  %v5166_v43 = vpack.c.bf16 %v3728_v58, %v3727_v55  ;;  %v3729_v45 = vld [vmem:[%s7184_s1 + $0x470] sm:$0xff]  ;;  %v7396_v55 = vld [vmem:[#allocation37_spill] sm:$0xff]  ;;  %v7397_v58 = vld [vmem:[#allocation38_spill] sm:$0xff] }
  0xdf   : > { %5159 = vmatprep.subr.bf16.mxu0 %v5158_v37 }
  0xe0   : > { %4395 = vmatmul.mubr.f32.gmra.mrb[24].mxu1 %v6579_v4 }
  0xe1   : > { %4771 = vmatmul.mubr.f32.gmra.mrb[8].mxu0 %v7392_v14  ;;  %4397 = vmatprep.mubr.f32.mxu1 %v6585_v59  ;;  %v7395_v14 = vld [vmem:[#allocation33_spill] sm:$0xff] }
  0xe2   : > { %4773 = vmatprep.mubr.f32.mxu0 %v7393_v19  ;;  %5161 = vmatpush3.bf16.msra.mxu0 %v5158_v37  ;;  %v5170_v37 = vpack.c.bf16 %v3730_v12, %v3729_v45  ;;  %v7398_v19 = vld [vmem:[#allocation41_spill] sm:$0xff]  ;;  %v7401_v45 = vld [vmem:[#allocation11_spill] sm:$0xff]  ;;  %v7402_v12 = vld [vmem:[#allocation46_spill] sm:$0xff] }
  0xe3   : > { %5163 = vmatprep.subr.bf16.mxu0 %v5162_v22 }
  0xe4   : > { %4398 = vmatmul.mubr.f32.gmra.mrb[26].mxu1 %v6602_v6 }
  0xe5   : > { %4774 = vmatmul.mubr.f32.gmra.mrb[10].mxu0 %v7394_v36  ;;  %4400 = vmatprep.mubr.f32.mxu1 %v6608_v23  ;;  %v7399_v36 = vld [vmem:[#allocation10_spill] sm:$0xff] }
  0xe6   : > { %4776 = vmatprep.mubr.f32.mxu0 %v7395_v14  ;;  %5165 = vmatpush3.bf16.msra.mxu0 %v5162_v22  ;;  %v7400_v22 = vld [vmem:[#allocation42_spill] sm:$0xff]  ;;  %v7404_v14 = vld [vmem:[#allocation4_spill] sm:$0xff] }
  0xe7   : > { %5167 = vmatprep.subr.bf16.mxu0 %v5166_v43 }
  0xe8   : > { %4401 = vmatmul.mubr.f32.gmra.mrb[28].mxu1 %v6630_v60 }
  0xe9   : > { %4777 = vmatmul.mubr.f32.gmra.mrb[12].mxu0 %v7396_v55  ;;  %4403 = vmatprep.mubr.f32.mxu1 %v6633_v33  ;;  %v7405_v55 = vld [vmem:[#allocation49_spill] sm:$0xff] }
  0xea   : > { %4779 = vmatprep.mubr.f32.mxu0 %v7397_v58  ;;  %5169 = vmatpush3.bf16.msra.mxu0 %v5166_v43  ;;  %v7403_v43 = vld [vmem:[#allocation47_spill] sm:$0xff] }
  0xeb   : > { %5171 = vmatprep.subr.bf16.mxu0 %v5170_v37 }
  0xec   : > { %4404 = vmatmul.mubr.f32.gmra.mrb[30].mxu1 %v6655_v35 }
  0xed   : > { %4780 = vmatmul.mubr.f32.gmra.mrb[14].mxu0 %v7398_v19  ;;  %4438 = vmatprep.mubr.msk.f32.mxu1 %vm507_vm1, %v7399_v36  ;;  %v7410_v36 = vld [vmem:[#allocation6_spill] sm:$0xff] }
  0xee   : > { %4782 = vmatprep.mubr.f32.mxu0 %v7400_v22  ;;  %5173 = vmatpush3.bf16.msra.mxu0 %v5170_v37  ;;  %v7406_v37 = vld [vmem:[#allocation51_spill] sm:$0xff] }
  0xf0   : > { %4439 = vmatmul.mubr.f32.vlgmr.msra.gmra.mrb[0].mxu1 %v7401_v45  ;;  %v1888_v45 = vrot.slane %v6610_v26, 1 }
  0xf1   : > { %4783 = vmatmul.mubr.f32.gmra.mrb[16].mxu0 %v7402_v12  ;;  %5182 = vmatpush3.bf16.msra.mxu1 %v7381_v16  ;;  %v7407_v16 = vld [vmem:[#allocation5_spill] sm:$0xff] }
  0xf2   : > { %4441 = vmatprep.mubr.msk.f32.mxu1 %vm507_vm1, %v5701_v24  ;;  %4785 = vmatprep.mubr.f32.mxu0 %v7403_v43  ;;  %v7408_v24 = vld [vmem:[#allocation52_spill] sm:$0xff] }
  0xf3   : > { %5175 = vmatprep.subr.bf16.mxu1 %v7404_v14 }
  0xf4   : > { %4442 = vmatmul.mubr.f32.gmra.mrb[2].mxu1 %v5715_v30  ;;  %v7409_v30 = vld [vmem:[#allocation53_spill] sm:$0xff] }
  0xf5   : > { %4786 = vmatmul.mubr.f32.gmra.mrb[18].mxu0 %v7405_v55  ;;  %4444 = vmatprep.mubr.msk.f32.mxu1 %vm507_vm1, %v5757_v57  ;;  %v7411_v57 = vld [vmem:[#allocation54_spill] sm:$0xff] }
  0xf6   : > { %4788 = vmatprep.mubr.f32.mxu0 %v7406_v37  ;;  %5183 = vmatpush3.bf16.msra.mxu1 %v7404_v14  ;;  %v7413_v14 = vld [vmem:[#allocation7_spill] sm:$0xff] }
  0xf7   : > { %5176 = vmatprep.subr.bf16.mxu1 %v7407_v16 }
  0xf8   : > { %4445 = vmatmul.mubr.f32.gmra.mrb[4].mxu1 %v5780_v11  ;;  %v7412_v11 = vld [vmem:[#allocation55_spill] sm:$0xff] }
  0xf9   : > { %4789 = vmatmul.mubr.f32.gmra.mrb[20].mxu0 %v7408_v24  ;;  %4447 = vmatprep.mubr.msk.f32.mxu1 %vm507_vm1, %v7362_v1  ;;  %v1887_v1 = vrot.slane %v6616_v29, 1 }
  0xfa   : > { %4791 = vmatprep.mubr.f32.mxu0 %v7409_v30  ;;  %5184 = vmatpush3.bf16.msra.mxu1 %v7407_v16  ;;  %v7414_v16 = vld [vmem:[#allocation57_spill] sm:$0xff] }
  0xfb   : > { %5177 = vmatprep.subr.bf16.mxu1 %v7410_v36  ;;  %v7012_v29 = vsel %vm643_vm0, %v1887_v1, %v1888_v45 }
  0xfc   : > { %4448 = vmatmul.mubr.f32.gmra.mrb[6].mxu1 %v5820_v48  ;;  %v7415_v48 = vld [vmem:[#allocation58_spill] sm:$0xff] }
  0xfd   : > { %4792 = vmatmul.mubr.f32.gmra.mrb[22].mxu0 %v7411_v57  ;;  %4450 = vmatprep.mubr.msk.f32.mxu1 %vm507_vm1, %v7363_v61  ;;  %v1890_v61 = vrot.slane %v6640_v18, 1  ;;  %v7418_v18 = vld [vmem:[#allocation9_spill] sm:$0xff] }
  0xfe   : > { %4794 = vmatprep.mubr.f32.mxu0 %v7412_v11  ;;  %5185 = vmatpush3.bf16.msra.mxu1 %v7410_v36  ;;  %v7416_v36 = vld [vmem:[#allocation8_spill] sm:$0xff] }
  0xff   : > { %5178 = vmatprep.subr.bf16.mxu1 %v7413_v14 }
 0x100   : > { %4451 = vmatmul.mubr.f32.gmra.mrb[8].mxu1 %v5854_v17  ;;  %v7417_v17 = vld [vmem:[#allocation59_spill] sm:$0xff] }
 0x101   : > { %4795 = vmatmul.mubr.f32.gmra.mrb[24].mxu0 %v7414_v16  ;;  %4453 = vmatprep.mubr.msk.f32.mxu1 %vm507_vm1, %v7364_v28  ;;  %v7022_v28 = vsel %vm643_vm0, %v1888_v45, %v1890_v61 }
 0x102   : > { %4797 = vmatprep.mubr.f32.mxu0 %v7415_v48  ;;  %5186 = vmatpush3.bf16.msra.mxu1 %v7413_v14 }
 0x103   : > { %5179 = vmatprep.subr.bf16.mxu1 %v7416_v36 }
 0x104   : > { %4454 = vmatmul.mubr.f32.gmra.mrb[10].mxu1 %v5925_v52  ;;  %v7419_v52 = vld [vmem:[#allocation2_spill] sm:$0xff] }
 0x105   : > { %4798 = vmatmul.mubr.f32.gmra.mrb[26].mxu0 %v7417_v17  ;;  %4456 = vmatprep.mubr.msk.f32.mxu1 %vm507_vm1, %v7366_v62  ;;  %v7420_v62 = vld [vmem:[#allocation12_spill] sm:$0xff] }
 0x106   : > { %4800 = vmatprep.mubr.f32.mxu0 %v7012_v29  ;;  %5187 = vmatpush3.bf16.msra.mxu1 %v7416_v36 }
 0x107   : > { %5180 = vmatprep.subr.bf16.mxu1 %v7418_v18 }
 0x108   : > { %4457 = vmatmul.mubr.f32.gmra.mrb[12].mxu1 %v5953_v3  ;;  %v7421_v3 = vld [vmem:[#allocation34_spill] sm:$0xff] }
 0x109   : > { %4801 = vmatmul.mubr.f32.gmra.mrb[28].mxu0 %v7022_v28  ;;  %4459 = vmatprep.mubr.msk.f32.mxu1 %vm507_vm1, %v7368_v27 }
 0x10a   : > { %4803 = vmatprep.mubr.f32.mxu0 %v7419_v52  ;;  %5188 = vmatpush3.bf16.msra.mxu1 %v7418_v18 }
 0x10b   : > { %5181 = vmatprep.subr.bf16.mxu1 %v7420_v62 }
 0x10c   : > { %4460 = vmatmul.mubr.f32.gmra.mrb[14].mxu1 %v6037_v9  ;;  %v7422_v9 = vld [vmem:[#allocation43_spill] sm:$0xff] }
 0x10d   : > { %4804 = vmatmul.mubr.f32.gmra.mrb[30].mxu0 %v7419_v52  ;;  %4462 = vmatprep.mubr.msk.f32.mxu1 %vm507_vm1, %v7369_v0 }
 0x10e   : > { %4838 = vmatprep.mubr.f32.mxu0 %v7375_v38  ;;  %5189 = vmatpush3.bf16.msra.mxu1 %v7420_v62 }
 0x110   : > { %4463 = vmatmul.mubr.f32.gmra.mrb[16].mxu1 %v7421_v3 }
 0x111   : > { %4839 = vmatmul.mubr.f32.vlgmr.msra.gmra.mrb[0].mxu0 %v6133_v21  ;;  %4465 = vmatprep.mubr.msk.f32.mxu1 %vm507_vm1, %v7370_v54  ;;  %v7423_v21 = vld [vmem:[#allocation45_spill] sm:$0xff] }
 0x112   : > { %4841 = vmatprep.mubr.f32.mxu0 %v7376_v47 }
 0x114   : > { %4466 = vmatmul.mubr.f32.gmra.mrb[18].mxu1 %v6142_v32  ;;  %v7424_v32 = vld [vmem:[#allocation50_spill] sm:$0xff] }
 0x115   : > { %4842 = vmatmul.mubr.f32.gmra.mrb[2].mxu0 %v7377_v5  ;;  %4468 = vmatprep.mubr.msk.f32.mxu1 %vm507_vm1, %v6188_v51  ;;  %v7425_v51 = vld [vmem:[#allocation56_spill] sm:$0xff] }
 0x116   : > { %4844 = vmatprep.mubr.f32.mxu0 %v7378_v46  ;;  %v7428_v46 = vld [vmem:[#allocation62_spill] sm:$0xff] }
 0x118   : > { %4469 = vmatmul.mubr.f32.gmra.mrb[20].mxu1 %v6194_v63  ;;  %v7426_v63 = vld [vmem:[#allocation64_spill] sm:$0xff] }
 0x119   : > { %4845 = vmatmul.mubr.f32.gmra.mrb[4].mxu0 %v7379_v50  ;;  %4471 = vmatprep.mubr.msk.f32.mxu1 %vm507_vm1, %v7422_v9 }
 0x11a   : > { %4847 = vmatprep.mubr.f32.mxu0 %v6293_v40  ;;  %v7430_v40 = vld [vmem:[#allocation16_spill] sm:$0xff] }
 0x11c   : > { %4472 = vmatmul.mubr.f32.gmra.mrb[22].mxu1 %v7423_v21 }
 0x11d   : > { %4848 = vmatmul.mubr.f32.gmra.mrb[6].mxu0 %v6300_v2  ;;  %4474 = vmatprep.mubr.msk.f32.mxu1 %vm507_vm1, %v7424_v32  ;;  %v7431_v2 = vld [vmem:[#allocation21_spill] sm:$0xff] }
 0x11e   : > { %4850 = vmatprep.mubr.f32.mxu0 %v6353_v34 }
 0x120   : > { %4475 = vmatmul.mubr.f32.gmra.mrb[24].mxu1 %v6314_v39 }
 0x121   : > { %4851 = vmatmul.mubr.f32.gmra.mrb[8].mxu0 %v6376_v49  ;;  %4477 = vmatprep.mubr.msk.f32.mxu1 %vm507_vm1, %v6345_v56  ;;  %v7427_v56 = vld [vmem:[#allocation60_spill] sm:$0xff] }
 0x122   : > { %4853 = vmatprep.mubr.f32.mxu0 %v6418_v25 }
 0x124   : > { %4478 = vmatmul.mubr.f32.gmra.mrb[26].mxu1 %v6361_v53 }
 0x125   : > { %4854 = vmatmul.mubr.f32.gmra.mrb[10].mxu0 %v6437_v10  ;;  %4480 = vmatprep.mubr.msk.f32.mxu1 %vm507_vm1, %v6413_v44 }
 0x126   : > { %4856 = vmatprep.mubr.f32.mxu0 %v6440_v15 }
 0x128   : > { %4481 = vmatmul.mubr.f32.gmra.mrb[28].mxu1 %v7425_v51 }
 0x129   : > { %4857 = vmatmul.mubr.f32.gmra.mrb[12].mxu0 %v6473_v7  ;;  %4483 = vmatprep.mubr.msk.f32.mxu1 %vm507_vm1, %v7426_v63 }
 0x12a   : > { %4859 = vmatprep.mubr.f32.mxu0 %v6477_v42 }
 0x12c   : > { %4484 = vmatmul.mubr.f32.gmra.mrb[30].mxu1 %v6610_v26 }
 0x12d   : > { %4860 = vmatmul.mubr.f32.gmra.mrb[14].mxu0 %v7427_v56  ;;  %4542 = vmatprep.mubr.f32.mxu1 %v7397_v58 }
 0x12e   : > { %4862 = vmatprep.mubr.f32.mxu0 %v6503_v8 }
 0x130   : > { %4543 = vmatmul.mubr.f32.vlgmr.msra.gmra.mrb[16].mxu1 %v7398_v19 }
 0x131   : > { %4863 = vmatmul.mubr.f32.gmra.mrb[16].mxu0 %v7386_v13  ;;  %4545 = vmatprep.mubr.f32.mxu1 %v7400_v22 }
 0x132   : > { %4865 = vmatprep.mubr.f32.mxu0 %v7428_v46 }
 0x134   : > { %4546 = vmatmul.mubr.f32.gmra.mrb[18].mxu1 %v7402_v12 }
 0x135   : > { %4866 = vmatmul.mubr.f32.gmra.mrb[18].mxu0 %v6554_v41  ;;  %4548 = vmatprep.mubr.f32.mxu1 %v7403_v43 }
 0x136   : > { %4868 = vmatprep.mubr.f32.mxu0 %v7390_v31 }
 0x138   : > { %4549 = vmatmul.mubr.f32.gmra.mrb[20].mxu1 %v7405_v55 }
 0x139   : > { %4869 = vmatmul.mubr.f32.gmra.mrb[20].mxu0 %v6579_v4  ;;  %4551 = vmatprep.mubr.f32.mxu1 %v7406_v37 }
 0x13a   : > { %4871 = vmatprep.mubr.f32.mxu0 %v6585_v59 }
 0x13c   : > { %4552 = vmatmul.mubr.f32.gmra.mrb[22].mxu1 %v7408_v24 }
 0x13d   : > { %4872 = vmatmul.mubr.f32.gmra.mrb[22].mxu0 %v6602_v6  ;;  %4554 = vmatprep.mubr.f32.mxu1 %v7409_v30 }
 0x13e   : > { %4874 = vmatprep.mubr.f32.mxu0 %v6608_v23 }
 0x140   : > { %4555 = vmatmul.mubr.f32.gmra.mrb[24].mxu1 %v7411_v57 }
 0x141   : > { %4875 = vmatmul.mubr.f32.gmra.mrb[24].mxu0 %v6630_v60  ;;  %4557 = vmatprep.mubr.f32.mxu1 %v7412_v11 }
 0x142   : > { %4877 = vmatprep.mubr.f32.mxu0 %v6633_v33 }
 0x144   : > { %4558 = vmatmul.mubr.f32.gmra.mrb[26].mxu1 %v7414_v16 }
 0x145   : > { %4878 = vmatmul.mubr.f32.gmra.mrb[26].mxu0 %v6655_v35  ;;  %4560 = vmatprep.mubr.f32.mxu1 %v7415_v48 }
 0x146   : > { %4880 = vmatprep.mubr.f32.mxu0 %v7429_v20 }
 0x148   : > { %4561 = vmatmul.mubr.f32.gmra.mrb[28].mxu1 %v7417_v17 }
 0x149   : > { %4881 = vmatmul.mubr.f32.gmra.mrb[28].mxu0 %v7430_v40  ;;  %4563 = vmatprep.mubr.f32.mxu1 %v7012_v29 }
 0x14a   : > { %4883 = vmatprep.mubr.f32.mxu0 %v7431_v2 }
 0x14c   : > { %4564 = vmatmul.mubr.f32.gmra.mrb[30].mxu1 %v7022_v28 }
 0x14d   : > { %4884 = vmatmul.mubr.f32.gmra.mrb[30].mxu0 %v7431_v2 }
 0x1c3   : > { %v4440_v39 = vpop.f32.mrb[0].mxu1 }
 0x1c4   : > { %v1693_v34 = vpop.f32.mrb[1].mxu1 }
 0x1c7   : > { %v4443_v53 = vpop.f32.mrb[2].mxu1 }
 0x1c8   : > { %v1703_v49 = vpop.f32.mrb[3].mxu1 }
 0x1cb   : > { %v4446_v44 = vpop.f32.mrb[4].mxu1 }
 0x1cc   : > { %v1713_v25 = vpop.f32.mrb[5].mxu1 }
 0x1cf   : > { %v4449_v42 = vpop.f32.mrb[6].mxu1 }
 0x1d0   : > { %v1723_v10 = vpop.f32.mrb[7].mxu1 }
 0x1d3   : > { %v4452_v15 = vpop.f32.mrb[8].mxu1 }
 0x1d4   : > { %v1733_v7 = vpop.f32.mrb[9].mxu1 }
 0x1d7   : > { %v7117_v8 = vpop.f32.mrb[10].mxu1 }
 0x1d8   : > { %v7119_v41 = vpop.f32.mrb[11].mxu1 }
 0x1db   : > { %v7121_v4 = vpop.f32.mrb[12].mxu1 }
 0x1dc   : > { %v7123_v59 = vpop.f32.mrb[13].mxu1 }
 0x1df   : > { %v7125_v6 = vpop.f32.mrb[14].mxu1 }
 0x1e0   : > { %v7127_v23 = vpop.f32.mrb[15].mxu1 }
 0x1e4   : > { %v4840_v26 = vpop.f32.mrb[0].mxu0 }
 0x1e5   : > { %v5190_v60 = vadd.f32 %v4840_v26, %v4440_v39  ;;  %v3097_v33 = vpop.f32.mrb[1].mxu0 }
 0x1e6   : > { %v5191_v35 = vadd.f32 %v3097_v33, %v1693_v34 }
 0x1e7   : > { %3289 = vst [vmem:[%s7133_s24 + $0x8] sm:$0xff] %v5190_v60  ;;  %v3358_v27 = vmul.f32 %v5190_v60, %v5190_v60 }
 0x1e8   : > { %3288 = vst [vmem:[%s7133_s24] sm:$0xff] %v5191_v35  ;;  %v3320_v0 = vadd.f32 %v5191_v35, %v5190_v60  ;;  %v3357_v54 = vmul.f32 %v5191_v35, %v5191_v35  ;;  %v4843_v38 = vpop.f32.mrb[2].mxu0 }
 0x1e9   : > { %v5192_v47 = vadd.f32 %v4843_v38, %v4443_v53  ;;  %v3107_v5 = vpop.f32.mrb[3].mxu0 }
 0x1ea   : > { %v3389_v50 = vadd.f32 %v3358_v27, %v3357_v54  ;;  %v5193_v13 = vadd.f32 %v3107_v5, %v1703_v49 }
 0x1eb   : > { %3291 = vst [vmem:[%s7133_s24 + $0x18] sm:$0xff] %v5192_v47  ;;  %v3360_v43 = vmul.f32 %v5192_v47, %v5192_v47 }
 0x1ec   : > { %3290 = vst [vmem:[%s7133_s24 + $0x10] sm:$0xff] %v5193_v13  ;;  %v3321_v31 = vadd.f32 %v5193_v13, %v3320_v0  ;;  %v3359_v58 = vmul.f32 %v5193_v13, %v5193_v13  ;;  %v4846_v19 = vpop.f32.mrb[4].mxu0 }
 0x1ed   : > { %v5194_v22 = vadd.f32 %v4846_v19, %v4446_v44  ;;  %v3117_v12 = vpop.f32.mrb[5].mxu0 }
 0x1ee   : > { %v3390_v55 = vadd.f32 %v3389_v50, %v3359_v58  ;;  %v5195_v37 = vadd.f32 %v3117_v12, %v1713_v25  ;;  %v3322_v24 = vadd.f32 %v5192_v47, %v3321_v31 }
 0x1ef   : > { %3293 = vst [vmem:[%s7133_s24 + $0x28] sm:$0xff] %v5194_v22  ;;  %v3362_v16 = vmul.f32 %v5194_v22, %v5194_v22 }
 0x1f0   : > { %3292 = vst [vmem:[%s7133_s24 + $0x20] sm:$0xff] %v5195_v37  ;;  %v3323_v30 = vadd.f32 %v5195_v37, %v3322_v24  ;;  %v3361_v57 = vmul.f32 %v5195_v37, %v5195_v37  ;;  %v3391_v11 = vadd.f32 %v3390_v55, %v3360_v43  ;;  %v4849_v1 = vpop.f32.mrb[6].mxu0 }
 0x1f1   : > { %v5196_v45 = vadd.f32 %v4849_v1, %v4449_v42  ;;  %v3127_v14 = vpop.f32.mrb[7].mxu0 }
 0x1f2   : > { %v3392_v48 = vadd.f32 %v3391_v11, %v3361_v57  ;;  %v5197_v61 = vadd.f32 %v3127_v14, %v1723_v10  ;;  %v3324_v29 = vadd.f32 %v5194_v22, %v3323_v30 }
 0x1f3   : > { %3295 = vst [vmem:[%s7133_s24 + $0x38] sm:$0xff] %v5196_v45  ;;  %v3364_v3 = vmul.f32 %v5196_v45, %v5196_v45 }
 0x1f4   : > { %3294 = vst [vmem:[%s7133_s24 + $0x30] sm:$0xff] %v5197_v61  ;;  %v3325_v36 = vadd.f32 %v5197_v61, %v3324_v29  ;;  %v3363_v17 = vmul.f32 %v5197_v61, %v5197_v61  ;;  %v3393_v28 = vadd.f32 %v3392_v48, %v3362_v16  ;;  %v4852_v18 = vpop.f32.mrb[8].mxu0 }
 0x1f5   : > { %v5198_v52 = vadd.f32 %v4852_v18, %v4452_v15  ;;  %v3137_v62 = vpop.f32.mrb[9].mxu0 }
 0x1f6   : > { %v3394_v9 = vadd.f32 %v3393_v28, %v3363_v17  ;;  %v5199_v21 = vadd.f32 %v3137_v62, %v1733_v7  ;;  %v3326_v32 = vadd.f32 %v5196_v45, %v3325_v36 }
 0x1f7   : > { %3297 = vst [vmem:[%s7133_s24 + $0x48] sm:$0xff] %v5198_v52  ;;  %v3366_v2 = vmul.f32 %v5198_v52, %v5198_v52 }
 0x1f8   : > { %3296 = vst [vmem:[%s7133_s24 + $0x40] sm:$0xff] %v5199_v21  ;;  %v3327_v51 = vadd.f32 %v5199_v21, %v3326_v32  ;;  %v3365_v63 = vmul.f32 %v5199_v21, %v5199_v21  ;;  %v3395_v56 = vadd.f32 %v3394_v9, %v3364_v3  ;;  %v4855_v46 = vpop.f32.mrb[10].mxu0 }
 0x1f9   : > { %v5200_v20 = vadd.f32 %v4855_v46, %v7117_v8  ;;  %v3147_v40 = vpop.f32.mrb[11].mxu0 }
 0x1fa   : > { %v3396_v39 = vadd.f32 %v3395_v56, %v3365_v63  ;;  %v5201_v34 = vadd.f32 %v3147_v40, %v7119_v41  ;;  %v3328_v53 = vadd.f32 %v5198_v52, %v3327_v51 }
 0x1fb   : > { %3299 = vst [vmem:[%s7133_s24 + $0x58] sm:$0xff] %v5200_v20  ;;  %v3368_v7 = vmul.f32 %v5200_v20, %v5200_v20 }
 0x1fc   : > { %3298 = vst [vmem:[%s7133_s24 + $0x50] sm:$0xff] %v5201_v34  ;;  %v3329_v49 = vadd.f32 %v5201_v34, %v3328_v53  ;;  %v3367_v44 = vmul.f32 %v5201_v34, %v5201_v34  ;;  %v3397_v25 = vadd.f32 %v3396_v39, %v3366_v2  ;;  %v4858_v42 = vpop.f32.mrb[12].mxu0 }
 0x1fd   : > { %v5202_v10 = vadd.f32 %v4858_v42, %v7121_v4  ;;  %v3157_v15 = vpop.f32.mrb[13].mxu0 }
 0x1fe   : > { %v3398_v8 = vadd.f32 %v3397_v25, %v3367_v44  ;;  %v5203_v26 = vadd.f32 %v3157_v15, %v7123_v59  ;;  %v3330_v60 = vadd.f32 %v5200_v20, %v3329_v49 }
 0x1ff   : > { %3301 = vst [vmem:[%s7133_s24 + $0x68] sm:$0xff] %v5202_v10  ;;  %v3370_v38 = vmul.f32 %v5202_v10, %v5202_v10 }
 0x200   : > { %3300 = vst [vmem:[%s7133_s24 + $0x60] sm:$0xff] %v5203_v26  ;;  %v3331_v41 = vadd.f32 %v5203_v26, %v3330_v60  ;;  %v3369_v33 = vmul.f32 %v5203_v26, %v5203_v26  ;;  %v3399_v35 = vadd.f32 %v3398_v8, %v3368_v7  ;;  %v4861_v27 = vpop.f32.mrb[14].mxu0 }
 0x201   : > { %v5204_v0 = vadd.f32 %v4861_v27, %v7125_v6  ;;  %v3167_v54 = vpop.f32.mrb[15].mxu0 }
 0x202   : > { %v3400_v47 = vadd.f32 %v3399_v35, %v3369_v33  ;;  %v5205_v4 = vadd.f32 %v3167_v54, %v7127_v23  ;;  %v3332_v5 = vadd.f32 %v5202_v10, %v3331_v41 }
 0x203   : > { %3303 = vst [vmem:[%s7133_s24 + $0x78] sm:$0xff] %v5204_v0  ;;  %v4544_v59 = vpop.f32.mrb[16].mxu1  ;;  %v3372_v43 = vmul.f32 %v5204_v0, %v5204_v0 }
 0x204   : > { %3302 = vst [vmem:[%s7133_s24 + $0x70] sm:$0xff] %v5205_v4  ;;  %v3333_v50 = vadd.f32 %v5205_v4, %v3332_v5  ;;  %v3371_v13 = vmul.f32 %v5205_v4, %v5205_v4  ;;  %v3401_v31 = vadd.f32 %v3400_v47, %v3370_v38  ;;  %v4864_v58 = vpop.f32.mrb[16].mxu0  ;;  %v2057_v19 = vpop.f32.mrb[17].mxu1 }
 0x205   : > { %v5206_v22 = vadd.f32 %v4864_v58, %v4544_v59  ;;  %v3177_v12 = vpop.f32.mrb[17].mxu0 }
 0x206   : > { %v3402_v6 = vadd.f32 %v3401_v31, %v3371_v13  ;;  %v5207_v55 = vadd.f32 %v3177_v12, %v2057_v19  ;;  %v3334_v37 = vadd.f32 %v5204_v0, %v3333_v50 }
 0x207   : > { %3305 = vst [vmem:[%s7133_s24 + $0x88] sm:$0xff] %v5206_v22  ;;  %v4547_v23 = vpop.f32.mrb[18].mxu1  ;;  %v3374_v16 = vmul.f32 %v5206_v22, %v5206_v22 }
 0x208   : > { %3304 = vst [vmem:[%s7133_s24 + $0x80] sm:$0xff] %v5207_v55  ;;  %v3335_v24 = vadd.f32 %v5207_v55, %v3334_v37  ;;  %v3373_v30 = vmul.f32 %v5207_v55, %v5207_v55  ;;  %v3403_v57 = vadd.f32 %v3402_v6, %v3372_v43  ;;  %v4867_v11 = vpop.f32.mrb[18].mxu0  ;;  %v2067_v1 = vpop.f32.mrb[19].mxu1 }
 0x209   : > { %v5208_v45 = vadd.f32 %v4867_v11, %v4547_v23  ;;  %v3187_v14 = vpop.f32.mrb[19].mxu0 }
 0x20a   : > { %v3404_v48 = vadd.f32 %v3403_v57, %v3373_v30  ;;  %v5209_v61 = vadd.f32 %v3187_v14, %v2067_v1  ;;  %v3336_v29 = vadd.f32 %v5206_v22, %v3335_v24 }
 0x20b   : > { %3307 = vst [vmem:[%s7133_s24 + $0x98] sm:$0xff] %v5208_v45  ;;  %v4550_v36 = vpop.f32.mrb[20].mxu1  ;;  %v3376_v21 = vmul.f32 %v5208_v45, %v5208_v45 }
 0x20c   : > { %3306 = vst [vmem:[%s7133_s24 + $0x90] sm:$0xff] %v5209_v61  ;;  %v3337_v17 = vadd.f32 %v5209_v61, %v3336_v29  ;;  %v3375_v28 = vmul.f32 %v5209_v61, %v5209_v61  ;;  %v3405_v18 = vadd.f32 %v3404_v48, %v3374_v16  ;;  %v4870_v52 = vpop.f32.mrb[20].mxu0  ;;  %v2077_v62 = vpop.f32.mrb[21].mxu1 }
 0x20d   : > { %v5210_v3 = vadd.f32 %v4870_v52, %v4550_v36  ;;  %v3197_v9 = vpop.f32.mrb[21].mxu0 }
 0x20e   : > { %v3406_v32 = vadd.f32 %v3405_v18, %v3375_v28  ;;  %v5211_v51 = vadd.f32 %v3197_v9, %v2077_v62  ;;  %v3338_v63 = vadd.f32 %v5208_v45, %v3337_v17 }
 0x20f   : > { %3309 = vst [vmem:[%s7133_s24 + $0xa8] sm:$0xff] %v5210_v3  ;;  %v4553_v56 = vpop.f32.mrb[22].mxu1  ;;  %v3378_v49 = vmul.f32 %v5210_v3, %v5210_v3 }
 0x210   : > { %3308 = vst [vmem:[%s7133_s24 + $0xa0] sm:$0xff] %v5211_v51  ;;  %v3339_v46 = vadd.f32 %v5211_v51, %v3338_v63  ;;  %v3377_v20 = vmul.f32 %v5211_v51, %v5211_v51  ;;  %v3407_v40 = vadd.f32 %v3406_v32, %v3376_v21  ;;  %v4873_v2 = vpop.f32.mrb[22].mxu0  ;;  %v2087_v39 = vpop.f32.mrb[23].mxu1 }
 0x211   : > { %v5212_v34 = vadd.f32 %v4873_v2, %v4553_v56  ;;  %v3207_v53 = vpop.f32.mrb[23].mxu0 }
 0x212   : > { %v3408_v44 = vadd.f32 %v3407_v40, %v3377_v20  ;;  %v5213_v25 = vadd.f32 %v3207_v53, %v2087_v39  ;;  %v3340_v42 = vadd.f32 %v5210_v3, %v3339_v46 }
 0x213   : > { %3311 = vst [vmem:[%s7133_s24 + $0xb8] sm:$0xff] %v5212_v34  ;;  %v4556_v10 = vpop.f32.mrb[24].mxu1  ;;  %v3380_v35 = vmul.f32 %v5212_v34, %v5212_v34 }
 0x214   : > { %3310 = vst [vmem:[%s7133_s24 + $0xb0] sm:$0xff] %v5213_v25  ;;  %v3341_v15 = vadd.f32 %v5213_v25, %v3340_v42  ;;  %v3379_v7 = vmul.f32 %v5213_v25, %v5213_v25  ;;  %v3409_v8 = vadd.f32 %v3408_v44, %v3378_v49  ;;  %v4876_v26 = vpop.f32.mrb[24].mxu0  ;;  %v2097_v60 = vpop.f32.mrb[25].mxu1 }
 0x215   : > { %v5214_v41 = vadd.f32 %v4876_v26, %v4556_v10  ;;  %v3217_v33 = vpop.f32.mrb[25].mxu0 }
 0x216   : > { %v3410_v27 = vadd.f32 %v3409_v8, %v3379_v7  ;;  %v5215_v0 = vadd.f32 %v3217_v33, %v2097_v60  ;;  %v3342_v54 = vadd.f32 %v5212_v34, %v3341_v15 }
 0x217   : > { %3313 = vst [vmem:[%s7133_s24 + $0xc8] sm:$0xff] %v5214_v41  ;;  %v4559_v38 = vpop.f32.mrb[26].mxu1  ;;  %v3382_v58 = vmul.f32 %v5214_v41, %v5214_v41 }
 0x218   : > { %3312 = vst [vmem:[%s7133_s24 + $0xc0] sm:$0xff] %v5215_v0  ;;  %v3343_v47 = vadd.f32 %v5215_v0, %v3342_v54  ;;  %v3381_v4 = vmul.f32 %v5215_v0, %v5215_v0  ;;  %v3411_v5 = vadd.f32 %v3410_v27, %v3380_v35  ;;  %v4879_v59 = vpop.f32.mrb[26].mxu0  ;;  %v2107_v50 = vpop.f32.mrb[27].mxu1 }
 0x219   : > { %v5216_v13 = vadd.f32 %v4879_v59, %v4559_v38  ;;  %v3227_v31 = vpop.f32.mrb[27].mxu0 }
 0x21a   : > { %v3412_v19 = vadd.f32 %v3411_v5, %v3381_v4  ;;  %v5217_v22 = vadd.f32 %v3227_v31, %v2107_v50  ;;  %v3344_v12 = vadd.f32 %v5214_v41, %v3343_v47 }
 0x21b   : > { %3315 = vst [vmem:[%s7133_s24 + $0xd8] sm:$0xff] %v5216_v13  ;;  %v4562_v43 = vpop.f32.mrb[28].mxu1  ;;  %v3384_v11 = vmul.f32 %v5216_v13, %v5216_v13 }
 0x21c   : > { %3314 = vst [vmem:[%s7133_s24 + $0xd0] sm:$0xff] %v5217_v22  ;;  %v3345_v6 = vadd.f32 %v5217_v22, %v3344_v12  ;;  %v3383_v55 = vmul.f32 %v5217_v22, %v5217_v22  ;;  %v3413_v37 = vadd.f32 %v3412_v19, %v3382_v58  ;;  %v4882_v23 = vpop.f32.mrb[28].mxu0  ;;  %v2117_v24 = vpop.f32.mrb[29].mxu1 }
 0x21d   : > { %v5218_v30 = vadd.f32 %v4882_v23, %v4562_v43  ;;  %v3237_v57 = vpop.f32.mrb[29].mxu0 }
 0x21e   : > { %v3414_v1 = vadd.f32 %v3413_v37, %v3383_v55  ;;  %v5219_v45 = vadd.f32 %v3237_v57, %v2117_v24  ;;  %v3346_v14 = vadd.f32 %v5216_v13, %v3345_v6 }
 0x21f   : > { %3317 = vst [vmem:[%s7133_s24 + $0xe8] sm:$0xff] %v5218_v30  ;;  %v4565_v16 = vpop.f32.mrb[30].mxu1  ;;  %v3386_v52 = vmul.f32 %v5218_v30, %v5218_v30 }
 0x220   : > { %3316 = vst [vmem:[%s7133_s24 + $0xe0] sm:$0xff] %v5219_v45  ;;  %v3347_v48 = vadd.f32 %v5219_v45, %v3346_v14  ;;  %v3385_v61 = vmul.f32 %v5219_v45, %v5219_v45  ;;  %v3415_v29 = vadd.f32 %v3414_v1, %v3384_v11  ;;  %v4885_v36 = vpop.f32.mrb[30].mxu0  ;;  %v2127_v17 = vpop.f32.mrb[31].mxu1 }
 0x221   : > { %v5220_v28 = vadd.f32 %v4885_v36, %v4565_v16  ;;  %v3247_v18 = vpop.f32.mrb[31].mxu0 }
 0x222   : > { %v3416_v62 = vadd.f32 %v3415_v29, %v3385_v61  ;;  %v5221_v3 = vadd.f32 %v3247_v18, %v2127_v17  ;;  %v3348_v9 = vadd.f32 %v5218_v30, %v3347_v48 }
 0x223   : > { %3319 = vst [vmem:[%s7133_s24 + $0xf8] sm:$0xff] %v5220_v28  ;;  %v3388_v63 = vmul.f32 %v5220_v28, %v5220_v28 }
 0x224   : > { %3318 = vst [vmem:[%s7133_s24 + $0xf0] sm:$0xff] %v5221_v3  ;;  %v3349_v21 = vadd.f32 %v5221_v3, %v3348_v9  ;;  %v3387_v32 = vmul.f32 %v5221_v3, %v5221_v3  ;;  %v3417_v51 = vadd.f32 %v3416_v62, %v3386_v52 }
 0x226   : > { %v3350_v56 = vadd.f32 %v5220_v28, %v3349_v21  ;;  %v3418_v46 = vadd.f32 %v3417_v51, %v3387_v32 }
 0x228   : > { %v3351_v20 = vrot.slane %v3350_v56, 4  ;;  %v3419_v40 = vadd.f32 %v3418_v46, %v3388_v63 }
 0x22a   : > { %v3352_v2 = vadd.f32 %v3351_v20, %v3350_v56  ;;  %v3420_v39 = vrot.slane %v3419_v40, 4 }
 0x22c   : > { %v3353_v34 = vrot.slane %v3352_v2, 2  ;;  %v3421_v53 = vadd.f32 %v3420_v39, %v3419_v40 }
 0x22e   : > { %v3354_v49 = vadd.f32 %v3353_v34, %v3352_v2  ;;  %v3422_v44 = vrot.slane %v3421_v53, 2 }
 0x230   : > { %v3355_v25 = vrot.slane %v3354_v49, 1  ;;  %v3423_v42 = vadd.f32 %v3422_v44, %v3421_v53 }
 0x232   : > { %v3356_v10 = vadd.f32 %v3355_v25, %v3354_v49  ;;  %v3424_v15 = vrot.slane %v3423_v42, 1 }
 0x234   : > { %v3425_v7 = vadd.f32 %v3424_v15, %v3423_v42  ;;  %3426 = vst [vmem:[%s268_s28] sm:$0xff] %v3356_v10 }
 0x236   : > { %3427 = vst [vmem:[%s272_s7] sm:$0xff] %v3425_v7 }
 0x237 PF: > { %s17_s21 = sadd.s32 1, %s5464_s21  }
 0x238   : > { %p14_p4 = scmp.ge.s32.totalorder %s17_s21, 4  }
 0x23a   :  { %16 = sbr.rel (!%p14_p4) target bundleno = 1 (0x1), region = 98 }

</bundles_post_ra>
